<compile_context>
chip_gen: v7x
topology: tpu7x:2x2x1
jax: 0.10.0
libtpu: 0.0.40
codegen_flags: <defaults>
</compile_context>

<pallas_src>
import functools

import jax
import jax.numpy as jnp
from jax.experimental import pallas as pl
from jax.experimental.pallas import tpu as pltpu


# ----------------------------------------------------------------------------
# In-kernel helpers (operate on loaded values, all math in f32)
# ----------------------------------------------------------------------------
def _layernorm(x, g, b, eps):
    # x: (M, D); g, b: (1, D)
    mean = jnp.mean(x, axis=-1, keepdims=True)
    xc = x - mean
    var = jnp.mean(xc * xc, axis=-1, keepdims=True)
    return xc * jax.lax.rsqrt(var + eps) * g + b


def _mh_attention(q, k, v, n_heads):
    """q: (B, Sq, D), k/v: (B, Sk, D), already projected. Returns (B, Sq, D)."""
    B, Sq, D = q.shape
    Dh = D // n_heads
    scale = 1.0 / (Dh ** 0.5)
    outs = []
    for h in range(n_heads):                       # static unroll, lane slices
        sl = slice(h * Dh, (h + 1) * Dh)
        qh = q[:, :, sl] * scale                   # (B, Sq, Dh)
        kh = k[:, :, sl]                           # (B, Sk, Dh)
        vh = v[:, :, sl]                           # (B, Sk, Dh)
        # contract last dims directly -> no k transpose / XLU relayout
        s = jnp.einsum('bqd,bkd->bqk', qh, kh,
                       preferred_element_type=jnp.float32)       # (B, Sq, Sk)
        s = s - jnp.max(s, axis=-1, keepdims=True)
        p = jnp.exp(s)
        denom = jnp.sum(p, axis=-1, keepdims=True)
        p = p * pl.reciprocal(denom, approx=True)                # EUP divide
        outs.append(jnp.einsum('bqk,bkd->bqd', p, vh,
                               preferred_element_type=jnp.float32))
    return jnp.concatenate(outs, axis=-1)                        # (B, Sq, D)


# ----------------------------------------------------------------------------
# Fused per-layer Pallas kernels
# ----------------------------------------------------------------------------
def _encoder_layer_kernel(x_ref,
                          wqkv_ref, bqkv_ref, wo_ref, bo_ref,
                          n1g_ref, n1b_ref,
                          w1_ref, b1_ref, w2_ref, b2_ref,
                          n2g_ref, n2b_ref,
                          o_ref, *, n_heads, eps):
    B, S, D = x_ref.shape
    x = x_ref[...].astype(jnp.float32)                           # (B, S, D)
    x2 = x.reshape(B * S, D)

    # fused Q/K/V projection (lane-dense N = 3D)
    qkv = jnp.dot(x2, wqkv_ref[...],
                  preferred_element_type=jnp.float32) + bqkv_ref[...]
    qkv = qkv.reshape(B, S, 3 * D)
    attn = _mh_attention(qkv[:, :, :D], qkv[:, :, D:2 * D], qkv[:, :, 2 * D:],
                         n_heads).reshape(B * S, D)
    attn = jnp.dot(attn, wo_ref[...],
                   preferred_element_type=jnp.float32) + bo_ref[...]

    h1 = _layernorm(x2 + attn, n1g_ref[...], n1b_ref[...], eps)

    # FFN (ReLU)
    f = jnp.dot(h1, w1_ref[...], preferred_element_type=jnp.float32) + b1_ref[...]
    f = jnp.maximum(f, 0.0)
    f = jnp.dot(f, w2_ref[...], preferred_element_type=jnp.float32) + b2_ref[...]

    out = _layernorm(h1 + f, n2g_ref[...], n2b_ref[...], eps)
    o_ref[...] = out.reshape(B, S, D).astype(o_ref.dtype)


def _decoder_layer_kernel(x_ref, mem_ref,
                          wqkv_s_ref, bqkv_s_ref, wo_s_ref, bo_s_ref,
                          n1g_ref, n1b_ref,
                          wq_c_ref, bq_c_ref, wkv_c_ref, bkv_c_ref,
                          wo_c_ref, bo_c_ref,
                          n2g_ref, n2b_ref,
                          w1_ref, b1_ref, w2_ref, b2_ref,
                          n3g_ref, n3b_ref,
                          o_ref, *, n_heads, eps):
    B, S, D = x_ref.shape
    T = mem_ref.shape[1]
    x = x_ref[...].astype(jnp.float32)                           # (B, S, D)
    mem = mem_ref[...].astype(jnp.float32)                       # (B, T, D)
    x2 = x.reshape(B * S, D)

    # ---- self-attention (fused QKV) ----
    qkv = jnp.dot(x2, wqkv_s_ref[...],
                  preferred_element_type=jnp.float32) + bqkv_s_ref[...]
    qkv = qkv.reshape(B, S, 3 * D)
    sa = _mh_attention(qkv[:, :, :D], qkv[:, :, D:2 * D], qkv[:, :, 2 * D:],
                       n_heads).reshape(B * S, D)
    sa = jnp.dot(sa, wo_s_ref[...],
                 preferred_element_type=jnp.float32) + bo_s_ref[...]
    h1 = _layernorm(x2 + sa, n1g_ref[...], n1b_ref[...], eps)

    # ---- cross-attention (query from h1, fused K/V from memory) ----
    q = jnp.dot(h1, wq_c_ref[...],
                preferred_element_type=jnp.float32) + bq_c_ref[...]
    m2 = mem.reshape(B * T, D)
    kv = jnp.dot(m2, wkv_c_ref[...],
                 preferred_element_type=jnp.float32) + bkv_c_ref[...]
    kv = kv.reshape(B, T, 2 * D)
    ca = _mh_attention(q.reshape(B, S, D), kv[:, :, :D], kv[:, :, D:],
                       n_heads).reshape(B * S, D)
    ca = jnp.dot(ca, wo_c_ref[...],
                 preferred_element_type=jnp.float32) + bo_c_ref[...]
    h2 = _layernorm(h1 + ca, n2g_ref[...], n2b_ref[...], eps)

    # ---- FFN ----
    f = jnp.dot(h2, w1_ref[...], preferred_element_type=jnp.float32) + b1_ref[...]
    f = jnp.maximum(f, 0.0)
    f = jnp.dot(f, w2_ref[...], preferred_element_type=jnp.float32) + b2_ref[...]

    out = _layernorm(h2 + f, n3g_ref[...], n3b_ref[...], eps)
    o_ref[...] = out.reshape(B, S, D).astype(o_ref.dtype)


# ----------------------------------------------------------------------------
# Layer wrappers (one pallas_call per layer, whole arrays resident in VMEM)
# ----------------------------------------------------------------------------
_VMEM = pl.BlockSpec(memory_space=pltpu.MemorySpace.VMEM)


def encoder_layer(x, p, n_heads, eps=1e-5):
    """x: (B, S, D) -> (B, S, D)."""
    args = (x,
            p["wqkv"], p["bqkv"], p["wo"], p["bo"],
            p["norm1_g"], p["norm1_b"],
            p["lin1_w"], p["lin1_b"], p["lin2_w"], p["lin2_b"],
            p["norm2_g"], p["norm2_b"])
    return pl.pallas_call(
        functools.partial(_encoder_layer_kernel, n_heads=n_heads, eps=eps),
        out_shape=jax.ShapeDtypeStruct(x.shape, x.dtype),
        in_specs=[_VMEM] * len(args),
        out_specs=_VMEM,
    )(*args)


def decoder_layer(x, memory, p, n_heads, eps=1e-5):
    """x: (B, S, D), memory: (B, T, D) -> (B, S, D)."""
    args = (x, memory,
            p["wqkv"], p["bqkv"], p["wo"], p["bo"],
            p["norm1_g"], p["norm1_b"],
            p["wq_c"], p["bq_c"], p["wkv_c"], p["bkv_c"], p["wo_c"], p["bo_c"],
            p["norm2_g"], p["norm2_b"],
            p["lin1_w"], p["lin1_b"], p["lin2_w"], p["lin2_b"],
            p["norm3_g"], p["norm3_b"])
    return pl.pallas_call(
        functools.partial(_decoder_layer_kernel, n_heads=n_heads, eps=eps),
        out_shape=jax.ShapeDtypeStruct(x.shape, x.dtype),
        in_specs=[_VMEM] * len(args),
        out_specs=_VMEM,
    )(*args)


# ----------------------------------------------------------------------------
# Full forward (matches the PyTorch module: decoder(tgt=encoder(embed(input)),
# memory=target), post-norm layers, no masks)
# ----------------------------------------------------------------------------
@functools.partial(jax.jit, static_argnums=(3,))
def transformer_forward(params, input_ids, target, n_heads):
    x = params["embed"][input_ids]                 # (S, B, D)  gather = glue
    x = jnp.transpose(x, (1, 0, 2))                # (B, S, D) internal layout
    for p in params["encoder_layers"]:
        x = encoder_layer(x, p, n_heads)
    mem = jnp.transpose(target, (1, 0, 2))         # (B, T, D)
    for p in params["decoder_layers"]:
        x = decoder_layer(x, mem, p, n_heads)
    return jnp.transpose(x, (1, 0, 2))             # back to (S, B, D)


# ----------------------------------------------------------------------------
# Deterministic parameter init — weights stored PRE-TRANSPOSED as (in, out),
# biases / LN params stored as (1, N) rows so kernels broadcast directly.
# ----------------------------------------------------------------------------
def init_params(key, n_vocab, d_model, n_heads, d_ff, n_layers=6):
    counter = [0]

    def nk():
        counter[0] += 1
        return jax.random.fold_in(key, counter[0])

    def w(shape, scale=0.02):
        return jax.random.normal(nk(), shape, jnp.float32) * scale

    def zrow(n): return jnp.zeros((1, n), jnp.float32)
    def orow(n): return jnp.ones((1, n), jnp.float32)

    def enc_layer():
        return {
            "wqkv": w((d_model, 3 * d_model)), "bqkv": zrow(3 * d_model),
            "wo": w((d_model, d_model)), "bo": zrow(d_model),
            "norm1_g": orow(d_model), "norm1_b": zrow(d_model),
            "lin1_w": w((d_model, d_ff)), "lin1_b": zrow(d_ff),
            "lin2_w": w((d_ff, d_model)), "lin2_b": zrow(d_model),
            "norm2_g": orow(d_model), "norm2_b": zrow(d_model),
        }

    def dec_layer():
        p = enc_layer()
        p.update({
            "wq_c": w((d_model, d_model)), "bq_c": zrow(d_model),
            "wkv_c": w((d_model, 2 * d_model)), "bkv_c": zrow(2 * d_model),
            "wo_c": w((d_model, d_model)), "bo_c": zrow(d_model),
            "norm3_g": orow(d_model), "norm3_b": zrow(d_model),
        })
        return p

    return {
        "embed": w((n_vocab, d_model), scale=1.0),
        "encoder_layers": [enc_layer() for _ in range(n_layers)],
        "decoder_layers": [dec_layer() for _ in range(n_layers)],
    }


# ----------------------------------------------------------------------------
if __name__ == "__main__":
    n_vocab, d_model, n_heads, d_ff = 100, 32, 4, 64
    S, T, B = 8, 6, 2   # src seq, memory seq, batch

    params = init_params(jax.random.PRNGKey(0), n_vocab, d_model, n_heads, d_ff)

    k_in, k_tgt = jax.random.split(jax.random.PRNGKey(0))
    input_ids = jax.random.randint(k_in, (S, B), 0, n_vocab)            # token ids
    target = jax.random.normal(k_tgt, (T, B, d_model), jnp.float32)     # decoder memory

    out = transformer_forward(params, input_ids, target, n_heads)
    out = jax.block_until_ready(out)
    assert out.shape == (S, B, d_model) and out.dtype == jnp.float32
    assert bool(jnp.all(jnp.isfinite(out)))
    print("KERNEL_OK")
</pallas_src>

<mosaic_0001>
module attributes {stable_mosaic.version = 11 : i64} {
  func.func @_decoder_layer_kernel(%arg0: memref<2x8x32xf32, #tpu.memory_space<vmem>>, %arg1: memref<2x6x32xf32, #tpu.memory_space<vmem>>, %arg2: memref<32x96xf32, #tpu.memory_space<vmem>>, %arg3: memref<1x96xf32, #tpu.memory_space<vmem>>, %arg4: memref<32x32xf32, #tpu.memory_space<vmem>>, %arg5: memref<1x32xf32, #tpu.memory_space<vmem>>, %arg6: memref<1x32xf32, #tpu.memory_space<vmem>>, %arg7: memref<1x32xf32, #tpu.memory_space<vmem>>, %arg8: memref<32x32xf32, #tpu.memory_space<vmem>>, %arg9: memref<1x32xf32, #tpu.memory_space<vmem>>, %arg10: memref<32x64xf32, #tpu.memory_space<vmem>>, %arg11: memref<1x64xf32, #tpu.memory_space<vmem>>, %arg12: memref<32x32xf32, #tpu.memory_space<vmem>>, %arg13: memref<1x32xf32, #tpu.memory_space<vmem>>, %arg14: memref<1x32xf32, #tpu.memory_space<vmem>>, %arg15: memref<1x32xf32, #tpu.memory_space<vmem>>, %arg16: memref<32x64xf32, #tpu.memory_space<vmem>>, %arg17: memref<1x64xf32, #tpu.memory_space<vmem>>, %arg18: memref<64x32xf32, #tpu.memory_space<vmem>>, %arg19: memref<1x32xf32, #tpu.memory_space<vmem>>, %arg20: memref<1x32xf32, #tpu.memory_space<vmem>>, %arg21: memref<1x32xf32, #tpu.memory_space<vmem>>, %arg22: memref<2x8x32xf32, #tpu.memory_space<vmem>>) attributes {dimension_semantics = [], scalar_prefetch = 0 : i64, scratch_operands = 0 : i64, tpu.core_type = #tpu.core_type<tc>} {
    %c0 = arith.constant 0 : index
    %c0_0 = arith.constant 0 : index
    %c0_1 = arith.constant 0 : index
    %0 = vector.load %arg0[%c0, %c0_0, %c0_1] : memref<2x8x32xf32, #tpu.memory_space<vmem>>, vector<2x8x32xf32>
    %c0_2 = arith.constant 0 : index
    %c0_3 = arith.constant 0 : index
    %c0_4 = arith.constant 0 : index
    %1 = vector.load %arg1[%c0_2, %c0_3, %c0_4] : memref<2x6x32xf32, #tpu.memory_space<vmem>>, vector<2x6x32xf32>
    %2 = vector.shape_cast %0 : vector<2x8x32xf32> to vector<16x32xf32>
    %c0_5 = arith.constant 0 : index
    %c0_6 = arith.constant 0 : index
    %3 = vector.load %arg2[%c0_5, %c0_6] : memref<32x96xf32, #tpu.memory_space<vmem>>, vector<32x96xf32>
    %cst = arith.constant dense<0.000000e+00> : vector<16x96xf32>
    %4 = tpu.matmul %2, %3, %cst {dimension_numbers = #tpu.dot_dimension_numbers<[1], [0], [0], [1], [0, 0, 1, 1], [], []>} : vector<16x32xf32>, vector<32x96xf32>, vector<16x96xf32> -> vector<16x96xf32>
    %c0_7 = arith.constant 0 : index
    %c0_8 = arith.constant 0 : index
    %5 = vector.load %arg3[%c0_7, %c0_8] : memref<1x96xf32, #tpu.memory_space<vmem>>, vector<1x96xf32>
    %6 = vector.broadcast %5 : vector<1x96xf32> to vector<16x96xf32>
    %7 = arith.addf %4, %6 : vector<16x96xf32>
    %8 = vector.shape_cast %7 : vector<16x96xf32> to vector<2x8x96xf32>
    %9 = vector.extract_strided_slice %8 {offsets = [0, 0, 0], sizes = [2, 8, 32], strides = [1, 1, 1]} : vector<2x8x96xf32> to vector<2x8x32xf32>
    %10 = vector.extract_strided_slice %8 {offsets = [0, 0, 32], sizes = [2, 8, 32], strides = [1, 1, 1]} : vector<2x8x96xf32> to vector<2x8x32xf32>
    %11 = vector.extract_strided_slice %8 {offsets = [0, 0, 64], sizes = [2, 8, 32], strides = [1, 1, 1]} : vector<2x8x96xf32> to vector<2x8x32xf32>
    %12 = vector.extract_strided_slice %9 {offsets = [0, 0, 0], sizes = [2, 8, 8], strides = [1, 1, 1]} : vector<2x8x32xf32> to vector<2x8x8xf32>
    %cst_9 = arith.constant 0.353553385 : f32
    %13 = vector.broadcast %cst_9 : f32 to vector<2x8x8xf32>
    %14 = arith.mulf %12, %13 : vector<2x8x8xf32>
    %15 = vector.extract_strided_slice %10 {offsets = [0, 0, 0], sizes = [2, 8, 8], strides = [1, 1, 1]} : vector<2x8x32xf32> to vector<2x8x8xf32>
    %16 = vector.extract_strided_slice %11 {offsets = [0, 0, 0], sizes = [2, 8, 8], strides = [1, 1, 1]} : vector<2x8x32xf32> to vector<2x8x8xf32>
    "tpu.trace_start"() <{level = 10 : i32, message = "bqd,bkd->bqk"}> : () -> ()
    %cst_10 = arith.constant dense<0.000000e+00> : vector<2x8x8xf32>
    %17 = tpu.matmul %14, %15, %cst_10 {dimension_numbers = #tpu.dot_dimension_numbers<[2], [2], [1], [1], [0, 0, 0, 1, 1, 1], [0], [0]>} : vector<2x8x8xf32>, vector<2x8x8xf32>, vector<2x8x8xf32> -> vector<2x8x8xf32>
    "tpu.trace_stop"() : () -> ()
    %cst_11 = arith.constant dense<0xFF800000> : vector<2x8xf32>
    %18 = vector.multi_reduction <maximumf>, %17, %cst_11 [2] : vector<2x8x8xf32> to vector<2x8xf32>
    %19 = vector.shape_cast %18 : vector<2x8xf32> to vector<2x8x1xf32>
    %20 = vector.broadcast %19 : vector<2x8x1xf32> to vector<2x8x8xf32>
    %21 = arith.subf %17, %20 : vector<2x8x8xf32>
    %22 = math.exp %21 : vector<2x8x8xf32>
    %cst_12 = arith.constant dense<0.000000e+00> : vector<2x8xf32>
    %23 = vector.multi_reduction <add>, %22, %cst_12 [2] : vector<2x8x8xf32> to vector<2x8xf32>
    %24 = vector.shape_cast %23 : vector<2x8xf32> to vector<2x8x1xf32>
    %25 = tpu.reciprocal %24 {approx = true} : vector<2x8x1xf32> -> vector<2x8x1xf32>
    %26 = vector.broadcast %25 : vector<2x8x1xf32> to vector<2x8x8xf32>
    %27 = arith.mulf %22, %26 : vector<2x8x8xf32>
    "tpu.trace_start"() <{level = 10 : i32, message = "bqk,bkd->bqd"}> : () -> ()
    %cst_13 = arith.constant dense<0.000000e+00> : vector<2x8x8xf32>
    %28 = tpu.matmul %27, %16, %cst_13 {dimension_numbers = #tpu.dot_dimension_numbers<[2], [1], [1], [2], [0, 0, 0, 1, 1, 2], [0], [0]>} : vector<2x8x8xf32>, vector<2x8x8xf32>, vector<2x8x8xf32> -> vector<2x8x8xf32>
    "tpu.trace_stop"() : () -> ()
    %29 = vector.extract_strided_slice %9 {offsets = [0, 0, 8], sizes = [2, 8, 8], strides = [1, 1, 1]} : vector<2x8x32xf32> to vector<2x8x8xf32>
    %cst_14 = arith.constant 0.353553385 : f32
    %30 = vector.broadcast %cst_14 : f32 to vector<2x8x8xf32>
    %31 = arith.mulf %29, %30 : vector<2x8x8xf32>
    %32 = vector.extract_strided_slice %10 {offsets = [0, 0, 8], sizes = [2, 8, 8], strides = [1, 1, 1]} : vector<2x8x32xf32> to vector<2x8x8xf32>
    %33 = vector.extract_strided_slice %11 {offsets = [0, 0, 8], sizes = [2, 8, 8], strides = [1, 1, 1]} : vector<2x8x32xf32> to vector<2x8x8xf32>
    "tpu.trace_start"() <{level = 10 : i32, message = "bqd,bkd->bqk"}> : () -> ()
    %cst_15 = arith.constant dense<0.000000e+00> : vector<2x8x8xf32>
    %34 = tpu.matmul %31, %32, %cst_15 {dimension_numbers = #tpu.dot_dimension_numbers<[2], [2], [1], [1], [0, 0, 0, 1, 1, 1], [0], [0]>} : vector<2x8x8xf32>, vector<2x8x8xf32>, vector<2x8x8xf32> -> vector<2x8x8xf32>
    "tpu.trace_stop"() : () -> ()
    %cst_16 = arith.constant dense<0xFF800000> : vector<2x8xf32>
    %35 = vector.multi_reduction <maximumf>, %34, %cst_16 [2] : vector<2x8x8xf32> to vector<2x8xf32>
    %36 = vector.shape_cast %35 : vector<2x8xf32> to vector<2x8x1xf32>
    %37 = vector.broadcast %36 : vector<2x8x1xf32> to vector<2x8x8xf32>
    %38 = arith.subf %34, %37 : vector<2x8x8xf32>
    %39 = math.exp %38 : vector<2x8x8xf32>
    %cst_17 = arith.constant dense<0.000000e+00> : vector<2x8xf32>
    %40 = vector.multi_reduction <add>, %39, %cst_17 [2] : vector<2x8x8xf32> to vector<2x8xf32>
    %41 = vector.shape_cast %40 : vector<2x8xf32> to vector<2x8x1xf32>
    %42 = tpu.reciprocal %41 {approx = true} : vector<2x8x1xf32> -> vector<2x8x1xf32>
    %43 = vector.broadcast %42 : vector<2x8x1xf32> to vector<2x8x8xf32>
    %44 = arith.mulf %39, %43 : vector<2x8x8xf32>
    "tpu.trace_start"() <{level = 10 : i32, message = "bqk,bkd->bqd"}> : () -> ()
    %cst_18 = arith.constant dense<0.000000e+00> : vector<2x8x8xf32>
    %45 = tpu.matmul %44, %33, %cst_18 {dimension_numbers = #tpu.dot_dimension_numbers<[2], [1], [1], [2], [0, 0, 0, 1, 1, 2], [0], [0]>} : vector<2x8x8xf32>, vector<2x8x8xf32>, vector<2x8x8xf32> -> vector<2x8x8xf32>
    "tpu.trace_stop"() : () -> ()
    %46 = vector.extract_strided_slice %9 {offsets = [0, 0, 16], sizes = [2, 8, 8], strides = [1, 1, 1]} : vector<2x8x32xf32> to vector<2x8x8xf32>
    %cst_19 = arith.constant 0.353553385 : f32
    %47 = vector.broadcast %cst_19 : f32 to vector<2x8x8xf32>
    %48 = arith.mulf %46, %47 : vector<2x8x8xf32>
    %49 = vector.extract_strided_slice %10 {offsets = [0, 0, 16], sizes = [2, 8, 8], strides = [1, 1, 1]} : vector<2x8x32xf32> to vector<2x8x8xf32>
    %50 = vector.extract_strided_slice %11 {offsets = [0, 0, 16], sizes = [2, 8, 8], strides = [1, 1, 1]} : vector<2x8x32xf32> to vector<2x8x8xf32>
    "tpu.trace_start"() <{level = 10 : i32, message = "bqd,bkd->bqk"}> : () -> ()
    %cst_20 = arith.constant dense<0.000000e+00> : vector<2x8x8xf32>
    %51 = tpu.matmul %48, %49, %cst_20 {dimension_numbers = #tpu.dot_dimension_numbers<[2], [2], [1], [1], [0, 0, 0, 1, 1, 1], [0], [0]>} : vector<2x8x8xf32>, vector<2x8x8xf32>, vector<2x8x8xf32> -> vector<2x8x8xf32>
    "tpu.trace_stop"() : () -> ()
    %cst_21 = arith.constant dense<0xFF800000> : vector<2x8xf32>
    %52 = vector.multi_reduction <maximumf>, %51, %cst_21 [2] : vector<2x8x8xf32> to vector<2x8xf32>
    %53 = vector.shape_cast %52 : vector<2x8xf32> to vector<2x8x1xf32>
    %54 = vector.broadcast %53 : vector<2x8x1xf32> to vector<2x8x8xf32>
    %55 = arith.subf %51, %54 : vector<2x8x8xf32>
    %56 = math.exp %55 : vector<2x8x8xf32>
    %cst_22 = arith.constant dense<0.000000e+00> : vector<2x8xf32>
    %57 = vector.multi_reduction <add>, %56, %cst_22 [2] : vector<2x8x8xf32> to vector<2x8xf32>
    %58 = vector.shape_cast %57 : vector<2x8xf32> to vector<2x8x1xf32>
    %59 = tpu.reciprocal %58 {approx = true} : vector<2x8x1xf32> -> vector<2x8x1xf32>
    %60 = vector.broadcast %59 : vector<2x8x1xf32> to vector<2x8x8xf32>
    %61 = arith.mulf %56, %60 : vector<2x8x8xf32>
    "tpu.trace_start"() <{level = 10 : i32, message = "bqk,bkd->bqd"}> : () -> ()
    %cst_23 = arith.constant dense<0.000000e+00> : vector<2x8x8xf32>
    %62 = tpu.matmul %61, %50, %cst_23 {dimension_numbers = #tpu.dot_dimension_numbers<[2], [1], [1], [2], [0, 0, 0, 1, 1, 2], [0], [0]>} : vector<2x8x8xf32>, vector<2x8x8xf32>, vector<2x8x8xf32> -> vector<2x8x8xf32>
    "tpu.trace_stop"() : () -> ()
    %63 = vector.extract_strided_slice %9 {offsets = [0, 0, 24], sizes = [2, 8, 8], strides = [1, 1, 1]} : vector<2x8x32xf32> to vector<2x8x8xf32>
    %cst_24 = arith.constant 0.353553385 : f32
    %64 = vector.broadcast %cst_24 : f32 to vector<2x8x8xf32>
    %65 = arith.mulf %63, %64 : vector<2x8x8xf32>
    %66 = vector.extract_strided_slice %10 {offsets = [0, 0, 24], sizes = [2, 8, 8], strides = [1, 1, 1]} : vector<2x8x32xf32> to vector<2x8x8xf32>
    %67 = vector.extract_strided_slice %11 {offsets = [0, 0, 24], sizes = [2, 8, 8], strides = [1, 1, 1]} : vector<2x8x32xf32> to vector<2x8x8xf32>
    "tpu.trace_start"() <{level = 10 : i32, message = "bqd,bkd->bqk"}> : () -> ()
    %cst_25 = arith.constant dense<0.000000e+00> : vector<2x8x8xf32>
    %68 = tpu.matmul %65, %66, %cst_25 {dimension_numbers = #tpu.dot_dimension_numbers<[2], [2], [1], [1], [0, 0, 0, 1, 1, 1], [0], [0]>} : vector<2x8x8xf32>, vector<2x8x8xf32>, vector<2x8x8xf32> -> vector<2x8x8xf32>
    "tpu.trace_stop"() : () -> ()
    %cst_26 = arith.constant dense<0xFF800000> : vector<2x8xf32>
    %69 = vector.multi_reduction <maximumf>, %68, %cst_26 [2] : vector<2x8x8xf32> to vector<2x8xf32>
    %70 = vector.shape_cast %69 : vector<2x8xf32> to vector<2x8x1xf32>
    %71 = vector.broadcast %70 : vector<2x8x1xf32> to vector<2x8x8xf32>
    %72 = arith.subf %68, %71 : vector<2x8x8xf32>
    %73 = math.exp %72 : vector<2x8x8xf32>
    %cst_27 = arith.constant dense<0.000000e+00> : vector<2x8xf32>
    %74 = vector.multi_reduction <add>, %73, %cst_27 [2] : vector<2x8x8xf32> to vector<2x8xf32>
    %75 = vector.shape_cast %74 : vector<2x8xf32> to vector<2x8x1xf32>
    %76 = tpu.reciprocal %75 {approx = true} : vector<2x8x1xf32> -> vector<2x8x1xf32>
    %77 = vector.broadcast %76 : vector<2x8x1xf32> to vector<2x8x8xf32>
    %78 = arith.mulf %73, %77 : vector<2x8x8xf32>
    "tpu.trace_start"() <{level = 10 : i32, message = "bqk,bkd->bqd"}> : () -> ()
    %cst_28 = arith.constant dense<0.000000e+00> : vector<2x8x8xf32>
    %79 = tpu.matmul %78, %67, %cst_28 {dimension_numbers = #tpu.dot_dimension_numbers<[2], [1], [1], [2], [0, 0, 0, 1, 1, 2], [0], [0]>} : vector<2x8x8xf32>, vector<2x8x8xf32>, vector<2x8x8xf32> -> vector<2x8x8xf32>
    "tpu.trace_stop"() : () -> ()
    %80 = tpu.concatenate %28, %45, %62, %79 in 2 : vector<2x8x8xf32>, vector<2x8x8xf32>, vector<2x8x8xf32>, vector<2x8x8xf32> -> vector<2x8x32xf32>
    %81 = vector.shape_cast %80 : vector<2x8x32xf32> to vector<16x32xf32>
    %c0_29 = arith.constant 0 : index
    %c0_30 = arith.constant 0 : index
    %82 = vector.load %arg4[%c0_29, %c0_30] : memref<32x32xf32, #tpu.memory_space<vmem>>, vector<32x32xf32>
    %cst_31 = arith.constant dense<0.000000e+00> : vector<16x32xf32>
    %83 = tpu.matmul %81, %82, %cst_31 {dimension_numbers = #tpu.dot_dimension_numbers<[1], [0], [0], [1], [0, 0, 1, 1], [], []>} : vector<16x32xf32>, vector<32x32xf32>, vector<16x32xf32> -> vector<16x32xf32>
    %c0_32 = arith.constant 0 : index
    %c0_33 = arith.constant 0 : index
    %84 = vector.load %arg5[%c0_32, %c0_33] : memref<1x32xf32, #tpu.memory_space<vmem>>, vector<1x32xf32>
    %85 = vector.broadcast %84 : vector<1x32xf32> to vector<16x32xf32>
    %86 = arith.addf %83, %85 : vector<16x32xf32>
    %87 = arith.addf %2, %86 : vector<16x32xf32>
    %c0_34 = arith.constant 0 : index
    %c0_35 = arith.constant 0 : index
    %88 = vector.load %arg6[%c0_34, %c0_35] : memref<1x32xf32, #tpu.memory_space<vmem>>, vector<1x32xf32>
    %c0_36 = arith.constant 0 : index
    %c0_37 = arith.constant 0 : index
    %89 = vector.load %arg7[%c0_36, %c0_37] : memref<1x32xf32, #tpu.memory_space<vmem>>, vector<1x32xf32>
    %cst_38 = arith.constant dense<0.000000e+00> : vector<16xf32>
    %90 = vector.multi_reduction <add>, %87, %cst_38 [1] : vector<16x32xf32> to vector<16xf32>
    %91 = vector.shape_cast %90 : vector<16xf32> to vector<16x1xf32>
    %cst_39 = arith.constant 3.200000e+01 : f32
    %92 = vector.broadcast %cst_39 : f32 to vector<16x1xf32>
    %93 = arith.divf %91, %92 : vector<16x1xf32>
    %94 = vector.broadcast %93 : vector<16x1xf32> to vector<16x32xf32>
    %95 = arith.subf %87, %94 : vector<16x32xf32>
    %96 = arith.mulf %95, %95 : vector<16x32xf32>
    %cst_40 = arith.constant dense<0.000000e+00> : vector<16xf32>
    %97 = vector.multi_reduction <add>, %96, %cst_40 [1] : vector<16x32xf32> to vector<16xf32>
    %98 = vector.shape_cast %97 : vector<16xf32> to vector<16x1xf32>
    %cst_41 = arith.constant 3.200000e+01 : f32
    %99 = vector.broadcast %cst_41 : f32 to vector<16x1xf32>
    %100 = arith.divf %98, %99 : vector<16x1xf32>
    %cst_42 = arith.constant 9.99999974E-6 : f32
    %101 = vector.broadcast %cst_42 : f32 to vector<16x1xf32>
    %102 = arith.addf %100, %101 : vector<16x1xf32>
    %103 = math.rsqrt %102 : vector<16x1xf32>
    %104 = vector.broadcast %103 : vector<16x1xf32> to vector<16x32xf32>
    %105 = arith.mulf %95, %104 : vector<16x32xf32>
    %106 = vector.broadcast %88 : vector<1x32xf32> to vector<16x32xf32>
    %107 = arith.mulf %105, %106 : vector<16x32xf32>
    %108 = vector.broadcast %89 : vector<1x32xf32> to vector<16x32xf32>
    %109 = arith.addf %107, %108 : vector<16x32xf32>
    %c0_43 = arith.constant 0 : index
    %c0_44 = arith.constant 0 : index
    %110 = vector.load %arg8[%c0_43, %c0_44] : memref<32x32xf32, #tpu.memory_space<vmem>>, vector<32x32xf32>
    %cst_45 = arith.constant dense<0.000000e+00> : vector<16x32xf32>
    %111 = tpu.matmul %109, %110, %cst_45 {dimension_numbers = #tpu.dot_dimension_numbers<[1], [0], [0], [1], [0, 0, 1, 1], [], []>} : vector<16x32xf32>, vector<32x32xf32>, vector<16x32xf32> -> vector<16x32xf32>
    %c0_46 = arith.constant 0 : index
    %c0_47 = arith.constant 0 : index
    %112 = vector.load %arg9[%c0_46, %c0_47] : memref<1x32xf32, #tpu.memory_space<vmem>>, vector<1x32xf32>
    %113 = vector.broadcast %112 : vector<1x32xf32> to vector<16x32xf32>
    %114 = arith.addf %111, %113 : vector<16x32xf32>
    %115 = vector.shape_cast %1 : vector<2x6x32xf32> to vector<12x32xf32>
    %c0_48 = arith.constant 0 : index
    %c0_49 = arith.constant 0 : index
    %116 = vector.load %arg10[%c0_48, %c0_49] : memref<32x64xf32, #tpu.memory_space<vmem>>, vector<32x64xf32>
    %cst_50 = arith.constant dense<0.000000e+00> : vector<12x64xf32>
    %117 = tpu.matmul %115, %116, %cst_50 {dimension_numbers = #tpu.dot_dimension_numbers<[1], [0], [0], [1], [0, 0, 1, 1], [], []>} : vector<12x32xf32>, vector<32x64xf32>, vector<12x64xf32> -> vector<12x64xf32>
    %c0_51 = arith.constant 0 : index
    %c0_52 = arith.constant 0 : index
    %118 = vector.load %arg11[%c0_51, %c0_52] : memref<1x64xf32, #tpu.memory_space<vmem>>, vector<1x64xf32>
    %119 = vector.broadcast %118 : vector<1x64xf32> to vector<12x64xf32>
    %120 = arith.addf %117, %119 : vector<12x64xf32>
    %121 = vector.shape_cast %120 : vector<12x64xf32> to vector<2x6x64xf32>
    %122 = vector.shape_cast %114 : vector<16x32xf32> to vector<2x8x32xf32>
    %123 = vector.extract_strided_slice %121 {offsets = [0, 0, 0], sizes = [2, 6, 32], strides = [1, 1, 1]} : vector<2x6x64xf32> to vector<2x6x32xf32>
    %124 = vector.extract_strided_slice %121 {offsets = [0, 0, 32], sizes = [2, 6, 32], strides = [1, 1, 1]} : vector<2x6x64xf32> to vector<2x6x32xf32>
    %125 = vector.extract_strided_slice %122 {offsets = [0, 0, 0], sizes = [2, 8, 8], strides = [1, 1, 1]} : vector<2x8x32xf32> to vector<2x8x8xf32>
    %cst_53 = arith.constant 0.353553385 : f32
    %126 = vector.broadcast %cst_53 : f32 to vector<2x8x8xf32>
    %127 = arith.mulf %125, %126 : vector<2x8x8xf32>
    %128 = vector.extract_strided_slice %123 {offsets = [0, 0, 0], sizes = [2, 6, 8], strides = [1, 1, 1]} : vector<2x6x32xf32> to vector<2x6x8xf32>
    %129 = vector.extract_strided_slice %124 {offsets = [0, 0, 0], sizes = [2, 6, 8], strides = [1, 1, 1]} : vector<2x6x32xf32> to vector<2x6x8xf32>
    "tpu.trace_start"() <{level = 10 : i32, message = "bqd,bkd->bqk"}> : () -> ()
    %cst_54 = arith.constant dense<0.000000e+00> : vector<2x8x6xf32>
    %130 = tpu.matmul %127, %128, %cst_54 {dimension_numbers = #tpu.dot_dimension_numbers<[2], [2], [1], [1], [0, 0, 0, 1, 1, 1], [0], [0]>} : vector<2x8x8xf32>, vector<2x6x8xf32>, vector<2x8x6xf32> -> vector<2x8x6xf32>
    "tpu.trace_stop"() : () -> ()
    %cst_55 = arith.constant dense<0xFF800000> : vector<2x8xf32>
    %131 = vector.multi_reduction <maximumf>, %130, %cst_55 [2] : vector<2x8x6xf32> to vector<2x8xf32>
    %132 = vector.shape_cast %131 : vector<2x8xf32> to vector<2x8x1xf32>
    %133 = vector.broadcast %132 : vector<2x8x1xf32> to vector<2x8x6xf32>
    %134 = arith.subf %130, %133 : vector<2x8x6xf32>
    %135 = math.exp %134 : vector<2x8x6xf32>
    %cst_56 = arith.constant dense<0.000000e+00> : vector<2x8xf32>
    %136 = vector.multi_reduction <add>, %135, %cst_56 [2] : vector<2x8x6xf32> to vector<2x8xf32>
    %137 = vector.shape_cast %136 : vector<2x8xf32> to vector<2x8x1xf32>
    %138 = tpu.reciprocal %137 {approx = true} : vector<2x8x1xf32> -> vector<2x8x1xf32>
    %139 = vector.broadcast %138 : vector<2x8x1xf32> to vector<2x8x6xf32>
    %140 = arith.mulf %135, %139 : vector<2x8x6xf32>
    "tpu.trace_start"() <{level = 10 : i32, message = "bqk,bkd->bqd"}> : () -> ()
    %cst_57 = arith.constant dense<0.000000e+00> : vector<2x8x8xf32>
    %141 = tpu.matmul %140, %129, %cst_57 {dimension_numbers = #tpu.dot_dimension_numbers<[2], [1], [1], [2], [0, 0, 0, 1, 1, 2], [0], [0]>} : vector<2x8x6xf32>, vector<2x6x8xf32>, vector<2x8x8xf32> -> vector<2x8x8xf32>
    "tpu.trace_stop"() : () -> ()
    %142 = vector.extract_strided_slice %122 {offsets = [0, 0, 8], sizes = [2, 8, 8], strides = [1, 1, 1]} : vector<2x8x32xf32> to vector<2x8x8xf32>
    %cst_58 = arith.constant 0.353553385 : f32
    %143 = vector.broadcast %cst_58 : f32 to vector<2x8x8xf32>
    %144 = arith.mulf %142, %143 : vector<2x8x8xf32>
    %145 = vector.extract_strided_slice %123 {offsets = [0, 0, 8], sizes = [2, 6, 8], strides = [1, 1, 1]} : vector<2x6x32xf32> to vector<2x6x8xf32>
    %146 = vector.extract_strided_slice %124 {offsets = [0, 0, 8], sizes = [2, 6, 8], strides = [1, 1, 1]} : vector<2x6x32xf32> to vector<2x6x8xf32>
    "tpu.trace_start"() <{level = 10 : i32, message = "bqd,bkd->bqk"}> : () -> ()
    %cst_59 = arith.constant dense<0.000000e+00> : vector<2x8x6xf32>
    %147 = tpu.matmul %144, %145, %cst_59 {dimension_numbers = #tpu.dot_dimension_numbers<[2], [2], [1], [1], [0, 0, 0, 1, 1, 1], [0], [0]>} : vector<2x8x8xf32>, vector<2x6x8xf32>, vector<2x8x6xf32> -> vector<2x8x6xf32>
    "tpu.trace_stop"() : () -> ()
    %cst_60 = arith.constant dense<0xFF800000> : vector<2x8xf32>
    %148 = vector.multi_reduction <maximumf>, %147, %cst_60 [2] : vector<2x8x6xf32> to vector<2x8xf32>
    %149 = vector.shape_cast %148 : vector<2x8xf32> to vector<2x8x1xf32>
    %150 = vector.broadcast %149 : vector<2x8x1xf32> to vector<2x8x6xf32>
    %151 = arith.subf %147, %150 : vector<2x8x6xf32>
    %152 = math.exp %151 : vector<2x8x6xf32>
    %cst_61 = arith.constant dense<0.000000e+00> : vector<2x8xf32>
    %153 = vector.multi_reduction <add>, %152, %cst_61 [2] : vector<2x8x6xf32> to vector<2x8xf32>
    %154 = vector.shape_cast %153 : vector<2x8xf32> to vector<2x8x1xf32>
    %155 = tpu.reciprocal %154 {approx = true} : vector<2x8x1xf32> -> vector<2x8x1xf32>
    %156 = vector.broadcast %155 : vector<2x8x1xf32> to vector<2x8x6xf32>
    %157 = arith.mulf %152, %156 : vector<2x8x6xf32>
    "tpu.trace_start"() <{level = 10 : i32, message = "bqk,bkd->bqd"}> : () -> ()
    %cst_62 = arith.constant dense<0.000000e+00> : vector<2x8x8xf32>
    %158 = tpu.matmul %157, %146, %cst_62 {dimension_numbers = #tpu.dot_dimension_numbers<[2], [1], [1], [2], [0, 0, 0, 1, 1, 2], [0], [0]>} : vector<2x8x6xf32>, vector<2x6x8xf32>, vector<2x8x8xf32> -> vector<2x8x8xf32>
    "tpu.trace_stop"() : () -> ()
    %159 = vector.extract_strided_slice %122 {offsets = [0, 0, 16], sizes = [2, 8, 8], strides = [1, 1, 1]} : vector<2x8x32xf32> to vector<2x8x8xf32>
    %cst_63 = arith.constant 0.353553385 : f32
    %160 = vector.broadcast %cst_63 : f32 to vector<2x8x8xf32>
    %161 = arith.mulf %159, %160 : vector<2x8x8xf32>
    %162 = vector.extract_strided_slice %123 {offsets = [0, 0, 16], sizes = [2, 6, 8], strides = [1, 1, 1]} : vector<2x6x32xf32> to vector<2x6x8xf32>
    %163 = vector.extract_strided_slice %124 {offsets = [0, 0, 16], sizes = [2, 6, 8], strides = [1, 1, 1]} : vector<2x6x32xf32> to vector<2x6x8xf32>
    "tpu.trace_start"() <{level = 10 : i32, message = "bqd,bkd->bqk"}> : () -> ()
    %cst_64 = arith.constant dense<0.000000e+00> : vector<2x8x6xf32>
    %164 = tpu.matmul %161, %162, %cst_64 {dimension_numbers = #tpu.dot_dimension_numbers<[2], [2], [1], [1], [0, 0, 0, 1, 1, 1], [0], [0]>} : vector<2x8x8xf32>, vector<2x6x8xf32>, vector<2x8x6xf32> -> vector<2x8x6xf32>
    "tpu.trace_stop"() : () -> ()
    %cst_65 = arith.constant dense<0xFF800000> : vector<2x8xf32>
    %165 = vector.multi_reduction <maximumf>, %164, %cst_65 [2] : vector<2x8x6xf32> to vector<2x8xf32>
    %166 = vector.shape_cast %165 : vector<2x8xf32> to vector<2x8x1xf32>
    %167 = vector.broadcast %166 : vector<2x8x1xf32> to vector<2x8x6xf32>
    %168 = arith.subf %164, %167 : vector<2x8x6xf32>
    %169 = math.exp %168 : vector<2x8x6xf32>
    %cst_66 = arith.constant dense<0.000000e+00> : vector<2x8xf32>
    %170 = vector.multi_reduction <add>, %169, %cst_66 [2] : vector<2x8x6xf32> to vector<2x8xf32>
    %171 = vector.shape_cast %170 : vector<2x8xf32> to vector<2x8x1xf32>
    %172 = tpu.reciprocal %171 {approx = true} : vector<2x8x1xf32> -> vector<2x8x1xf32>
    %173 = vector.broadcast %172 : vector<2x8x1xf32> to vector<2x8x6xf32>
    %174 = arith.mulf %169, %173 : vector<2x8x6xf32>
    "tpu.trace_start"() <{level = 10 : i32, message = "bqk,bkd->bqd"}> : () -> ()
    %cst_67 = arith.constant dense<0.000000e+00> : vector<2x8x8xf32>
    %175 = tpu.matmul %174, %163, %cst_67 {dimension_numbers = #tpu.dot_dimension_numbers<[2], [1], [1], [2], [0, 0, 0, 1, 1, 2], [0], [0]>} : vector<2x8x6xf32>, vector<2x6x8xf32>, vector<2x8x8xf32> -> vector<2x8x8xf32>
    "tpu.trace_stop"() : () -> ()
    %176 = vector.extract_strided_slice %122 {offsets = [0, 0, 24], sizes = [2, 8, 8], strides = [1, 1, 1]} : vector<2x8x32xf32> to vector<2x8x8xf32>
    %cst_68 = arith.constant 0.353553385 : f32
    %177 = vector.broadcast %cst_68 : f32 to vector<2x8x8xf32>
    %178 = arith.mulf %176, %177 : vector<2x8x8xf32>
    %179 = vector.extract_strided_slice %123 {offsets = [0, 0, 24], sizes = [2, 6, 8], strides = [1, 1, 1]} : vector<2x6x32xf32> to vector<2x6x8xf32>
    %180 = vector.extract_strided_slice %124 {offsets = [0, 0, 24], sizes = [2, 6, 8], strides = [1, 1, 1]} : vector<2x6x32xf32> to vector<2x6x8xf32>
    "tpu.trace_start"() <{level = 10 : i32, message = "bqd,bkd->bqk"}> : () -> ()
    %cst_69 = arith.constant dense<0.000000e+00> : vector<2x8x6xf32>
    %181 = tpu.matmul %178, %179, %cst_69 {dimension_numbers = #tpu.dot_dimension_numbers<[2], [2], [1], [1], [0, 0, 0, 1, 1, 1], [0], [0]>} : vector<2x8x8xf32>, vector<2x6x8xf32>, vector<2x8x6xf32> -> vector<2x8x6xf32>
    "tpu.trace_stop"() : () -> ()
    %cst_70 = arith.constant dense<0xFF800000> : vector<2x8xf32>
    %182 = vector.multi_reduction <maximumf>, %181, %cst_70 [2] : vector<2x8x6xf32> to vector<2x8xf32>
    %183 = vector.shape_cast %182 : vector<2x8xf32> to vector<2x8x1xf32>
    %184 = vector.broadcast %183 : vector<2x8x1xf32> to vector<2x8x6xf32>
    %185 = arith.subf %181, %184 : vector<2x8x6xf32>
    %186 = math.exp %185 : vector<2x8x6xf32>
    %cst_71 = arith.constant dense<0.000000e+00> : vector<2x8xf32>
    %187 = vector.multi_reduction <add>, %186, %cst_71 [2] : vector<2x8x6xf32> to vector<2x8xf32>
    %188 = vector.shape_cast %187 : vector<2x8xf32> to vector<2x8x1xf32>
    %189 = tpu.reciprocal %188 {approx = true} : vector<2x8x1xf32> -> vector<2x8x1xf32>
    %190 = vector.broadcast %189 : vector<2x8x1xf32> to vector<2x8x6xf32>
    %191 = arith.mulf %186, %190 : vector<2x8x6xf32>
    "tpu.trace_start"() <{level = 10 : i32, message = "bqk,bkd->bqd"}> : () -> ()
    %cst_72 = arith.constant dense<0.000000e+00> : vector<2x8x8xf32>
    %192 = tpu.matmul %191, %180, %cst_72 {dimension_numbers = #tpu.dot_dimension_numbers<[2], [1], [1], [2], [0, 0, 0, 1, 1, 2], [0], [0]>} : vector<2x8x6xf32>, vector<2x6x8xf32>, vector<2x8x8xf32> -> vector<2x8x8xf32>
    "tpu.trace_stop"() : () -> ()
    %193 = tpu.concatenate %141, %158, %175, %192 in 2 : vector<2x8x8xf32>, vector<2x8x8xf32>, vector<2x8x8xf32>, vector<2x8x8xf32> -> vector<2x8x32xf32>
    %194 = vector.shape_cast %193 : vector<2x8x32xf32> to vector<16x32xf32>
    %c0_73 = arith.constant 0 : index
    %c0_74 = arith.constant 0 : index
    %195 = vector.load %arg12[%c0_73, %c0_74] : memref<32x32xf32, #tpu.memory_space<vmem>>, vector<32x32xf32>
    %cst_75 = arith.constant dense<0.000000e+00> : vector<16x32xf32>
    %196 = tpu.matmul %194, %195, %cst_75 {dimension_numbers = #tpu.dot_dimension_numbers<[1], [0], [0], [1], [0, 0, 1, 1], [], []>} : vector<16x32xf32>, vector<32x32xf32>, vector<16x32xf32> -> vector<16x32xf32>
    %c0_76 = arith.constant 0 : index
    %c0_77 = arith.constant 0 : index
    %197 = vector.load %arg13[%c0_76, %c0_77] : memref<1x32xf32, #tpu.memory_space<vmem>>, vector<1x32xf32>
    %198 = vector.broadcast %197 : vector<1x32xf32> to vector<16x32xf32>
    %199 = arith.addf %196, %198 : vector<16x32xf32>
    %200 = arith.addf %109, %199 : vector<16x32xf32>
    %c0_78 = arith.constant 0 : index
    %c0_79 = arith.constant 0 : index
    %201 = vector.load %arg14[%c0_78, %c0_79] : memref<1x32xf32, #tpu.memory_space<vmem>>, vector<1x32xf32>
    %c0_80 = arith.constant 0 : index
    %c0_81 = arith.constant 0 : index
    %202 = vector.load %arg15[%c0_80, %c0_81] : memref<1x32xf32, #tpu.memory_space<vmem>>, vector<1x32xf32>
    %cst_82 = arith.constant dense<0.000000e+00> : vector<16xf32>
    %203 = vector.multi_reduction <add>, %200, %cst_82 [1] : vector<16x32xf32> to vector<16xf32>
    %204 = vector.shape_cast %203 : vector<16xf32> to vector<16x1xf32>
    %cst_83 = arith.constant 3.200000e+01 : f32
    %205 = vector.broadcast %cst_83 : f32 to vector<16x1xf32>
    %206 = arith.divf %204, %205 : vector<16x1xf32>
    %207 = vector.broadcast %206 : vector<16x1xf32> to vector<16x32xf32>
    %208 = arith.subf %200, %207 : vector<16x32xf32>
    %209 = arith.mulf %208, %208 : vector<16x32xf32>
    %cst_84 = arith.constant dense<0.000000e+00> : vector<16xf32>
    %210 = vector.multi_reduction <add>, %209, %cst_84 [1] : vector<16x32xf32> to vector<16xf32>
    %211 = vector.shape_cast %210 : vector<16xf32> to vector<16x1xf32>
    %cst_85 = arith.constant 3.200000e+01 : f32
    %212 = vector.broadcast %cst_85 : f32 to vector<16x1xf32>
    %213 = arith.divf %211, %212 : vector<16x1xf32>
    %cst_86 = arith.constant 9.99999974E-6 : f32
    %214 = vector.broadcast %cst_86 : f32 to vector<16x1xf32>
    %215 = arith.addf %213, %214 : vector<16x1xf32>
    %216 = math.rsqrt %215 : vector<16x1xf32>
    %217 = vector.broadcast %216 : vector<16x1xf32> to vector<16x32xf32>
    %218 = arith.mulf %208, %217 : vector<16x32xf32>
    %219 = vector.broadcast %201 : vector<1x32xf32> to vector<16x32xf32>
    %220 = arith.mulf %218, %219 : vector<16x32xf32>
    %221 = vector.broadcast %202 : vector<1x32xf32> to vector<16x32xf32>
    %222 = arith.addf %220, %221 : vector<16x32xf32>
    %c0_87 = arith.constant 0 : index
    %c0_88 = arith.constant 0 : index
    %223 = vector.load %arg16[%c0_87, %c0_88] : memref<32x64xf32, #tpu.memory_space<vmem>>, vector<32x64xf32>
    %cst_89 = arith.constant dense<0.000000e+00> : vector<16x64xf32>
    %224 = tpu.matmul %222, %223, %cst_89 {dimension_numbers = #tpu.dot_dimension_numbers<[1], [0], [0], [1], [0, 0, 1, 1], [], []>} : vector<16x32xf32>, vector<32x64xf32>, vector<16x64xf32> -> vector<16x64xf32>
    %c0_90 = arith.constant 0 : index
    %c0_91 = arith.constant 0 : index
    %225 = vector.load %arg17[%c0_90, %c0_91] : memref<1x64xf32, #tpu.memory_space<vmem>>, vector<1x64xf32>
    %226 = vector.broadcast %225 : vector<1x64xf32> to vector<16x64xf32>
    %227 = arith.addf %224, %226 : vector<16x64xf32>
    %cst_92 = arith.constant 0.000000e+00 : f32
    %228 = vector.broadcast %cst_92 : f32 to vector<16x64xf32>
    %229 = arith.maximumf %227, %228 : vector<16x64xf32>
    %c0_93 = arith.constant 0 : index
    %c0_94 = arith.constant 0 : index
    %230 = vector.load %arg18[%c0_93, %c0_94] : memref<64x32xf32, #tpu.memory_space<vmem>>, vector<64x32xf32>
    %cst_95 = arith.constant dense<0.000000e+00> : vector<16x32xf32>
    %231 = tpu.matmul %229, %230, %cst_95 {dimension_numbers = #tpu.dot_dimension_numbers<[1], [0], [0], [1], [0, 0, 1, 1], [], []>} : vector<16x64xf32>, vector<64x32xf32>, vector<16x32xf32> -> vector<16x32xf32>
    %c0_96 = arith.constant 0 : index
    %c0_97 = arith.constant 0 : index
    %232 = vector.load %arg19[%c0_96, %c0_97] : memref<1x32xf32, #tpu.memory_space<vmem>>, vector<1x32xf32>
    %233 = vector.broadcast %232 : vector<1x32xf32> to vector<16x32xf32>
    %234 = arith.addf %231, %233 : vector<16x32xf32>
    %235 = arith.addf %222, %234 : vector<16x32xf32>
    %c0_98 = arith.constant 0 : index
    %c0_99 = arith.constant 0 : index
    %236 = vector.load %arg20[%c0_98, %c0_99] : memref<1x32xf32, #tpu.memory_space<vmem>>, vector<1x32xf32>
    %c0_100 = arith.constant 0 : index
    %c0_101 = arith.constant 0 : index
    %237 = vector.load %arg21[%c0_100, %c0_101] : memref<1x32xf32, #tpu.memory_space<vmem>>, vector<1x32xf32>
    %cst_102 = arith.constant dense<0.000000e+00> : vector<16xf32>
    %238 = vector.multi_reduction <add>, %235, %cst_102 [1] : vector<16x32xf32> to vector<16xf32>
    %239 = vector.shape_cast %238 : vector<16xf32> to vector<16x1xf32>
    %cst_103 = arith.constant 3.200000e+01 : f32
    %240 = vector.broadcast %cst_103 : f32 to vector<16x1xf32>
    %241 = arith.divf %239, %240 : vector<16x1xf32>
    %242 = vector.broadcast %241 : vector<16x1xf32> to vector<16x32xf32>
    %243 = arith.subf %235, %242 : vector<16x32xf32>
    %244 = arith.mulf %243, %243 : vector<16x32xf32>
    %cst_104 = arith.constant dense<0.000000e+00> : vector<16xf32>
    %245 = vector.multi_reduction <add>, %244, %cst_104 [1] : vector<16x32xf32> to vector<16xf32>
    %246 = vector.shape_cast %245 : vector<16xf32> to vector<16x1xf32>
    %cst_105 = arith.constant 3.200000e+01 : f32
    %247 = vector.broadcast %cst_105 : f32 to vector<16x1xf32>
    %248 = arith.divf %246, %247 : vector<16x1xf32>
    %cst_106 = arith.constant 9.99999974E-6 : f32
    %249 = vector.broadcast %cst_106 : f32 to vector<16x1xf32>
    %250 = arith.addf %248, %249 : vector<16x1xf32>
    %251 = math.rsqrt %250 : vector<16x1xf32>
    %252 = vector.broadcast %251 : vector<16x1xf32> to vector<16x32xf32>
    %253 = arith.mulf %243, %252 : vector<16x32xf32>
    %254 = vector.broadcast %236 : vector<1x32xf32> to vector<16x32xf32>
    %255 = arith.mulf %253, %254 : vector<16x32xf32>
    %256 = vector.broadcast %237 : vector<1x32xf32> to vector<16x32xf32>
    %257 = arith.addf %255, %256 : vector<16x32xf32>
    %258 = vector.shape_cast %257 : vector<16x32xf32> to vector<2x8x32xf32>
    %c0_107 = arith.constant 0 : index
    %c0_108 = arith.constant 0 : index
    %c0_109 = arith.constant 0 : index
    %259 = vector.load %arg22[%c0_107, %c0_108, %c0_109] : memref<2x8x32xf32, #tpu.memory_space<vmem>>, vector<2x8x32xf32>
    tpu.vector_store %arg22[%c0_107, %c0_108, %c0_109], %258 {strides = array<i32>} : memref<2x8x32xf32, #tpu.memory_space<vmem>>, vector<2x8x32xf32>,
    return
  }
}

module attributes {stable_mosaic.version = 11 : i64} {
  func.func @_encoder_layer_kernel(%arg0: memref<2x8x32xf32, #tpu.memory_space<vmem>>, %arg1: memref<32x96xf32, #tpu.memory_space<vmem>>, %arg2: memref<1x96xf32, #tpu.memory_space<vmem>>, %arg3: memref<32x32xf32, #tpu.memory_space<vmem>>, %arg4: memref<1x32xf32, #tpu.memory_space<vmem>>, %arg5: memref<1x32xf32, #tpu.memory_space<vmem>>, %arg6: memref<1x32xf32, #tpu.memory_space<vmem>>, %arg7: memref<32x64xf32, #tpu.memory_space<vmem>>, %arg8: memref<1x64xf32, #tpu.memory_space<vmem>>, %arg9: memref<64x32xf32, #tpu.memory_space<vmem>>, %arg10: memref<1x32xf32, #tpu.memory_space<vmem>>, %arg11: memref<1x32xf32, #tpu.memory_space<vmem>>, %arg12: memref<1x32xf32, #tpu.memory_space<vmem>>, %arg13: memref<2x8x32xf32, #tpu.memory_space<vmem>>) attributes {dimension_semantics = [], scalar_prefetch = 0 : i64, scratch_operands = 0 : i64, tpu.core_type = #tpu.core_type<tc>} {
    %c0 = arith.constant 0 : index
    %c0_0 = arith.constant 0 : index
    %c0_1 = arith.constant 0 : index
    %0 = vector.load %arg0[%c0, %c0_0, %c0_1] : memref<2x8x32xf32, #tpu.memory_space<vmem>>, vector<2x8x32xf32>
    %1 = vector.shape_cast %0 : vector<2x8x32xf32> to vector<16x32xf32>
    %c0_2 = arith.constant 0 : index
    %c0_3 = arith.constant 0 : index
    %2 = vector.load %arg1[%c0_2, %c0_3] : memref<32x96xf32, #tpu.memory_space<vmem>>, vector<32x96xf32>
    %cst = arith.constant dense<0.000000e+00> : vector<16x96xf32>
    %3 = tpu.matmul %1, %2, %cst {dimension_numbers = #tpu.dot_dimension_numbers<[1], [0], [0], [1], [0, 0, 1, 1], [], []>} : vector<16x32xf32>, vector<32x96xf32>, vector<16x96xf32> -> vector<16x96xf32>
    %c0_4 = arith.constant 0 : index
    %c0_5 = arith.constant 0 : index
    %4 = vector.load %arg2[%c0_4, %c0_5] : memref<1x96xf32, #tpu.memory_space<vmem>>, vector<1x96xf32>
    %5 = vector.broadcast %4 : vector<1x96xf32> to vector<16x96xf32>
    %6 = arith.addf %3, %5 : vector<16x96xf32>
    %7 = vector.shape_cast %6 : vector<16x96xf32> to vector<2x8x96xf32>
    %8 = vector.extract_strided_slice %7 {offsets = [0, 0, 0], sizes = [2, 8, 32], strides = [1, 1, 1]} : vector<2x8x96xf32> to vector<2x8x32xf32>
    %9 = vector.extract_strided_slice %7 {offsets = [0, 0, 32], sizes = [2, 8, 32], strides = [1, 1, 1]} : vector<2x8x96xf32> to vector<2x8x32xf32>
    %10 = vector.extract_strided_slice %7 {offsets = [0, 0, 64], sizes = [2, 8, 32], strides = [1, 1, 1]} : vector<2x8x96xf32> to vector<2x8x32xf32>
    %11 = vector.extract_strided_slice %8 {offsets = [0, 0, 0], sizes = [2, 8, 8], strides = [1, 1, 1]} : vector<2x8x32xf32> to vector<2x8x8xf32>
    %cst_6 = arith.constant 0.353553385 : f32
    %12 = vector.broadcast %cst_6 : f32 to vector<2x8x8xf32>
    %13 = arith.mulf %11, %12 : vector<2x8x8xf32>
    %14 = vector.extract_strided_slice %9 {offsets = [0, 0, 0], sizes = [2, 8, 8], strides = [1, 1, 1]} : vector<2x8x32xf32> to vector<2x8x8xf32>
    %15 = vector.extract_strided_slice %10 {offsets = [0, 0, 0], sizes = [2, 8, 8], strides = [1, 1, 1]} : vector<2x8x32xf32> to vector<2x8x8xf32>
    "tpu.trace_start"() <{level = 10 : i32, message = "bqd,bkd->bqk"}> : () -> ()
    %cst_7 = arith.constant dense<0.000000e+00> : vector<2x8x8xf32>
    %16 = tpu.matmul %13, %14, %cst_7 {dimension_numbers = #tpu.dot_dimension_numbers<[2], [2], [1], [1], [0, 0, 0, 1, 1, 1], [0], [0]>} : vector<2x8x8xf32>, vector<2x8x8xf32>, vector<2x8x8xf32> -> vector<2x8x8xf32>
    "tpu.trace_stop"() : () -> ()
    %cst_8 = arith.constant dense<0xFF800000> : vector<2x8xf32>
    %17 = vector.multi_reduction <maximumf>, %16, %cst_8 [2] : vector<2x8x8xf32> to vector<2x8xf32>
    %18 = vector.shape_cast %17 : vector<2x8xf32> to vector<2x8x1xf32>
    %19 = vector.broadcast %18 : vector<2x8x1xf32> to vector<2x8x8xf32>
    %20 = arith.subf %16, %19 : vector<2x8x8xf32>
    %21 = math.exp %20 : vector<2x8x8xf32>
    %cst_9 = arith.constant dense<0.000000e+00> : vector<2x8xf32>
    %22 = vector.multi_reduction <add>, %21, %cst_9 [2] : vector<2x8x8xf32> to vector<2x8xf32>
    %23 = vector.shape_cast %22 : vector<2x8xf32> to vector<2x8x1xf32>
    %24 = tpu.reciprocal %23 {approx = true} : vector<2x8x1xf32> -> vector<2x8x1xf32>
    %25 = vector.broadcast %24 : vector<2x8x1xf32> to vector<2x8x8xf32>
    %26 = arith.mulf %21, %25 : vector<2x8x8xf32>
    "tpu.trace_start"() <{level = 10 : i32, message = "bqk,bkd->bqd"}> : () -> ()
    %cst_10 = arith.constant dense<0.000000e+00> : vector<2x8x8xf32>
    %27 = tpu.matmul %26, %15, %cst_10 {dimension_numbers = #tpu.dot_dimension_numbers<[2], [1], [1], [2], [0, 0, 0, 1, 1, 2], [0], [0]>} : vector<2x8x8xf32>, vector<2x8x8xf32>, vector<2x8x8xf32> -> vector<2x8x8xf32>
    "tpu.trace_stop"() : () -> ()
    %28 = vector.extract_strided_slice %8 {offsets = [0, 0, 8], sizes = [2, 8, 8], strides = [1, 1, 1]} : vector<2x8x32xf32> to vector<2x8x8xf32>
    %cst_11 = arith.constant 0.353553385 : f32
    %29 = vector.broadcast %cst_11 : f32 to vector<2x8x8xf32>
    %30 = arith.mulf %28, %29 : vector<2x8x8xf32>
    %31 = vector.extract_strided_slice %9 {offsets = [0, 0, 8], sizes = [2, 8, 8], strides = [1, 1, 1]} : vector<2x8x32xf32> to vector<2x8x8xf32>
    %32 = vector.extract_strided_slice %10 {offsets = [0, 0, 8], sizes = [2, 8, 8], strides = [1, 1, 1]} : vector<2x8x32xf32> to vector<2x8x8xf32>
    "tpu.trace_start"() <{level = 10 : i32, message = "bqd,bkd->bqk"}> : () -> ()
    %cst_12 = arith.constant dense<0.000000e+00> : vector<2x8x8xf32>
    %33 = tpu.matmul %30, %31, %cst_12 {dimension_numbers = #tpu.dot_dimension_numbers<[2], [2], [1], [1], [0, 0, 0, 1, 1, 1], [0], [0]>} : vector<2x8x8xf32>, vector<2x8x8xf32>, vector<2x8x8xf32> -> vector<2x8x8xf32>
    "tpu.trace_stop"() : () -> ()
    %cst_13 = arith.constant dense<0xFF800000> : vector<2x8xf32>
    %34 = vector.multi_reduction <maximumf>, %33, %cst_13 [2] : vector<2x8x8xf32> to vector<2x8xf32>
    %35 = vector.shape_cast %34 : vector<2x8xf32> to vector<2x8x1xf32>
    %36 = vector.broadcast %35 : vector<2x8x1xf32> to vector<2x8x8xf32>
    %37 = arith.subf %33, %36 : vector<2x8x8xf32>
    %38 = math.exp %37 : vector<2x8x8xf32>
    %cst_14 = arith.constant dense<0.000000e+00> : vector<2x8xf32>
    %39 = vector.multi_reduction <add>, %38, %cst_14 [2] : vector<2x8x8xf32> to vector<2x8xf32>
    %40 = vector.shape_cast %39 : vector<2x8xf32> to vector<2x8x1xf32>
    %41 = tpu.reciprocal %40 {approx = true} : vector<2x8x1xf32> -> vector<2x8x1xf32>
    %42 = vector.broadcast %41 : vector<2x8x1xf32> to vector<2x8x8xf32>
    %43 = arith.mulf %38, %42 : vector<2x8x8xf32>
    "tpu.trace_start"() <{level = 10 : i32, message = "bqk,bkd->bqd"}> : () -> ()
    %cst_15 = arith.constant dense<0.000000e+00> : vector<2x8x8xf32>
    %44 = tpu.matmul %43, %32, %cst_15 {dimension_numbers = #tpu.dot_dimension_numbers<[2], [1], [1], [2], [0, 0, 0, 1, 1, 2], [0], [0]>} : vector<2x8x8xf32>, vector<2x8x8xf32>, vector<2x8x8xf32> -> vector<2x8x8xf32>
    "tpu.trace_stop"() : () -> ()
    %45 = vector.extract_strided_slice %8 {offsets = [0, 0, 16], sizes = [2, 8, 8], strides = [1, 1, 1]} : vector<2x8x32xf32> to vector<2x8x8xf32>
    %cst_16 = arith.constant 0.353553385 : f32
    %46 = vector.broadcast %cst_16 : f32 to vector<2x8x8xf32>
    %47 = arith.mulf %45, %46 : vector<2x8x8xf32>
    %48 = vector.extract_strided_slice %9 {offsets = [0, 0, 16], sizes = [2, 8, 8], strides = [1, 1, 1]} : vector<2x8x32xf32> to vector<2x8x8xf32>
    %49 = vector.extract_strided_slice %10 {offsets = [0, 0, 16], sizes = [2, 8, 8], strides = [1, 1, 1]} : vector<2x8x32xf32> to vector<2x8x8xf32>
    "tpu.trace_start"() <{level = 10 : i32, message = "bqd,bkd->bqk"}> : () -> ()
    %cst_17 = arith.constant dense<0.000000e+00> : vector<2x8x8xf32>
    %50 = tpu.matmul %47, %48, %cst_17 {dimension_numbers = #tpu.dot_dimension_numbers<[2], [2], [1], [1], [0, 0, 0, 1, 1, 1], [0], [0]>} : vector<2x8x8xf32>, vector<2x8x8xf32>, vector<2x8x8xf32> -> vector<2x8x8xf32>
    "tpu.trace_stop"() : () -> ()
    %cst_18 = arith.constant dense<0xFF800000> : vector<2x8xf32>
    %51 = vector.multi_reduction <maximumf>, %50, %cst_18 [2] : vector<2x8x8xf32> to vector<2x8xf32>
    %52 = vector.shape_cast %51 : vector<2x8xf32> to vector<2x8x1xf32>
    %53 = vector.broadcast %52 : vector<2x8x1xf32> to vector<2x8x8xf32>
    %54 = arith.subf %50, %53 : vector<2x8x8xf32>
    %55 = math.exp %54 : vector<2x8x8xf32>
    %cst_19 = arith.constant dense<0.000000e+00> : vector<2x8xf32>
    %56 = vector.multi_reduction <add>, %55, %cst_19 [2] : vector<2x8x8xf32> to vector<2x8xf32>
    %57 = vector.shape_cast %56 : vector<2x8xf32> to vector<2x8x1xf32>
    %58 = tpu.reciprocal %57 {approx = true} : vector<2x8x1xf32> -> vector<2x8x1xf32>
    %59 = vector.broadcast %58 : vector<2x8x1xf32> to vector<2x8x8xf32>
    %60 = arith.mulf %55, %59 : vector<2x8x8xf32>
    "tpu.trace_start"() <{level = 10 : i32, message = "bqk,bkd->bqd"}> : () -> ()
    %cst_20 = arith.constant dense<0.000000e+00> : vector<2x8x8xf32>
    %61 = tpu.matmul %60, %49, %cst_20 {dimension_numbers = #tpu.dot_dimension_numbers<[2], [1], [1], [2], [0, 0, 0, 1, 1, 2], [0], [0]>} : vector<2x8x8xf32>, vector<2x8x8xf32>, vector<2x8x8xf32> -> vector<2x8x8xf32>
    "tpu.trace_stop"() : () -> ()
    %62 = vector.extract_strided_slice %8 {offsets = [0, 0, 24], sizes = [2, 8, 8], strides = [1, 1, 1]} : vector<2x8x32xf32> to vector<2x8x8xf32>
    %cst_21 = arith.constant 0.353553385 : f32
    %63 = vector.broadcast %cst_21 : f32 to vector<2x8x8xf32>
    %64 = arith.mulf %62, %63 : vector<2x8x8xf32>
    %65 = vector.extract_strided_slice %9 {offsets = [0, 0, 24], sizes = [2, 8, 8], strides = [1, 1, 1]} : vector<2x8x32xf32> to vector<2x8x8xf32>
    %66 = vector.extract_strided_slice %10 {offsets = [0, 0, 24], sizes = [2, 8, 8], strides = [1, 1, 1]} : vector<2x8x32xf32> to vector<2x8x8xf32>
    "tpu.trace_start"() <{level = 10 : i32, message = "bqd,bkd->bqk"}> : () -> ()
    %cst_22 = arith.constant dense<0.000000e+00> : vector<2x8x8xf32>
    %67 = tpu.matmul %64, %65, %cst_22 {dimension_numbers = #tpu.dot_dimension_numbers<[2], [2], [1], [1], [0, 0, 0, 1, 1, 1], [0], [0]>} : vector<2x8x8xf32>, vector<2x8x8xf32>, vector<2x8x8xf32> -> vector<2x8x8xf32>
    "tpu.trace_stop"() : () -> ()
    %cst_23 = arith.constant dense<0xFF800000> : vector<2x8xf32>
    %68 = vector.multi_reduction <maximumf>, %67, %cst_23 [2] : vector<2x8x8xf32> to vector<2x8xf32>
    %69 = vector.shape_cast %68 : vector<2x8xf32> to vector<2x8x1xf32>
    %70 = vector.broadcast %69 : vector<2x8x1xf32> to vector<2x8x8xf32>
    %71 = arith.subf %67, %70 : vector<2x8x8xf32>
    %72 = math.exp %71 : vector<2x8x8xf32>
    %cst_24 = arith.constant dense<0.000000e+00> : vector<2x8xf32>
    %73 = vector.multi_reduction <add>, %72, %cst_24 [2] : vector<2x8x8xf32> to vector<2x8xf32>
    %74 = vector.shape_cast %73 : vector<2x8xf32> to vector<2x8x1xf32>
    %75 = tpu.reciprocal %74 {approx = true} : vector<2x8x1xf32> -> vector<2x8x1xf32>
    %76 = vector.broadcast %75 : vector<2x8x1xf32> to vector<2x8x8xf32>
    %77 = arith.mulf %72, %76 : vector<2x8x8xf32>
    "tpu.trace_start"() <{level = 10 : i32, message = "bqk,bkd->bqd"}> : () -> ()
    %cst_25 = arith.constant dense<0.000000e+00> : vector<2x8x8xf32>
    %78 = tpu.matmul %77, %66, %cst_25 {dimension_numbers = #tpu.dot_dimension_numbers<[2], [1], [1], [2], [0, 0, 0, 1, 1, 2], [0], [0]>} : vector<2x8x8xf32>, vector<2x8x8xf32>, vector<2x8x8xf32> -> vector<2x8x8xf32>
    "tpu.trace_stop"() : () -> ()
    %79 = tpu.concatenate %27, %44, %61, %78 in 2 : vector<2x8x8xf32>, vector<2x8x8xf32>, vector<2x8x8xf32>, vector<2x8x8xf32> -> vector<2x8x32xf32>
    %80 = vector.shape_cast %79 : vector<2x8x32xf32> to vector<16x32xf32>
    %c0_26 = arith.constant 0 : index
    %c0_27 = arith.constant 0 : index
    %81 = vector.load %arg3[%c0_26, %c0_27] : memref<32x32xf32, #tpu.memory_space<vmem>>, vector<32x32xf32>
    %cst_28 = arith.constant dense<0.000000e+00> : vector<16x32xf32>
    %82 = tpu.matmul %80, %81, %cst_28 {dimension_numbers = #tpu.dot_dimension_numbers<[1], [0], [0], [1], [0, 0, 1, 1], [], []>} : vector<16x32xf32>, vector<32x32xf32>, vector<16x32xf32> -> vector<16x32xf32>
    %c0_29 = arith.constant 0 : index
    %c0_30 = arith.constant 0 : index
    %83 = vector.load %arg4[%c0_29, %c0_30] : memref<1x32xf32, #tpu.memory_space<vmem>>, vector<1x32xf32>
    %84 = vector.broadcast %83 : vector<1x32xf32> to vector<16x32xf32>
    %85 = arith.addf %82, %84 : vector<16x32xf32>
    %86 = arith.addf %1, %85 : vector<16x32xf32>
    %c0_31 = arith.constant 0 : index
    %c0_32 = arith.constant 0 : index
    %87 = vector.load %arg5[%c0_31, %c0_32] : memref<1x32xf32, #tpu.memory_space<vmem>>, vector<1x32xf32>
    %c0_33 = arith.constant 0 : index
    %c0_34 = arith.constant 0 : index
    %88 = vector.load %arg6[%c0_33, %c0_34] : memref<1x32xf32, #tpu.memory_space<vmem>>, vector<1x32xf32>
    %cst_35 = arith.constant dense<0.000000e+00> : vector<16xf32>
    %89 = vector.multi_reduction <add>, %86, %cst_35 [1] : vector<16x32xf32> to vector<16xf32>
    %90 = vector.shape_cast %89 : vector<16xf32> to vector<16x1xf32>
    %cst_36 = arith.constant 3.200000e+01 : f32
    %91 = vector.broadcast %cst_36 : f32 to vector<16x1xf32>
    %92 = arith.divf %90, %91 : vector<16x1xf32>
    %93 = vector.broadcast %92 : vector<16x1xf32> to vector<16x32xf32>
    %94 = arith.subf %86, %93 : vector<16x32xf32>
    %95 = arith.mulf %94, %94 : vector<16x32xf32>
    %cst_37 = arith.constant dense<0.000000e+00> : vector<16xf32>
    %96 = vector.multi_reduction <add>, %95, %cst_37 [1] : vector<16x32xf32> to vector<16xf32>
    %97 = vector.shape_cast %96 : vector<16xf32> to vector<16x1xf32>
    %cst_38 = arith.constant 3.200000e+01 : f32
    %98 = vector.broadcast %cst_38 : f32 to vector<16x1xf32>
    %99 = arith.divf %97, %98 : vector<16x1xf32>
    %cst_39 = arith.constant 9.99999974E-6 : f32
    %100 = vector.broadcast %cst_39 : f32 to vector<16x1xf32>
    %101 = arith.addf %99, %100 : vector<16x1xf32>
    %102 = math.rsqrt %101 : vector<16x1xf32>
    %103 = vector.broadcast %102 : vector<16x1xf32> to vector<16x32xf32>
    %104 = arith.mulf %94, %103 : vector<16x32xf32>
    %105 = vector.broadcast %87 : vector<1x32xf32> to vector<16x32xf32>
    %106 = arith.mulf %104, %105 : vector<16x32xf32>
    %107 = vector.broadcast %88 : vector<1x32xf32> to vector<16x32xf32>
    %108 = arith.addf %106, %107 : vector<16x32xf32>
    %c0_40 = arith.constant 0 : index
    %c0_41 = arith.constant 0 : index
    %109 = vector.load %arg7[%c0_40, %c0_41] : memref<32x64xf32, #tpu.memory_space<vmem>>, vector<32x64xf32>
    %cst_42 = arith.constant dense<0.000000e+00> : vector<16x64xf32>
    %110 = tpu.matmul %108, %109, %cst_42 {dimension_numbers = #tpu.dot_dimension_numbers<[1], [0], [0], [1], [0, 0, 1, 1], [], []>} : vector<16x32xf32>, vector<32x64xf32>, vector<16x64xf32> -> vector<16x64xf32>
    %c0_43 = arith.constant 0 : index
    %c0_44 = arith.constant 0 : index
    %111 = vector.load %arg8[%c0_43, %c0_44] : memref<1x64xf32, #tpu.memory_space<vmem>>, vector<1x64xf32>
    %112 = vector.broadcast %111 : vector<1x64xf32> to vector<16x64xf32>
    %113 = arith.addf %110, %112 : vector<16x64xf32>
    %cst_45 = arith.constant 0.000000e+00 : f32
    %114 = vector.broadcast %cst_45 : f32 to vector<16x64xf32>
    %115 = arith.maximumf %113, %114 : vector<16x64xf32>
    %c0_46 = arith.constant 0 : index
    %c0_47 = arith.constant 0 : index
    %116 = vector.load %arg9[%c0_46, %c0_47] : memref<64x32xf32, #tpu.memory_space<vmem>>, vector<64x32xf32>
    %cst_48 = arith.constant dense<0.000000e+00> : vector<16x32xf32>
    %117 = tpu.matmul %115, %116, %cst_48 {dimension_numbers = #tpu.dot_dimension_numbers<[1], [0], [0], [1], [0, 0, 1, 1], [], []>} : vector<16x64xf32>, vector<64x32xf32>, vector<16x32xf32> -> vector<16x32xf32>
    %c0_49 = arith.constant 0 : index
    %c0_50 = arith.constant 0 : index
    %118 = vector.load %arg10[%c0_49, %c0_50] : memref<1x32xf32, #tpu.memory_space<vmem>>, vector<1x32xf32>
    %119 = vector.broadcast %118 : vector<1x32xf32> to vector<16x32xf32>
    %120 = arith.addf %117, %119 : vector<16x32xf32>
    %121 = arith.addf %108, %120 : vector<16x32xf32>
    %c0_51 = arith.constant 0 : index
    %c0_52 = arith.constant 0 : index
    %122 = vector.load %arg11[%c0_51, %c0_52] : memref<1x32xf32, #tpu.memory_space<vmem>>, vector<1x32xf32>
    %c0_53 = arith.constant 0 : index
    %c0_54 = arith.constant 0 : index
    %123 = vector.load %arg12[%c0_53, %c0_54] : memref<1x32xf32, #tpu.memory_space<vmem>>, vector<1x32xf32>
    %cst_55 = arith.constant dense<0.000000e+00> : vector<16xf32>
    %124 = vector.multi_reduction <add>, %121, %cst_55 [1] : vector<16x32xf32> to vector<16xf32>
    %125 = vector.shape_cast %124 : vector<16xf32> to vector<16x1xf32>
    %cst_56 = arith.constant 3.200000e+01 : f32
    %126 = vector.broadcast %cst_56 : f32 to vector<16x1xf32>
    %127 = arith.divf %125, %126 : vector<16x1xf32>
    %128 = vector.broadcast %127 : vector<16x1xf32> to vector<16x32xf32>
    %129 = arith.subf %121, %128 : vector<16x32xf32>
    %130 = arith.mulf %129, %129 : vector<16x32xf32>
    %cst_57 = arith.constant dense<0.000000e+00> : vector<16xf32>
    %131 = vector.multi_reduction <add>, %130, %cst_57 [1] : vector<16x32xf32> to vector<16xf32>
    %132 = vector.shape_cast %131 : vector<16xf32> to vector<16x1xf32>
    %cst_58 = arith.constant 3.200000e+01 : f32
    %133 = vector.broadcast %cst_58 : f32 to vector<16x1xf32>
    %134 = arith.divf %132, %133 : vector<16x1xf32>
    %cst_59 = arith.constant 9.99999974E-6 : f32
    %135 = vector.broadcast %cst_59 : f32 to vector<16x1xf32>
    %136 = arith.addf %134, %135 : vector<16x1xf32>
    %137 = math.rsqrt %136 : vector<16x1xf32>
    %138 = vector.broadcast %137 : vector<16x1xf32> to vector<16x32xf32>
    %139 = arith.mulf %129, %138 : vector<16x32xf32>
    %140 = vector.broadcast %122 : vector<1x32xf32> to vector<16x32xf32>
    %141 = arith.mulf %139, %140 : vector<16x32xf32>
    %142 = vector.broadcast %123 : vector<1x32xf32> to vector<16x32xf32>
    %143 = arith.addf %141, %142 : vector<16x32xf32>
    %144 = vector.shape_cast %143 : vector<16x32xf32> to vector<2x8x32xf32>
    %c0_60 = arith.constant 0 : index
    %c0_61 = arith.constant 0 : index
    %c0_62 = arith.constant 0 : index
    %145 = vector.load %arg13[%c0_60, %c0_61, %c0_62] : memref<2x8x32xf32, #tpu.memory_space<vmem>>, vector<2x8x32xf32>
    tpu.vector_store %arg13[%c0_60, %c0_61, %c0_62], %144 {strides = array<i32>} : memref<2x8x32xf32, #tpu.memory_space<vmem>>, vector<2x8x32xf32>,
    return
  }
}

module attributes {stable_mosaic.version = 11 : i64} {
  func.func @_decoder_layer_kernel(%arg0: memref<2x8x32xf32, #tpu.memory_space<vmem>>, %arg1: memref<2x6x32xf32, #tpu.memory_space<vmem>>, %arg2: memref<32x96xf32, #tpu.memory_space<vmem>>, %arg3: memref<1x96xf32, #tpu.memory_space<vmem>>, %arg4: memref<32x32xf32, #tpu.memory_space<vmem>>, %arg5: memref<1x32xf32, #tpu.memory_space<vmem>>, %arg6: memref<1x32xf32, #tpu.memory_space<vmem>>, %arg7: memref<1x32xf32, #tpu.memory_space<vmem>>, %arg8: memref<32x32xf32, #tpu.memory_space<vmem>>, %arg9: memref<1x32xf32, #tpu.memory_space<vmem>>, %arg10: memref<32x64xf32, #tpu.memory_space<vmem>>, %arg11: memref<1x64xf32, #tpu.memory_space<vmem>>, %arg12: memref<32x32xf32, #tpu.memory_space<vmem>>, %arg13: memref<1x32xf32, #tpu.memory_space<vmem>>, %arg14: memref<1x32xf32, #tpu.memory_space<vmem>>, %arg15: memref<1x32xf32, #tpu.memory_space<vmem>>, %arg16: memref<32x64xf32, #tpu.memory_space<vmem>>, %arg17: memref<1x64xf32, #tpu.memory_space<vmem>>, %arg18: memref<64x32xf32, #tpu.memory_space<vmem>>, %arg19: memref<1x32xf32, #tpu.memory_space<vmem>>, %arg20: memref<1x32xf32, #tpu.memory_space<vmem>>, %arg21: memref<1x32xf32, #tpu.memory_space<vmem>>, %arg22: memref<2x8x32xf32, #tpu.memory_space<vmem>>) attributes {dimension_semantics = [], scalar_prefetch = 0 : i64, scratch_operands = 0 : i64, tpu.core_type = #tpu.core_type<tc>} {
    %c0 = arith.constant 0 : index
    %c0_0 = arith.constant 0 : index
    %c0_1 = arith.constant 0 : index
    %0 = vector.load %arg0[%c0, %c0_0, %c0_1] : memref<2x8x32xf32, #tpu.memory_space<vmem>>, vector<2x8x32xf32>
    %c0_2 = arith.constant 0 : index
    %c0_3 = arith.constant 0 : index
    %c0_4 = arith.constant 0 : index
    %1 = vector.load %arg1[%c0_2, %c0_3, %c0_4] : memref<2x6x32xf32, #tpu.memory_space<vmem>>, vector<2x6x32xf32>
    %2 = vector.shape_cast %0 : vector<2x8x32xf32> to vector<16x32xf32>
    %c0_5 = arith.constant 0 : index
    %c0_6 = arith.constant 0 : index
    %3 = vector.load %arg2[%c0_5, %c0_6] : memref<32x96xf32, #tpu.memory_space<vmem>>, vector<32x96xf32>
    %cst = arith.constant dense<0.000000e+00> : vector<16x96xf32>
    %4 = tpu.matmul %2, %3, %cst {dimension_numbers = #tpu.dot_dimension_numbers<[1], [0], [0], [1], [0, 0, 1, 1], [], []>} : vector<16x32xf32>, vector<32x96xf32>, vector<16x96xf32> -> vector<16x96xf32>
    %c0_7 = arith.constant 0 : index
    %c0_8 = arith.constant 0 : index
    %5 = vector.load %arg3[%c0_7, %c0_8] : memref<1x96xf32, #tpu.memory_space<vmem>>, vector<1x96xf32>
    %6 = vector.broadcast %5 : vector<1x96xf32> to vector<16x96xf32>
    %7 = arith.addf %4, %6 : vector<16x96xf32>
    %8 = vector.shape_cast %7 : vector<16x96xf32> to vector<2x8x96xf32>
    %9 = vector.extract_strided_slice %8 {offsets = [0, 0, 0], sizes = [2, 8, 32], strides = [1, 1, 1]} : vector<2x8x96xf32> to vector<2x8x32xf32>
    %10 = vector.extract_strided_slice %8 {offsets = [0, 0, 32], sizes = [2, 8, 32], strides = [1, 1, 1]} : vector<2x8x96xf32> to vector<2x8x32xf32>
    %11 = vector.extract_strided_slice %8 {offsets = [0, 0, 64], sizes = [2, 8, 32], strides = [1, 1, 1]} : vector<2x8x96xf32> to vector<2x8x32xf32>
    %12 = vector.extract_strided_slice %9 {offsets = [0, 0, 0], sizes = [2, 8, 8], strides = [1, 1, 1]} : vector<2x8x32xf32> to vector<2x8x8xf32>
    %cst_9 = arith.constant 0.353553385 : f32
    %13 = vector.broadcast %cst_9 : f32 to vector<2x8x8xf32>
    %14 = arith.mulf %12, %13 : vector<2x8x8xf32>
    %15 = vector.extract_strided_slice %10 {offsets = [0, 0, 0], sizes = [2, 8, 8], strides = [1, 1, 1]} : vector<2x8x32xf32> to vector<2x8x8xf32>
    %16 = vector.extract_strided_slice %11 {offsets = [0, 0, 0], sizes = [2, 8, 8], strides = [1, 1, 1]} : vector<2x8x32xf32> to vector<2x8x8xf32>
    "tpu.trace_start"() <{level = 10 : i32, message = "bqd,bkd->bqk"}> : () -> ()
    %cst_10 = arith.constant dense<0.000000e+00> : vector<2x8x8xf32>
    %17 = tpu.matmul %14, %15, %cst_10 {dimension_numbers = #tpu.dot_dimension_numbers<[2], [2], [1], [1], [0, 0, 0, 1, 1, 1], [0], [0]>} : vector<2x8x8xf32>, vector<2x8x8xf32>, vector<2x8x8xf32> -> vector<2x8x8xf32>
    "tpu.trace_stop"() : () -> ()
    %cst_11 = arith.constant dense<0xFF800000> : vector<2x8xf32>
    %18 = vector.multi_reduction <maximumf>, %17, %cst_11 [2] : vector<2x8x8xf32> to vector<2x8xf32>
    %19 = vector.shape_cast %18 : vector<2x8xf32> to vector<2x8x1xf32>
    %20 = vector.broadcast %19 : vector<2x8x1xf32> to vector<2x8x8xf32>
    %21 = arith.subf %17, %20 : vector<2x8x8xf32>
    %22 = math.exp %21 : vector<2x8x8xf32>
    %cst_12 = arith.constant dense<0.000000e+00> : vector<2x8xf32>
    %23 = vector.multi_reduction <add>, %22, %cst_12 [2] : vector<2x8x8xf32> to vector<2x8xf32>
    %24 = vector.shape_cast %23 : vector<2x8xf32> to vector<2x8x1xf32>
    %25 = tpu.reciprocal %24 {approx = true} : vector<2x8x1xf32> -> vector<2x8x1xf32>
    %26 = vector.broadcast %25 : vector<2x8x1xf32> to vector<2x8x8xf32>
    %27 = arith.mulf %22, %26 : vector<2x8x8xf32>
    "tpu.trace_start"() <{level = 10 : i32, message = "bqk,bkd->bqd"}> : () -> ()
    %cst_13 = arith.constant dense<0.000000e+00> : vector<2x8x8xf32>
    %28 = tpu.matmul %27, %16, %cst_13 {dimension_numbers = #tpu.dot_dimension_numbers<[2], [1], [1], [2], [0, 0, 0, 1, 1, 2], [0], [0]>} : vector<2x8x8xf32>, vector<2x8x8xf32>, vector<2x8x8xf32> -> vector<2x8x8xf32>
    "tpu.trace_stop"() : () -> ()
    %29 = vector.extract_strided_slice %9 {offsets = [0, 0, 8], sizes = [2, 8, 8], strides = [1, 1, 1]} : vector<2x8x32xf32> to vector<2x8x8xf32>
    %cst_14 = arith.constant 0.353553385 : f32
    %30 = vector.broadcast %cst_14 : f32 to vector<2x8x8xf32>
    %31 = arith.mulf %29, %30 : vector<2x8x8xf32>
    %32 = vector.extract_strided_slice %10 {offsets = [0, 0, 8], sizes = [2, 8, 8], strides = [1, 1, 1]} : vector<2x8x32xf32> to vector<2x8x8xf32>
    %33 = vector.extract_strided_slice %11 {offsets = [0, 0, 8], sizes = [2, 8, 8], strides = [1, 1, 1]} : vector<2x8x32xf32> to vector<2x8x8xf32>
    "tpu.trace_start"() <{level = 10 : i32, message = "bqd,bkd->bqk"}> : () -> ()
    %cst_15 = arith.constant dense<0.000000e+00> : vector<2x8x8xf32>
    %34 = tpu.matmul %31, %32, %cst_15 {dimension_numbers = #tpu.dot_dimension_numbers<[2], [2], [1], [1], [0, 0, 0, 1, 1, 1], [0], [0]>} : vector<2x8x8xf32>, vector<2x8x8xf32>, vector<2x8x8xf32> -> vector<2x8x8xf32>
    "tpu.trace_stop"() : () -> ()
    %cst_16 = arith.constant dense<0xFF800000> : vector<2x8xf32>
    %35 = vector.multi_reduction <maximumf>, %34, %cst_16 [2] : vector<2x8x8xf32> to vector<2x8xf32>
    %36 = vector.shape_cast %35 : vector<2x8xf32> to vector<2x8x1xf32>
    %37 = vector.broadcast %36 : vector<2x8x1xf32> to vector<2x8x8xf32>
    %38 = arith.subf %34, %37 : vector<2x8x8xf32>
    %39 = math.exp %38 : vector<2x8x8xf32>
    %cst_17 = arith.constant dense<0.000000e+00> : vector<2x8xf32>
    %40 = vector.multi_reduction <add>, %39, %cst_17 [2] : vector<2x8x8xf32> to vector<2x8xf32>
    %41 = vector.shape_cast %40 : vector<2x8xf32> to vector<2x8x1xf32>
    %42 = tpu.reciprocal %41 {approx = true} : vector<2x8x1xf32> -> vector<2x8x1xf32>
    %43 = vector.broadcast %42 : vector<2x8x1xf32> to vector<2x8x8xf32>
    %44 = arith.mulf %39, %43 : vector<2x8x8xf32>
    "tpu.trace_start"() <{level = 10 : i32, message = "bqk,bkd->bqd"}> : () -> ()
    %cst_18 = arith.constant dense<0.000000e+00> : vector<2x8x8xf32>
    %45 = tpu.matmul %44, %33, %cst_18 {dimension_numbers = #tpu.dot_dimension_numbers<[2], [1], [1], [2], [0, 0, 0, 1, 1, 2], [0], [0]>} : vector<2x8x8xf32>, vector<2x8x8xf32>, vector<2x8x8xf32> -> vector<2x8x8xf32>
    "tpu.trace_stop"() : () -> ()
    %46 = vector.extract_strided_slice %9 {offsets = [0, 0, 16], sizes = [2, 8, 8], strides = [1, 1, 1]} : vector<2x8x32xf32> to vector<2x8x8xf32>
    %cst_19 = arith.constant 0.353553385 : f32
    %47 = vector.broadcast %cst_19 : f32 to vector<2x8x8xf32>
    %48 = arith.mulf %46, %47 : vector<2x8x8xf32>
    %49 = vector.extract_strided_slice %10 {offsets = [0, 0, 16], sizes = [2, 8, 8], strides = [1, 1, 1]} : vector<2x8x32xf32> to vector<2x8x8xf32>
    %50 = vector.extract_strided_slice %11 {offsets = [0, 0, 16], sizes = [2, 8, 8], strides = [1, 1, 1]} : vector<2x8x32xf32> to vector<2x8x8xf32>
    "tpu.trace_start"() <{level = 10 : i32, message = "bqd,bkd->bqk"}> : () -> ()
    %cst_20 = arith.constant dense<0.000000e+00> : vector<2x8x8xf32>
    %51 = tpu.matmul %48, %49, %cst_20 {dimension_numbers = #tpu.dot_dimension_numbers<[2], [2], [1], [1], [0, 0, 0, 1, 1, 1], [0], [0]>} : vector<2x8x8xf32>, vector<2x8x8xf32>, vector<2x8x8xf32> -> vector<2x8x8xf32>
    "tpu.trace_stop"() : () -> ()
    %cst_21 = arith.constant dense<0xFF800000> : vector<2x8xf32>
    %52 = vector.multi_reduction <maximumf>, %51, %cst_21 [2] : vector<2x8x8xf32> to vector<2x8xf32>
    %53 = vector.shape_cast %52 : vector<2x8xf32> to vector<2x8x1xf32>
    %54 = vector.broadcast %53 : vector<2x8x1xf32> to vector<2x8x8xf32>
    %55 = arith.subf %51, %54 : vector<2x8x8xf32>
    %56 = math.exp %55 : vector<2x8x8xf32>
    %cst_22 = arith.constant dense<0.000000e+00> : vector<2x8xf32>
    %57 = vector.multi_reduction <add>, %56, %cst_22 [2] : vector<2x8x8xf32> to vector<2x8xf32>
    %58 = vector.shape_cast %57 : vector<2x8xf32> to vector<2x8x1xf32>
    %59 = tpu.reciprocal %58 {approx = true} : vector<2x8x1xf32> -> vector<2x8x1xf32>
    %60 = vector.broadcast %59 : vector<2x8x1xf32> to vector<2x8x8xf32>
    %61 = arith.mulf %56, %60 : vector<2x8x8xf32>
    "tpu.trace_start"() <{level = 10 : i32, message = "bqk,bkd->bqd"}> : () -> ()
    %cst_23 = arith.constant dense<0.000000e+00> : vector<2x8x8xf32>
    %62 = tpu.matmul %61, %50, %cst_23 {dimension_numbers = #tpu.dot_dimension_numbers<[2], [1], [1], [2], [0, 0, 0, 1, 1, 2], [0], [0]>} : vector<2x8x8xf32>, vector<2x8x8xf32>, vector<2x8x8xf32> -> vector<2x8x8xf32>
    "tpu.trace_stop"() : () -> ()
    %63 = vector.extract_strided_slice %9 {offsets = [0, 0, 24], sizes = [2, 8, 8], strides = [1, 1, 1]} : vector<2x8x32xf32> to vector<2x8x8xf32>
    %cst_24 = arith.constant 0.353553385 : f32
    %64 = vector.broadcast %cst_24 : f32 to vector<2x8x8xf32>
    %65 = arith.mulf %63, %64 : vector<2x8x8xf32>
    %66 = vector.extract_strided_slice %10 {offsets = [0, 0, 24], sizes = [2, 8, 8], strides = [1, 1, 1]} : vector<2x8x32xf32> to vector<2x8x8xf32>
    %67 = vector.extract_strided_slice %11 {offsets = [0, 0, 24], sizes = [2, 8, 8], strides = [1, 1, 1]} : vector<2x8x32xf32> to vector<2x8x8xf32>
    "tpu.trace_start"() <{level = 10 : i32, message = "bqd,bkd->bqk"}> : () -> ()
    %cst_25 = arith.constant dense<0.000000e+00> : vector<2x8x8xf32>
    %68 = tpu.matmul %65, %66, %cst_25 {dimension_numbers = #tpu.dot_dimension_numbers<[2], [2], [1], [1], [0, 0, 0, 1, 1, 1], [0], [0]>} : vector<2x8x8xf32>, vector<2x8x8xf32>, vector<2x8x8xf32> -> vector<2x8x8xf32>
    "tpu.trace_stop"() : () -> ()
    %cst_26 = arith.constant dense<0xFF800000> : vector<2x8xf32>
    %69 = vector.multi_reduction <maximumf>, %68, %cst_26 [2] : vector<2x8x8xf32> to vector<2x8xf32>
    %70 = vector.shape_cast %69 : vector<2x8xf32> to vector<2x8x1xf32>
    %71 = vector.broadcast %70 : vector<2x8x1xf32> to vector<2x8x8xf32>
    %72 = arith.subf %68, %71 : vector<2x8x8xf32>
    %73 = math.exp %72 : vector<2x8x8xf32>
    %cst_27 = arith.constant dense<0.000000e+00> : vector<2x8xf32>
    %74 = vector.multi_reduction <add>, %73, %cst_27 [2] : vector<2x8x8xf32> to vector<2x8xf32>
    %75 = vector.shape_cast %74 : vector<2x8xf32> to vector<2x8x1xf32>
    %76 = tpu.reciprocal %75 {approx = true} : vector<2x8x1xf32> -> vector<2x8x1xf32>
    %77 = vector.broadcast %76 : vector<2x8x1xf32> to vector<2x8x8xf32>
    %78 = arith.mulf %73, %77 : vector<2x8x8xf32>
    "tpu.trace_start"() <{level = 10 : i32, message = "bqk,bkd->bqd"}> : () -> ()
    %cst_28 = arith.constant dense<0.000000e+00> : vector<2x8x8xf32>
    %79 = tpu.matmul %78, %67, %cst_28 {dimension_numbers = #tpu.dot_dimension_numbers<[2], [1], [1], [2], [0, 0, 0, 1, 1, 2], [0], [0]>} : vector<2x8x8xf32>, vector<2x8x8xf32>, vector<2x8x8xf32> -> vector<2x8x8xf32>
    "tpu.trace_stop"() : () -> ()
    %80 = tpu.concatenate %28, %45, %62, %79 in 2 : vector<2x8x8xf32>, vector<2x8x8xf32>, vector<2x8x8xf32>, vector<2x8x8xf32> -> vector<2x8x32xf32>
    %81 = vector.shape_cast %80 : vector<2x8x32xf32> to vector<16x32xf32>
    %c0_29 = arith.constant 0 : index
    %c0_30 = arith.constant 0 : index
    %82 = vector.load %arg4[%c0_29, %c0_30] : memref<32x32xf32, #tpu.memory_space<vmem>>, vector<32x32xf32>
    %cst_31 = arith.constant dense<0.000000e+00> : vector<16x32xf32>
    %83 = tpu.matmul %81, %82, %cst_31 {dimension_numbers = #tpu.dot_dimension_numbers<[1], [0], [0], [1], [0, 0, 1, 1], [], []>} : vector<16x32xf32>, vector<32x32xf32>, vector<16x32xf32> -> vector<16x32xf32>
    %c0_32 = arith.constant 0 : index
    %c0_33 = arith.constant 0 : index
    %84 = vector.load %arg5[%c0_32, %c0_33] : memref<1x32xf32, #tpu.memory_space<vmem>>, vector<1x32xf32>
    %85 = vector.broadcast %84 : vector<1x32xf32> to vector<16x32xf32>
    %86 = arith.addf %83, %85 : vector<16x32xf32>
    %87 = arith.addf %2, %86 : vector<16x32xf32>
    %c0_34 = arith.constant 0 : index
    %c0_35 = arith.constant 0 : index
    %88 = vector.load %arg6[%c0_34, %c0_35] : memref<1x32xf32, #tpu.memory_space<vmem>>, vector<1x32xf32>
    %c0_36 = arith.constant 0 : index
    %c0_37 = arith.constant 0 : index
    %89 = vector.load %arg7[%c0_36, %c0_37] : memref<1x32xf32, #tpu.memory_space<vmem>>, vector<1x32xf32>
    %cst_38 = arith.constant dense<0.000000e+00> : vector<16xf32>
    %90 = vector.multi_reduction <add>, %87, %cst_38 [1] : vector<16x32xf32> to vector<16xf32>
    %91 = vector.shape_cast %90 : vector<16xf32> to vector<16x1xf32>
    %cst_39 = arith.constant 3.200000e+01 : f32
    %92 = vector.broadcast %cst_39 : f32 to vector<16x1xf32>
    %93 = arith.divf %91, %92 : vector<16x1xf32>
    %94 = vector.broadcast %93 : vector<16x1xf32> to vector<16x32xf32>
    %95 = arith.subf %87, %94 : vector<16x32xf32>
    %96 = arith.mulf %95, %95 : vector<16x32xf32>
    %cst_40 = arith.constant dense<0.000000e+00> : vector<16xf32>
    %97 = vector.multi_reduction <add>, %96, %cst_40 [1] : vector<16x32xf32> to vector<16xf32>
    %98 = vector.shape_cast %97 : vector<16xf32> to vector<16x1xf32>
    %cst_41 = arith.constant 3.200000e+01 : f32
    %99 = vector.broadcast %cst_41 : f32 to vector<16x1xf32>
    %100 = arith.divf %98, %99 : vector<16x1xf32>
    %cst_42 = arith.constant 9.99999974E-6 : f32
    %101 = vector.broadcast %cst_42 : f32 to vector<16x1xf32>
    %102 = arith.addf %100, %101 : vector<16x1xf32>
    %103 = math.rsqrt %102 : vector<16x1xf32>
    %104 = vector.broadcast %103 : vector<16x1xf32> to vector<16x32xf32>
    %105 = arith.mulf %95, %104 : vector<16x32xf32>
    %106 = vector.broadcast %88 : vector<1x32xf32> to vector<16x32xf32>
    %107 = arith.mulf %105, %106 : vector<16x32xf32>
    %108 = vector.broadcast %89 : vector<1x32xf32> to vector<16x32xf32>
    %109 = arith.addf %107, %108 : vector<16x32xf32>
    %c0_43 = arith.constant 0 : index
    %c0_44 = arith.constant 0 : index
    %110 = vector.load %arg8[%c0_43, %c0_44] : memref<32x32xf32, #tpu.memory_space<vmem>>, vector<32x32xf32>
    %cst_45 = arith.constant dense<0.000000e+00> : vector<16x32xf32>
    %111 = tpu.matmul %109, %110, %cst_45 {dimension_numbers = #tpu.dot_dimension_numbers<[1], [0], [0], [1], [0, 0, 1, 1], [], []>} : vector<16x32xf32>, vector<32x32xf32>, vector<16x32xf32> -> vector<16x32xf32>
    %c0_46 = arith.constant 0 : index
    %c0_47 = arith.constant 0 : index
    %112 = vector.load %arg9[%c0_46, %c0_47] : memref<1x32xf32, #tpu.memory_space<vmem>>, vector<1x32xf32>
    %113 = vector.broadcast %112 : vector<1x32xf32> to vector<16x32xf32>
    %114 = arith.addf %111, %113 : vector<16x32xf32>
    %115 = vector.shape_cast %1 : vector<2x6x32xf32> to vector<12x32xf32>
    %c0_48 = arith.constant 0 : index
    %c0_49 = arith.constant 0 : index
    %116 = vector.load %arg10[%c0_48, %c0_49] : memref<32x64xf32, #tpu.memory_space<vmem>>, vector<32x64xf32>
    %cst_50 = arith.constant dense<0.000000e+00> : vector<12x64xf32>
    %117 = tpu.matmul %115, %116, %cst_50 {dimension_numbers = #tpu.dot_dimension_numbers<[1], [0], [0], [1], [0, 0, 1, 1], [], []>} : vector<12x32xf32>, vector<32x64xf32>, vector<12x64xf32> -> vector<12x64xf32>
    %c0_51 = arith.constant 0 : index
    %c0_52 = arith.constant 0 : index
    %118 = vector.load %arg11[%c0_51, %c0_52] : memref<1x64xf32, #tpu.memory_space<vmem>>, vector<1x64xf32>
    %119 = vector.broadcast %118 : vector<1x64xf32> to vector<12x64xf32>
    %120 = arith.addf %117, %119 : vector<12x64xf32>
    %121 = vector.shape_cast %120 : vector<12x64xf32> to vector<2x6x64xf32>
    %122 = vector.shape_cast %114 : vector<16x32xf32> to vector<2x8x32xf32>
    %123 = vector.extract_strided_slice %121 {offsets = [0, 0, 0], sizes = [2, 6, 32], strides = [1, 1, 1]} : vector<2x6x64xf32> to vector<2x6x32xf32>
    %124 = vector.extract_strided_slice %121 {offsets = [0, 0, 32], sizes = [2, 6, 32], strides = [1, 1, 1]} : vector<2x6x64xf32> to vector<2x6x32xf32>
    %125 = vector.extract_strided_slice %122 {offsets = [0, 0, 0], sizes = [2, 8, 8], strides = [1, 1, 1]} : vector<2x8x32xf32> to vector<2x8x8xf32>
    %cst_53 = arith.constant 0.353553385 : f32
    %126 = vector.broadcast %cst_53 : f32 to vector<2x8x8xf32>
    %127 = arith.mulf %125, %126 : vector<2x8x8xf32>
    %128 = vector.extract_strided_slice %123 {offsets = [0, 0, 0], sizes = [2, 6, 8], strides = [1, 1, 1]} : vector<2x6x32xf32> to vector<2x6x8xf32>
    %129 = vector.extract_strided_slice %124 {offsets = [0, 0, 0], sizes = [2, 6, 8], strides = [1, 1, 1]} : vector<2x6x32xf32> to vector<2x6x8xf32>
    "tpu.trace_start"() <{level = 10 : i32, message = "bqd,bkd->bqk"}> : () -> ()
    %cst_54 = arith.constant dense<0.000000e+00> : vector<2x8x6xf32>
    %130 = tpu.matmul %127, %128, %cst_54 {dimension_numbers = #tpu.dot_dimension_numbers<[2], [2], [1], [1], [0, 0, 0, 1, 1, 1], [0], [0]>} : vector<2x8x8xf32>, vector<2x6x8xf32>, vector<2x8x6xf32> -> vector<2x8x6xf32>
    "tpu.trace_stop"() : () -> ()
    %cst_55 = arith.constant dense<0xFF800000> : vector<2x8xf32>
    %131 = vector.multi_reduction <maximumf>, %130, %cst_55 [2] : vector<2x8x6xf32> to vector<2x8xf32>
    %132 = vector.shape_cast %131 : vector<2x8xf32> to vector<2x8x1xf32>
    %133 = vector.broadcast %132 : vector<2x8x1xf32> to vector<2x8x6xf32>
    %134 = arith.subf %130, %133 : vector<2x8x6xf32>
    %135 = math.exp %134 : vector<2x8x6xf32>
    %cst_56 = arith.constant dense<0.000000e+00> : vector<2x8xf32>
    %136 = vector.multi_reduction <add>, %135, %cst_56 [2] : vector<2x8x6xf32> to vector<2x8xf32>
    %137 = vector.shape_cast %136 : vector<2x8xf32> to vector<2x8x1xf32>
    %138 = tpu.reciprocal %137 {approx = true} : vector<2x8x1xf32> -> vector<2x8x1xf32>
    %139 = vector.broadcast %138 : vector<2x8x1xf32> to vector<2x8x6xf32>
    %140 = arith.mulf %135, %139 : vector<2x8x6xf32>
    "tpu.trace_start"() <{level = 10 : i32, message = "bqk,bkd->bqd"}> : () -> ()
    %cst_57 = arith.constant dense<0.000000e+00> : vector<2x8x8xf32>
    %141 = tpu.matmul %140, %129, %cst_57 {dimension_numbers = #tpu.dot_dimension_numbers<[2], [1], [1], [2], [0, 0, 0, 1, 1, 2], [0], [0]>} : vector<2x8x6xf32>, vector<2x6x8xf32>, vector<2x8x8xf32> -> vector<2x8x8xf32>
    "tpu.trace_stop"() : () -> ()
    %142 = vector.extract_strided_slice %122 {offsets = [0, 0, 8], sizes = [2, 8, 8], strides = [1, 1, 1]} : vector<2x8x32xf32> to vector<2x8x8xf32>
    %cst_58 = arith.constant 0.353553385 : f32
    %143 = vector.broadcast %cst_58 : f32 to vector<2x8x8xf32>
    %144 = arith.mulf %142, %143 : vector<2x8x8xf32>
    %145 = vector.extract_strided_slice %123 {offsets = [0, 0, 8], sizes = [2, 6, 8], strides = [1, 1, 1]} : vector<2x6x32xf32> to vector<2x6x8xf32>
    %146 = vector.extract_strided_slice %124 {offsets = [0, 0, 8], sizes = [2, 6, 8], strides = [1, 1, 1]} : vector<2x6x32xf32> to vector<2x6x8xf32>
    "tpu.trace_start"() <{level = 10 : i32, message = "bqd,bkd->bqk"}> : () -> ()
    %cst_59 = arith.constant dense<0.000000e+00> : vector<2x8x6xf32>
    %147 = tpu.matmul %144, %145, %cst_59 {dimension_numbers = #tpu.dot_dimension_numbers<[2], [2], [1], [1], [0, 0, 0, 1, 1, 1], [0], [0]>} : vector<2x8x8xf32>, vector<2x6x8xf32>, vector<2x8x6xf32> -> vector<2x8x6xf32>
    "tpu.trace_stop"() : () -> ()
    %cst_60 = arith.constant dense<0xFF800000> : vector<2x8xf32>
    %148 = vector.multi_reduction <maximumf>, %147, %cst_60 [2] : vector<2x8x6xf32> to vector<2x8xf32>
    %149 = vector.shape_cast %148 : vector<2x8xf32> to vector<2x8x1xf32>
    %150 = vector.broadcast %149 : vector<2x8x1xf32> to vector<2x8x6xf32>
    %151 = arith.subf %147, %150 : vector<2x8x6xf32>
    %152 = math.exp %151 : vector<2x8x6xf32>
    %cst_61 = arith.constant dense<0.000000e+00> : vector<2x8xf32>
    %153 = vector.multi_reduction <add>, %152, %cst_61 [2] : vector<2x8x6xf32> to vector<2x8xf32>
    %154 = vector.shape_cast %153 : vector<2x8xf32> to vector<2x8x1xf32>
    %155 = tpu.reciprocal %154 {approx = true} : vector<2x8x1xf32> -> vector<2x8x1xf32>
    %156 = vector.broadcast %155 : vector<2x8x1xf32> to vector<2x8x6xf32>
    %157 = arith.mulf %152, %156 : vector<2x8x6xf32>
    "tpu.trace_start"() <{level = 10 : i32, message = "bqk,bkd->bqd"}> : () -> ()
    %cst_62 = arith.constant dense<0.000000e+00> : vector<2x8x8xf32>
    %158 = tpu.matmul %157, %146, %cst_62 {dimension_numbers = #tpu.dot_dimension_numbers<[2], [1], [1], [2], [0, 0, 0, 1, 1, 2], [0], [0]>} : vector<2x8x6xf32>, vector<2x6x8xf32>, vector<2x8x8xf32> -> vector<2x8x8xf32>
    "tpu.trace_stop"() : () -> ()
    %159 = vector.extract_strided_slice %122 {offsets = [0, 0, 16], sizes = [2, 8, 8], strides = [1, 1, 1]} : vector<2x8x32xf32> to vector<2x8x8xf32>
    %cst_63 = arith.constant 0.353553385 : f32
    %160 = vector.broadcast %cst_63 : f32 to vector<2x8x8xf32>
    %161 = arith.mulf %159, %160 : vector<2x8x8xf32>
    %162 = vector.extract_strided_slice %123 {offsets = [0, 0, 16], sizes = [2, 6, 8], strides = [1, 1, 1]} : vector<2x6x32xf32> to vector<2x6x8xf32>
    %163 = vector.extract_strided_slice %124 {offsets = [0, 0, 16], sizes = [2, 6, 8], strides = [1, 1, 1]} : vector<2x6x32xf32> to vector<2x6x8xf32>
    "tpu.trace_start"() <{level = 10 : i32, message = "bqd,bkd->bqk"}> : () -> ()
    %cst_64 = arith.constant dense<0.000000e+00> : vector<2x8x6xf32>
    %164 = tpu.matmul %161, %162, %cst_64 {dimension_numbers = #tpu.dot_dimension_numbers<[2], [2], [1], [1], [0, 0, 0, 1, 1, 1], [0], [0]>} : vector<2x8x8xf32>, vector<2x6x8xf32>, vector<2x8x6xf32> -> vector<2x8x6xf32>
    "tpu.trace_stop"() : () -> ()
    %cst_65 = arith.constant dense<0xFF800000> : vector<2x8xf32>
    %165 = vector.multi_reduction <maximumf>, %164, %cst_65 [2] : vector<2x8x6xf32> to vector<2x8xf32>
    %166 = vector.shape_cast %165 : vector<2x8xf32> to vector<2x8x1xf32>
    %167 = vector.broadcast %166 : vector<2x8x1xf32> to vector<2x8x6xf32>
    %168 = arith.subf %164, %167 : vector<2x8x6xf32>
    %169 = math.exp %168 : vector<2x8x6xf32>
    %cst_66 = arith.constant dense<0.000000e+00> : vector<2x8xf32>
    %170 = vector.multi_reduction <add>, %169, %cst_66 [2] : vector<2x8x6xf32> to vector<2x8xf32>
    %171 = vector.shape_cast %170 : vector<2x8xf32> to vector<2x8x1xf32>
    %172 = tpu.reciprocal %171 {approx = true} : vector<2x8x1xf32> -> vector<2x8x1xf32>
    %173 = vector.broadcast %172 : vector<2x8x1xf32> to vector<2x8x6xf32>
    %174 = arith.mulf %169, %173 : vector<2x8x6xf32>
    "tpu.trace_start"() <{level = 10 : i32, message = "bqk,bkd->bqd"}> : () -> ()
    %cst_67 = arith.constant dense<0.000000e+00> : vector<2x8x8xf32>
    %175 = tpu.matmul %174, %163, %cst_67 {dimension_numbers = #tpu.dot_dimension_numbers<[2], [1], [1], [2], [0, 0, 0, 1, 1, 2], [0], [0]>} : vector<2x8x6xf32>, vector<2x6x8xf32>, vector<2x8x8xf32> -> vector<2x8x8xf32>
    "tpu.trace_stop"() : () -> ()
    %176 = vector.extract_strided_slice %122 {offsets = [0, 0, 24], sizes = [2, 8, 8], strides = [1, 1, 1]} : vector<2x8x32xf32> to vector<2x8x8xf32>
    %cst_68 = arith.constant 0.353553385 : f32
    %177 = vector.broadcast %cst_68 : f32 to vector<2x8x8xf32>
    %178 = arith.mulf %176, %177 : vector<2x8x8xf32>
    %179 = vector.extract_strided_slice %123 {offsets = [0, 0, 24], sizes = [2, 6, 8], strides = [1, 1, 1]} : vector<2x6x32xf32> to vector<2x6x8xf32>
    %180 = vector.extract_strided_slice %124 {offsets = [0, 0, 24], sizes = [2, 6, 8], strides = [1, 1, 1]} : vector<2x6x32xf32> to vector<2x6x8xf32>
    "tpu.trace_start"() <{level = 10 : i32, message = "bqd,bkd->bqk"}> : () -> ()
    %cst_69 = arith.constant dense<0.000000e+00> : vector<2x8x6xf32>
    %181 = tpu.matmul %178, %179, %cst_69 {dimension_numbers = #tpu.dot_dimension_numbers<[2], [2], [1], [1], [0, 0, 0, 1, 1, 1], [0], [0]>} : vector<2x8x8xf32>, vector<2x6x8xf32>, vector<2x8x6xf32> -> vector<2x8x6xf32>
    "tpu.trace_stop"() : () -> ()
    %cst_70 = arith.constant dense<0xFF800000> : vector<2x8xf32>
    %182 = vector.multi_reduction <maximumf>, %181, %cst_70 [2] : vector<2x8x6xf32> to vector<2x8xf32>
    %183 = vector.shape_cast %182 : vector<2x8xf32> to vector<2x8x1xf32>
    %184 = vector.broadcast %183 : vector<2x8x1xf32> to vector<2x8x6xf32>
    %185 = arith.subf %181, %184 : vector<2x8x6xf32>
    %186 = math.exp %185 : vector<2x8x6xf32>
    %cst_71 = arith.constant dense<0.000000e+00> : vector<2x8xf32>
    %187 = vector.multi_reduction <add>, %186, %cst_71 [2] : vector<2x8x6xf32> to vector<2x8xf32>
    %188 = vector.shape_cast %187 : vector<2x8xf32> to vector<2x8x1xf32>
    %189 = tpu.reciprocal %188 {approx = true} : vector<2x8x1xf32> -> vector<2x8x1xf32>
    %190 = vector.broadcast %189 : vector<2x8x1xf32> to vector<2x8x6xf32>
    %191 = arith.mulf %186, %190 : vector<2x8x6xf32>
    "tpu.trace_start"() <{level = 10 : i32, message = "bqk,bkd->bqd"}> : () -> ()
    %cst_72 = arith.constant dense<0.000000e+00> : vector<2x8x8xf32>
    %192 = tpu.matmul %191, %180, %cst_72 {dimension_numbers = #tpu.dot_dimension_numbers<[2], [1], [1], [2], [0, 0, 0, 1, 1, 2], [0], [0]>} : vector<2x8x6xf32>, vector<2x6x8xf32>, vector<2x8x8xf32> -> vector<2x8x8xf32>
    "tpu.trace_stop"() : () -> ()
    %193 = tpu.concatenate %141, %158, %175, %192 in 2 : vector<2x8x8xf32>, vector<2x8x8xf32>, vector<2x8x8xf32>, vector<2x8x8xf32> -> vector<2x8x32xf32>
    %194 = vector.shape_cast %193 : vector<2x8x32xf32> to vector<16x32xf32>
    %c0_73 = arith.constant 0 : index
    %c0_74 = arith.constant 0 : index
    %195 = vector.load %arg12[%c0_73, %c0_74] : memref<32x32xf32, #tpu.memory_space<vmem>>, vector<32x32xf32>
    %cst_75 = arith.constant dense<0.000000e+00> : vector<16x32xf32>
    %196 = tpu.matmul %194, %195, %cst_75 {dimension_numbers = #tpu.dot_dimension_numbers<[1], [0], [0], [1], [0, 0, 1, 1], [], []>} : vector<16x32xf32>, vector<32x32xf32>, vector<16x32xf32> -> vector<16x32xf32>
    %c0_76 = arith.constant 0 : index
    %c0_77 = arith.constant 0 : index
    %197 = vector.load %arg13[%c0_76, %c0_77] : memref<1x32xf32, #tpu.memory_space<vmem>>, vector<1x32xf32>
    %198 = vector.broadcast %197 : vector<1x32xf32> to vector<16x32xf32>
    %199 = arith.addf %196, %198 : vector<16x32xf32>
    %200 = arith.addf %109, %199 : vector<16x32xf32>
    %c0_78 = arith.constant 0 : index
    %c0_79 = arith.constant 0 : index
    %201 = vector.load %arg14[%c0_78, %c0_79] : memref<1x32xf32, #tpu.memory_space<vmem>>, vector<1x32xf32>
    %c0_80 = arith.constant 0 : index
    %c0_81 = arith.constant 0 : index
    %202 = vector.load %arg15[%c0_80, %c0_81] : memref<1x32xf32, #tpu.memory_space<vmem>>, vector<1x32xf32>
    %cst_82 = arith.constant dense<0.000000e+00> : vector<16xf32>
    %203 = vector.multi_reduction <add>, %200, %cst_82 [1] : vector<16x32xf32> to vector<16xf32>
    %204 = vector.shape_cast %203 : vector<16xf32> to vector<16x1xf32>
    %cst_83 = arith.constant 3.200000e+01 : f32
    %205 = vector.broadcast %cst_83 : f32 to vector<16x1xf32>
    %206 = arith.divf %204, %205 : vector<16x1xf32>
    %207 = vector.broadcast %206 : vector<16x1xf32> to vector<16x32xf32>
    %208 = arith.subf %200, %207 : vector<16x32xf32>
    %209 = arith.mulf %208, %208 : vector<16x32xf32>
    %cst_84 = arith.constant dense<0.000000e+00> : vector<16xf32>
    %210 = vector.multi_reduction <add>, %209, %cst_84 [1] : vector<16x32xf32> to vector<16xf32>
    %211 = vector.shape_cast %210 : vector<16xf32> to vector<16x1xf32>
    %cst_85 = arith.constant 3.200000e+01 : f32
    %212 = vector.broadcast %cst_85 : f32 to vector<16x1xf32>
    %213 = arith.divf %211, %212 : vector<16x1xf32>
    %cst_86 = arith.constant 9.99999974E-6 : f32
    %214 = vector.broadcast %cst_86 : f32 to vector<16x1xf32>
    %215 = arith.addf %213, %214 : vector<16x1xf32>
    %216 = math.rsqrt %215 : vector<16x1xf32>
    %217 = vector.broadcast %216 : vector<16x1xf32> to vector<16x32xf32>
    %218 = arith.mulf %208, %217 : vector<16x32xf32>
    %219 = vector.broadcast %201 : vector<1x32xf32> to vector<16x32xf32>
    %220 = arith.mulf %218, %219 : vector<16x32xf32>
    %221 = vector.broadcast %202 : vector<1x32xf32> to vector<16x32xf32>
    %222 = arith.addf %220, %221 : vector<16x32xf32>
    %c0_87 = arith.constant 0 : index
    %c0_88 = arith.constant 0 : index
    %223 = vector.load %arg16[%c0_87, %c0_88] : memref<32x64xf32, #tpu.memory_space<vmem>>, vector<32x64xf32>
    %cst_89 = arith.constant dense<0.000000e+00> : vector<16x64xf32>
    %224 = tpu.matmul %222, %223, %cst_89 {dimension_numbers = #tpu.dot_dimension_numbers<[1], [0], [0], [1], [0, 0, 1, 1], [], []>} : vector<16x32xf32>, vector<32x64xf32>, vector<16x64xf32> -> vector<16x64xf32>
    %c0_90 = arith.constant 0 : index
    %c0_91 = arith.constant 0 : index
    %225 = vector.load %arg17[%c0_90, %c0_91] : memref<1x64xf32, #tpu.memory_space<vmem>>, vector<1x64xf32>
    %226 = vector.broadcast %225 : vector<1x64xf32> to vector<16x64xf32>
    %227 = arith.addf %224, %226 : vector<16x64xf32>
    %cst_92 = arith.constant 0.000000e+00 : f32
    %228 = vector.broadcast %cst_92 : f32 to vector<16x64xf32>
    %229 = arith.maximumf %227, %228 : vector<16x64xf32>
    %c0_93 = arith.constant 0 : index
    %c0_94 = arith.constant 0 : index
    %230 = vector.load %arg18[%c0_93, %c0_94] : memref<64x32xf32, #tpu.memory_space<vmem>>, vector<64x32xf32>
    %cst_95 = arith.constant dense<0.000000e+00> : vector<16x32xf32>
    %231 = tpu.matmul %229, %230, %cst_95 {dimension_numbers = #tpu.dot_dimension_numbers<[1], [0], [0], [1], [0, 0, 1, 1], [], []>} : vector<16x64xf32>, vector<64x32xf32>, vector<16x32xf32> -> vector<16x32xf32>
    %c0_96 = arith.constant 0 : index
    %c0_97 = arith.constant 0 : index
    %232 = vector.load %arg19[%c0_96, %c0_97] : memref<1x32xf32, #tpu.memory_space<vmem>>, vector<1x32xf32>
    %233 = vector.broadcast %232 : vector<1x32xf32> to vector<16x32xf32>
    %234 = arith.addf %231, %233 : vector<16x32xf32>
    %235 = arith.addf %222, %234 : vector<16x32xf32>
    %c0_98 = arith.constant 0 : index
    %c0_99 = arith.constant 0 : index
    %236 = vector.load %arg20[%c0_98, %c0_99] : memref<1x32xf32, #tpu.memory_space<vmem>>, vector<1x32xf32>
    %c0_100 = arith.constant 0 : index
    %c0_101 = arith.constant 0 : index
    %237 = vector.load %arg21[%c0_100, %c0_101] : memref<1x32xf32, #tpu.memory_space<vmem>>, vector<1x32xf32>
    %cst_102 = arith.constant dense<0.000000e+00> : vector<16xf32>
    %238 = vector.multi_reduction <add>, %235, %cst_102 [1] : vector<16x32xf32> to vector<16xf32>
    %239 = vector.shape_cast %238 : vector<16xf32> to vector<16x1xf32>
    %cst_103 = arith.constant 3.200000e+01 : f32
    %240 = vector.broadcast %cst_103 : f32 to vector<16x1xf32>
    %241 = arith.divf %239, %240 : vector<16x1xf32>
    %242 = vector.broadcast %241 : vector<16x1xf32> to vector<16x32xf32>
    %243 = arith.subf %235, %242 : vector<16x32xf32>
    %244 = arith.mulf %243, %243 : vector<16x32xf32>
    %cst_104 = arith.constant dense<0.000000e+00> : vector<16xf32>
    %245 = vector.multi_reduction <add>, %244, %cst_104 [1] : vector<16x32xf32> to vector<16xf32>
    %246 = vector.shape_cast %245 : vector<16xf32> to vector<16x1xf32>
    %cst_105 = arith.constant 3.200000e+01 : f32
    %247 = vector.broadcast %cst_105 : f32 to vector<16x1xf32>
    %248 = arith.divf %246, %247 : vector<16x1xf32>
    %cst_106 = arith.constant 9.99999974E-6 : f32
    %249 = vector.broadcast %cst_106 : f32 to vector<16x1xf32>
    %250 = arith.addf %248, %249 : vector<16x1xf32>
    %251 = math.rsqrt %250 : vector<16x1xf32>
    %252 = vector.broadcast %251 : vector<16x1xf32> to vector<16x32xf32>
    %253 = arith.mulf %243, %252 : vector<16x32xf32>
    %254 = vector.broadcast %236 : vector<1x32xf32> to vector<16x32xf32>
    %255 = arith.mulf %253, %254 : vector<16x32xf32>
    %256 = vector.broadcast %237 : vector<1x32xf32> to vector<16x32xf32>
    %257 = arith.addf %255, %256 : vector<16x32xf32>
    %258 = vector.shape_cast %257 : vector<16x32xf32> to vector<2x8x32xf32>
    %c0_107 = arith.constant 0 : index
    %c0_108 = arith.constant 0 : index
    %c0_109 = arith.constant 0 : index
    %259 = vector.load %arg22[%c0_107, %c0_108, %c0_109] : memref<2x8x32xf32, #tpu.memory_space<vmem>>, vector<2x8x32xf32>
    tpu.vector_store %arg22[%c0_107, %c0_108, %c0_109], %258 {strides = array<i32>} : memref<2x8x32xf32, #tpu.memory_space<vmem>>, vector<2x8x32xf32>,
    return
  }
}

</mosaic_0001>

<bundles_post_ra>
// kernel: transformer_forward.12
= control target key start
LH: loop header
LB: loop body
LE: loop exit
PB: predicated region body
PF: predicated region fallthrough
CT: control target
= control target key end

     0   :  { %vm57_vm0 = vcmask 261120   ;;  %v2204_v8 = vmov 0.0   ;;  %vm2205_vm1 = vmmov 0   ;;  %vm144_vm2 = vcmask 64512   ;;  %s2208_s21 = smov 88   ;;  %s2209_s22 = smov 120   ;;  %s2546_s1 = inlined_call_operand.vmem [shape: f32[32,96], index: 1, kind: input, shape index: {}]   ;;  %s2547_s0 = inlined_call_operand.vmem [shape: f32[2,8,32], index: 0, kind: input, shape index: {}]   ;;  %s2548_s2 = inlined_call_operand.vmem [shape: f32[1,96], index: 2, kind: input, shape index: {}]   ;;  %s2549_s3 = inlined_call_operand.vmem [shape: f32[32,32], index: 3, kind: input, shape index: {}]   ;;  %s2550_s4 = inlined_call_operand.vmem [shape: f32[1,32], index: 4, kind: input, shape index: {}]   ;;  %s2551_s7 = inlined_call_operand.vmem [shape: f32[32,64], index: 7, kind: input, shape index: {}]   ;;  %s2552_s9 = inlined_call_operand.vmem [shape: f32[64,32], index: 9, kind: input, shape index: {}]   ;;  %s2553_s5 = inlined_call_operand.vmem [shape: f32[1,32], index: 5, kind: input, shape index: {}]   ;;  %s2554_s6 = inlined_call_operand.vmem [shape: f32[1,32], index: 6, kind: input, shape index: {}]   ;;  %s2555_s8 = inlined_call_operand.vmem [shape: f32[1,64], index: 8, kind: input, shape index: {}]   ;;  %s2556_s10 = inlined_call_operand.vmem [shape: f32[1,32], index: 10, kind: input, shape index: {}]   ;;  %s2557_s11 = inlined_call_operand.vmem [shape: f32[1,32], index: 11, kind: input, shape index: {}]   ;;  %s2558_s12 = inlined_call_operand.vmem [shape: f32[1,32], index: 12, kind: input, shape index: {}]   ;;  %s2559_s13 = inlined_call_operand.vmem [shape: f32[2,8,32], index: 13, kind: output, shape index: {}]  }
   0x1   :  { %v46_v0 = vld [vmem:[%s2546_s1] sm:$0xff]  ;;  %v47_v1 = vld [vmem:[%s2546_s1 + $0x8] sm:$0xff]  ;;  %v48_v2 = vld [vmem:[%s2546_s1 + $0x10] sm:$0xff]  ;;  %1997 = vmatprep.subr.mxu0 %v2204_v8  ;;  %1999 = vmatprep.mubr.msk.f32.mxu0 %vm2205_vm1, %v2204_v8  ;;  %s2210_s23 = smov 56   ;;  %s2211_s24 = smov 80   ;;  %vm1491_vm3 = vcmask 195584  }
   0x2   :  { %v2108_v3 = vpack.c.bf16 %v47_v1, %v46_v0  ;;  %v49_v4 = vld [vmem:[%s2546_s1 + $0x18] sm:$0xff]  ;;  %v2305_v5 = vld [vmem:[%s2547_s0] sm:$0xff]  ;;  %v2312_v7 = vld [vmem:[%s2547_s0 + $0x8] sm:$0xff]  ;;  %s2206_s0 = smov 96   ;;  %s2212_s25 = smov 112   ;;  %vm1488_vm4 = vcmask 130048  }
   0x3   :  { %v2112_v6 = vpack.c.bf16 %v49_v4, %v48_v2  ;;  %1984 = vmatprep.mubr.msk.f32.mxu1 %vm57_vm0, %v2305_v5  ;;  %v1876_v9 = vld [vmem:[%s2548_s2] ss:$0 sm:$0xff]  ;;  %s2207_s2 = smov 64   ;;  %s2213_s26 = smov 48   ;;  %vm1742_vm5 = vcmask 523264  }
   0x4   :  { %2109 = vmatprep.subr.bf16.mxu1 %v2108_v3  ;;  %s2214_s27 = smov 72   ;;  %s2215_s28 = smov 104  }
   0x5   :  { %2111 = vmatpush3.bf16.msra.mxu1 %v2108_v3  ;;  %s2216_s29 = smov 40   ;;  %s2217_s30 = smov 8  }
   0x6   :  { %2113 = vmatprep.subr.bf16.mxu1 %v2112_v6  ;;  %s2218_s14 = smov 16  }
   0x9   :  { %2115 = vmatpush3.bf16.msra.mxu1 %v2112_v6 }
   0xa   :  { %1987 = vmatprep.subr.mxu1 %v2204_v8 }
   0xc   :  { %1985 = vmatmul.mubr.msk.f32.vlgmr.msra.gmra.mrb[0].mxu1 %vm57_vm0, %v2312_v7 }
   0xd   :  { %1989 = vmatprep.mubr.msk.f32.mxu1 %vm2205_vm1, %v2204_v8 }
  0xdf   :  { %v1986_v10 = vpop.f32.mrb[0].mxu1 }
  0xe0   :  { %v130_v11 = vpop.f32.mrb[1].mxu1  ;;  %v2328_v13 = vadd.f32 %v1986_v10, %v1876_v9 }
  0xe1   :  { %v2325_v12 = vadd.f32 %v1876_v9, %v130_v11 }
  0xe2   :  { %v2342_v17 = vmul.f32 0.35355338, %v2328_v13 }
  0xe3   :  { %142 = vrot.lane.b32.xlu0 %v2325_v12, %s2206_s0  ;;  %v2334_v15 = vmul.f32 0.35355338, %v2325_v12 }
  0xe7   :  { %221 = vrot.lane.b32.xlu0 %v2328_v13, %s2206_s0 }
 0x155   :  { %v143_v14 = vpop.permute.xlu0 %142 }
 0x156   :  { %1988 = vmatpush3.xpose.msk.msra.mxu1 %vm144_vm2, %v143_v14 }
 0x157   :  { %1992 = vmatprep.subr.mxu1 %v2204_v8 }
 0x159   :  { %v222_v16 = vpop.permute.xlu0 %221  ;;  %1990 = vmatmul.mubr.msk.f32.vlgmr.msra.gmra.mrb[2].mxu1 %vm144_vm2, %v2334_v15 }
 0x15a   :  { %1993 = vmatpush3.xpose.msk.msra.mxu1 %vm144_vm2, %v222_v16  ;;  %1994 = vmatprep.mubr.msk.f32.mxu1 %vm2205_vm1, %v2204_v8 }
 0x15b   :  { %2002 = vmatprep.subr.mxu1 %v2204_v8 }
 0x15d   :  { %1995 = vmatmul.mubr.msk.f32.vlgmr.msra.gmra.mrb[4].mxu1 %vm144_vm2, %v2342_v17 }
 0x15e   :  { %2004 = vmatprep.mubr.msk.f32.mxu1 %vm2205_vm1, %v2204_v8 }
 0x22c   :  { %v216_v18 = vpop.f32.mrb[2].mxu1 }
 0x22d   :  { %v1991_v19 = vpop.f32.mrb[3].mxu1  ;;  %v298_v20 = vsel %vm144_vm2, %v216_v18, -inf }
 0x22e   :  { %299 = vmax.xlane.f32.xlu1 %v298_v20 }
 0x230   :  { %v294_v21 = vpop.f32.mrb[4].mxu1 }
 0x231   :  { %v1996_v22 = vpop.f32.mrb[5].mxu1  ;;  %v301_v23 = vsel %vm144_vm2, %v294_v21, -inf }
 0x232   :  { %302 = vmax.xlane.f32.xlu1 %v301_v23 }
 0x243   :  { %320 = vrot.lane.b32.xlu1 %v2325_v12, %s2207_s2 }
 0x247   :  { %396 = vrot.lane.b32.xlu1 %v2328_v13, %s2207_s2  ;;  %s2219_s2 = smov 24  }
 0x24b   :  { %474 = vrot.lane.b32.xlu1 %v2325_v12, %s2208_s21 }
 0x24f   :  { %552 = vrot.lane.b32.xlu1 %v2328_v13, %s2208_s21 }
 0x2bb   :  { %v300_v24 = vpop.xlane.xlu1 %299 }
 0x2bc   :  { %v304_v25 = vsub.f32 %v216_v18, %v300_v24 }
 0x2be   :  { %v306_v26 = vmul.f32 1.442695, %v304_v25 }
 0x2bf   :  { %v303_v27 = vpop.xlane.xlu1 %302 }
 0x2c0   :  { %2164 = vpow2.f32 %v306_v26  ;;  %v305_v28 = vsub.f32 %v294_v21, %v303_v27 }
 0x2c2   :  { %v308_v29 = vmul.f32 1.442695, %v305_v28 }
 0x2c3   :  { %v321_v30 = vpop.permute.xlu1 %320 }
 0x2c4   :  { %2166 = vpow2.f32 %v308_v29  ;;  %1998 = vmatpush3.msra.mxu0 %v321_v30 }
 0x2c5   :  { %2007 = vmatprep.subr.mxu0 %v2204_v8 }
 0x2c7   :  { %v397_v31 = vpop.permute.xlu1 %396 }
 0x2c8   :  { %2003 = vmatpush3.msra.mxu1 %v397_v31 }
 0x2c9   :  { %2012 = vmatprep.subr.mxu1 %v2204_v8 }
 0x2ca   :  { %v2165_v32 = vpop.eup %2164 }
 0x2cb   :  { %v310_v33 = vsel %vm144_vm2, %v2165_v32, 0.0  ;;  %v475_v36 = vpop.permute.xlu1 %474 }
 0x2cc   :  { %311 = vadd.xlane.f32.xlu0 %v310_v33 }
 0x2ce   :  { %v2167_v34 = vpop.eup %2166 }
 0x2cf   :  { %v313_v35 = vsel %vm144_vm2, %v2167_v34, 0.0  ;;  %v553_v37 = vpop.permute.xlu1 %552 }
 0x2d0   :  { %314 = vadd.xlane.f32.xlu1 %v313_v35 }
 0x2e1   :  { %550 = vrot.lane.b32.xlu1 %v2342_v17, %s2209_s22 }
 0x2e2   :  { %472 = vrot.lane.b32.xlu0 %v2334_v15, %s2209_s22 }
 0x359   :  { %v312_v38 = vpop.xlane.xlu0 %311 }
 0x35a   :  { %2168 = vrcp.f32 %v312_v38 }
 0x35d   :  { %v315_v39 = vpop.xlane.xlu1 %314  ;;  %v473_v44 = vpop.permute.xlu0 %472 }
 0x35e   :  { %2170 = vrcp.f32 %v315_v39 }
 0x361   :  { %v551_v45 = vpop.permute.xlu1 %550 }
 0x364   :  { %v2169_v40 = vpop.eup %2168 }
 0x365   :  { %v318_v41 = vmul.f32 %v2169_v40, %v2165_v32 }
 0x367   :  { %2000 = vmatmul.mubr.msk.f32.vlgmr.msra.gmra.mrb[0].mxu0 %vm144_vm2, %v318_v41 }
 0x368   :  { %v2171_v42 = vpop.eup %2170  ;;  %2008 = vmatpush3.xpose.msk.msra.mxu0 %vm144_vm2, %v475_v36  ;;  %2009 = vmatprep.mubr.msk.f32.mxu0 %vm2205_vm1, %v2204_v8 }
 0x369   :  { %v319_v43 = vmul.f32 %v2171_v42, %v2167_v34  ;;  %2017 = vmatprep.subr.mxu0 %v2204_v8 }
 0x36b   :  { %2005 = vmatmul.mubr.msk.f32.vlgmr.msra.gmra.mrb[6].mxu1 %vm144_vm2, %v319_v43  ;;  %2010 = vmatmul.mubr.msk.f32.vlgmr.msra.gmra.mrb[2].mxu0 %vm144_vm2, %v473_v44 }
 0x36c   :  { %2013 = vmatpush3.xpose.msk.msra.mxu1 %vm144_vm2, %v553_v37  ;;  %2014 = vmatprep.mubr.msk.f32.mxu1 %vm2205_vm1, %v2204_v8 }
 0x36d   :  { %2022 = vmatprep.subr.mxu1 %v2204_v8  ;;  %2019 = vmatprep.mubr.msk.f32.mxu0 %vm2205_vm1, %v2204_v8 }
 0x36f   :  { %2015 = vmatmul.mubr.msk.f32.vlgmr.msra.gmra.mrb[8].mxu1 %vm144_vm2, %v551_v45 }
 0x370   :  { %2024 = vmatprep.mubr.msk.f32.mxu1 %vm2205_vm1, %v2204_v8 }
 0x43a   :  { %v2377_v46 = vpop.f32.mrb[0].mxu0 }
 0x43b   :  { %v2001_v47 = vpop.f32.mrb[1].mxu0 }
 0x43e   :  { %v2379_v48 = vpop.f32.mrb[6].mxu1  ;;  %v546_v49 = vpop.f32.mrb[2].mxu0 }
 0x43f   :  { %v2006_v50 = vpop.f32.mrb[7].mxu1  ;;  %v2011_v51 = vpop.f32.mrb[3].mxu0  ;;  %v628_v52 = vsel %vm144_vm2, %v546_v49, -inf }
 0x440   :  { %629 = vmax.xlane.f32.xlu1 %v628_v52 }
 0x442   :  { %v624_v53 = vpop.f32.mrb[8].mxu1 }
 0x443   :  { %v2016_v54 = vpop.f32.mrb[9].mxu1  ;;  %v631_v55 = vsel %vm144_vm2, %v624_v53, -inf }
 0x444   :  { %632 = vmax.xlane.f32.xlu0 %v631_v55 }
 0x451   :  { %650 = vrot.lane.b32.xlu1 %v2325_v12, %s2210_s23 }
 0x455   :  { %804 = vrot.lane.b32.xlu1 %v2325_v12, %s2211_s24 }
 0x459   :  { %882 = vrot.lane.b32.xlu1 %v2328_v13, %s2211_s24 }
 0x45a   :  { %726 = vrot.lane.b32.xlu0 %v2328_v13, %s2210_s23 }
 0x45e   :  { %802 = vrot.lane.b32.xlu0 %v2334_v15, %s2212_s25 }
 0x4cd   :  { %v630_v56 = vpop.xlane.xlu1 %629 }
 0x4ce   :  { %v634_v57 = vsub.f32 %v546_v49, %v630_v56 }
 0x4d0   :  { %v636_v58 = vmul.f32 1.442695, %v634_v57 }
 0x4d1   :  { %v651_v59 = vpop.permute.xlu1 %650  ;;  %v633_v60 = vpop.xlane.xlu0 %632 }
 0x4d2   :  { %2172 = vpow2.f32 %v636_v58  ;;  %v635_v61 = vsub.f32 %v624_v53, %v633_v60  ;;  %2018 = vmatpush3.msra.mxu0 %v651_v59 }
 0x4d3   :  { %2027 = vmatprep.subr.mxu0 %v2204_v8 }
 0x4d4   :  { %v638_v62 = vmul.f32 1.442695, %v635_v61 }
 0x4d5   :  { %v727_v63 = vpop.permute.xlu0 %726  ;;  %v805_v4 = vpop.permute.xlu1 %804 }
 0x4d6   :  { %2174 = vpow2.f32 %v638_v62  ;;  %2023 = vmatpush3.msra.mxu1 %v727_v63 }
 0x4d7   :  { %2032 = vmatprep.subr.mxu1 %v2204_v8 }
 0x4d9   :  { %v883_v6 = vpop.permute.xlu1 %882  ;;  %v803_v19 = vpop.permute.xlu0 %802 }
 0x4dc   :  { %v2173_v0 = vpop.eup %2172 }
 0x4dd   :  { %v640_v1 = vsel %vm144_vm2, %v2173_v0, 0.0 }
 0x4de   :  { %641 = vadd.xlane.f32.xlu1 %v640_v1 }
 0x4e0   :  { %v2175_v2 = vpop.eup %2174 }
 0x4e1   :  { %v643_v3 = vsel %vm144_vm2, %v2175_v2, 0.0 }
 0x4e2   :  { %644 = vadd.xlane.f32.xlu1 %v643_v3 }
 0x4f3   :  { %880 = vrot.lane.b32.xlu1 %v2342_v17, %s2212_s25 }
 0x56b   :  { %v642_v9 = vpop.xlane.xlu1 %641 }
 0x56c   :  { %2176 = vrcp.f32 %v642_v9 }
 0x56f   :  { %v645_v10 = vpop.xlane.xlu1 %644 }
 0x570   :  { %2178 = vrcp.f32 %v645_v10 }
 0x573   :  { %v881_v20 = vpop.permute.xlu1 %880 }
 0x576   :  { %v2177_v11 = vpop.eup %2176 }
 0x577   :  { %v648_v14 = vmul.f32 %v2177_v11, %v2173_v0 }
 0x579   :  { %2020 = vmatmul.mubr.msk.f32.vlgmr.msra.gmra.mrb[4].mxu0 %vm144_vm2, %v648_v14 }
 0x57a   :  { %v2179_v16 = vpop.eup %2178  ;;  %2028 = vmatpush3.xpose.msk.msra.mxu0 %vm144_vm2, %v805_v4  ;;  %2029 = vmatprep.mubr.msk.f32.mxu0 %vm2205_vm1, %v2204_v8 }
 0x57b   :  { %v649_v18 = vmul.f32 %v2179_v16, %v2175_v2  ;;  %2037 = vmatprep.subr.mxu0 %v2204_v8 }
 0x57d   :  { %2025 = vmatmul.mubr.msk.f32.vlgmr.msra.gmra.mrb[10].mxu1 %vm144_vm2, %v649_v18  ;;  %2030 = vmatmul.mubr.msk.f32.vlgmr.msra.gmra.mrb[6].mxu0 %vm144_vm2, %v803_v19 }
 0x57e   :  { %2033 = vmatpush3.xpose.msk.msra.mxu1 %vm144_vm2, %v883_v6  ;;  %2034 = vmatprep.mubr.msk.f32.mxu1 %vm2205_vm1, %v2204_v8 }
 0x57f   :  { %2042 = vmatprep.subr.mxu1 %v2204_v8  ;;  %2039 = vmatprep.mubr.msk.f32.mxu0 %vm2205_vm1, %v2204_v8 }
 0x581   :  { %2035 = vmatmul.mubr.msk.f32.vlgmr.msra.gmra.mrb[12].mxu1 %vm144_vm2, %v881_v20 }
 0x582   :  { %2044 = vmatprep.mubr.msk.f32.mxu1 %vm2205_vm1, %v2204_v8 }
 0x64c   :  { %v2409_v21 = vpop.f32.mrb[4].mxu0 }
 0x64d   :  { %v2021_v22 = vpop.f32.mrb[5].mxu0 }
 0x64e   :  { %v1494_v22 = vld [vmem:[%s2549_s3] sm:$0xff] }
 0x650   :  { %v2411_v23 = vpop.f32.mrb[10].mxu1  ;;  %v876_v24 = vpop.f32.mrb[6].mxu0 }
 0x651   :  { %v2026_v25 = vpop.f32.mrb[11].mxu1  ;;  %v2031_v26 = vpop.f32.mrb[7].mxu0  ;;  %v958_v27 = vsel %vm144_vm2, %v876_v24, -inf }
 0x652   :  { %959 = vmax.xlane.f32.xlu0 %v958_v27  ;;  %v1497_v25 = vld [vmem:[%s2549_s3 + $0x18] sm:$0xff] }
 0x654   :  { %v954_v28 = vpop.f32.mrb[12].mxu1 }
 0x655   :  { %v2036_v29 = vpop.f32.mrb[13].mxu1  ;;  %v961_v30 = vsel %vm144_vm2, %v954_v28, -inf }
 0x656   :  { %962 = vmax.xlane.f32.xlu1 %v961_v30 }
 0x667   :  { %980 = vrot.lane.b32.xlu1 %v2325_v12, %s2213_s26 }
 0x668   :  { %1056 = vrot.lane.b32.xlu0 %v2328_v13, %s2213_s26 }
 0x66b   :  { %1134 = vrot.lane.b32.xlu1 %v2325_v12, %s2214_s27 }
 0x66f   :  { %1212 = vrot.lane.b32.xlu1 %v2328_v13, %s2214_s27 }
 0x673   :  { %1210 = vrot.lane.b32.xlu1 %v2342_v17, %s2215_s28 }
 0x6df   :  { %v960_v31 = vpop.xlane.xlu0 %959 }
 0x6e0   :  { %v964_v32 = vsub.f32 %v876_v24, %v960_v31  ;;  %v1496_v24 = vld [vmem:[%s2549_s3 + $0x10] sm:$0xff] }
 0x6e1   :  { %v2120_v26 = vpack.c.bf16 %v1497_v25, %v1496_v24 }
 0x6e2   :  { %v966_v33 = vmul.f32 1.442695, %v964_v32 }
 0x6e3   :  { %v1057_v34 = vpop.permute.xlu0 %1056  ;;  %v963_v35 = vpop.xlane.xlu1 %962 }
 0x6e4   :  { %2180 = vpow2.f32 %v966_v33  ;;  %v965_v36 = vsub.f32 %v954_v28, %v963_v35  ;;  %2043 = vmatpush3.msra.mxu1 %v1057_v34 }
 0x6e5   :  { %2052 = vmatprep.subr.mxu1 %v2204_v8 }
 0x6e6   :  { %v968_v37 = vmul.f32 1.442695, %v965_v36 }
 0x6e7   :  { %v981_v38 = vpop.permute.xlu1 %980 }
 0x6e8   :  { %2182 = vpow2.f32 %v968_v37  ;;  %2038 = vmatpush3.msra.mxu0 %v981_v38 }
 0x6e9   :  { %2047 = vmatprep.subr.mxu0 %v2204_v8 }
 0x6eb   :  { %v1135_v44 = vpop.permute.xlu1 %1134 }
 0x6ee   :  { %v2181_v39 = vpop.eup %2180 }
 0x6ef   :  { %v970_v40 = vsel %vm144_vm2, %v2181_v39, 0.0  ;;  %v1213_v50 = vpop.permute.xlu1 %1212 }
 0x6f0   :  { %971 = vadd.xlane.f32.xlu0 %v970_v40 }
 0x6f2   :  { %v2183_v17 = vpop.eup %2182 }
 0x6f3   :  { %v973_v41 = vsel %vm144_vm2, %v2183_v17, 0.0  ;;  %v1211_v52 = vpop.permute.xlu1 %1210 }
 0x6f4   :  { %974 = vadd.xlane.f32.xlu0 %v973_v41 }
 0x70a   :  { %1132 = vrot.lane.b32.xlu0 %v2334_v15, %s2215_s28 }
 0x77d   :  { %v972_v42 = vpop.xlane.xlu0 %971 }
 0x77e   :  { %2184 = vrcp.f32 %v972_v42  ;;  %v1903_v42 = vld [vmem:[%s2550_s4] ss:$0 sm:$0xff] }
 0x781   :  { %v975_v43 = vpop.xlane.xlu0 %974 }
 0x782   :  { %2186 = vrcp.f32 %v975_v43 }
 0x785   :  { %v1133_v15 = vpop.permute.xlu0 %1132 }
 0x788   :  { %v2185_v45 = vpop.eup %2184 }
 0x789   :  { %v978_v47 = vmul.f32 %v2185_v45, %v2181_v39 }
 0x78b   :  { %2040 = vmatmul.mubr.msk.f32.vlgmr.msra.gmra.mrb[8].mxu0 %vm144_vm2, %v978_v47 }
 0x78c   :  { %v2187_v49 = vpop.eup %2186  ;;  %2048 = vmatpush3.xpose.msk.msra.mxu0 %vm144_vm2, %v1135_v44  ;;  %2049 = vmatprep.mubr.msk.f32.mxu0 %vm2205_vm1, %v2204_v8 }
 0x78d   :  { %v979_v51 = vmul.f32 %v2187_v49, %v2183_v17  ;;  %2057 = vmatprep.subr.mxu0 %v2204_v8 }
 0x78f   :  { %2045 = vmatmul.mubr.msk.f32.vlgmr.msra.gmra.mrb[14].mxu1 %vm144_vm2, %v979_v51  ;;  %2050 = vmatmul.mubr.msk.f32.vlgmr.msra.gmra.mrb[10].mxu0 %vm144_vm2, %v1133_v15 }
 0x790   :  { %2053 = vmatpush3.xpose.msk.msra.mxu1 %vm144_vm2, %v1213_v50  ;;  %2054 = vmatprep.mubr.msk.f32.mxu1 %vm2205_vm1, %v2204_v8 }
 0x791   :  { %2062 = vmatprep.subr.mxu1 %v2204_v8  ;;  %2059 = vmatprep.mubr.msk.f32.mxu0 %vm2205_vm1, %v2204_v8 }
 0x793   :  { %2055 = vmatmul.mubr.msk.f32.vlgmr.msra.gmra.mrb[16].mxu1 %vm144_vm2, %v1211_v52 }
 0x794   :  { %2064 = vmatprep.mubr.msk.f32.mxu1 %vm2205_vm1, %v2204_v8 }
 0x85e   :  { %v1052_v53 = vpop.f32.mrb[8].mxu0 }
 0x85f   :  { %v2041_v54 = vpop.f32.mrb[9].mxu0 }
 0x862   :  { %v1128_v55 = vpop.f32.mrb[14].mxu1  ;;  %v1206_v56 = vpop.f32.mrb[10].mxu0 }
 0x863   :  { %v2046_v57 = vpop.f32.mrb[15].mxu1  ;;  %v2051_v58 = vpop.f32.mrb[11].mxu0  ;;  %v1288_v59 = vsel %vm144_vm2, %v1206_v56, -inf }
 0x864   :  { %1289 = vmax.xlane.f32.xlu0 %v1288_v59  ;;  %v1634_v59 = vld [vmem:[%s2551_s7 + $0x8] sm:$0xff] }
 0x866   :  { %v1284_v60 = vpop.f32.mrb[16].mxu1 }
 0x867   :  { %v2056_v61 = vpop.f32.mrb[17].mxu1  ;;  %v1291_v62 = vsel %vm144_vm2, %v1284_v60, -inf }
 0x868   :  { %1292 = vmax.xlane.f32.xlu1 %v1291_v62  ;;  %v1635_v61 = vld [vmem:[%s2551_s7 + $0x10] sm:$0xff]  ;;  %v1636_v62 = vld [vmem:[%s2551_s7 + $0x18] sm:$0xff] }
 0x879   :  { %1310 = vrot.lane.b32.xlu1 %v2325_v12, %s2216_s29 }
 0x87d   :  { %1464 = vrot.lane.b32.xlu1 %v2409_v21, %s2217_s30 }
 0x881   :  { %1466 = vrot.lane.b32.xlu1 %v2411_v23, %s2217_s30 }
 0x885   :  { %1474 = vrot.lane.b32.xlu1 %v1128_v55, %s2218_s14 }
 0x8f1   :  { %v1290_v8 = vpop.xlane.xlu0 %1289 }
 0x8f2   :  { %v1294_v63 = vsub.f32 %v1206_v56, %v1290_v8  ;;  %v2128_v8 = vpack.c.bf16 %v1636_v62, %v1635_v61  ;;  %v1914_v61 = vld [vmem:[%s2557_s11] ss:$0 sm:$0xff] }
 0x8f4   :  { %v1296_v0 = vmul.f32 1.442695, %v1294_v63  ;;  %v1727_v63 = vld [vmem:[%s2552_s9] sm:$0xff] }
 0x8f5   :  { %v1293_v1 = vpop.xlane.xlu1 %1292 }
 0x8f6   :  { %2188 = vpow2.f32 %v1296_v0  ;;  %v1295_v2 = vsub.f32 %v1284_v60, %v1293_v1  ;;  %v1728_v0 = vld [vmem:[%s2552_s9 + $0x8] sm:$0xff]  ;;  %v1729_v1 = vld [vmem:[%s2552_s9 + $0x10] sm:$0xff] }
 0x8f8   :  { %v1298_v3 = vmul.f32 1.442695, %v1295_v2  ;;  %v2132_v2 = vpack.c.bf16 %v1728_v0, %v1727_v63  ;;  %v1915_v63 = vld [vmem:[%s2558_s12] ss:$0 sm:$0xff] }
 0x8f9   :  { %v1311_v4 = vpop.permute.xlu1 %1310 }
 0x8fa   :  { %2190 = vpow2.f32 %v1298_v3  ;;  %2058 = vmatpush3.msra.mxu0 %v1311_v4  ;;  %v1730_v3 = vld [vmem:[%s2552_s9 + $0x18] sm:$0xff] }
 0x8fb   :  { %v2136_v4 = vpack.c.bf16 %v1730_v3, %v1729_v1 }
 0x8fd   :  { %v1465_v31 = vpop.permute.xlu1 %1464 }
 0x8fe   :  { %v1486_v34 = vsel %vm144_vm2, %v2377_v46, %v1465_v31 }
 0x900   :  { %v2189_v6 = vpop.eup %2188 }
 0x901   :  { %v1300_v12 = vsel %vm144_vm2, %v2189_v6, 0.0  ;;  %v1467_v32 = vpop.permute.xlu1 %1466 }
 0x902   :  { %1301 = vadd.xlane.f32.xlu0 %v1300_v12  ;;  %v1487_v39 = vsel %vm144_vm2, %v2379_v48, %v1467_v32  ;;  %v1732_v12 = vld [vmem:[%s2552_s9 + $0x28] sm:$0xff]  ;;  %v1908_v32 = vld [vmem:[%s2555_s8] ss:$0 sm:$0xff] }
 0x904   :  { %v2191_v9 = vpop.eup %2190 }
 0x905   :  { %v1303_v10 = vsel %vm144_vm2, %v2191_v9, 0.0  ;;  %v1475_v35 = vpop.permute.xlu1 %1474 }
 0x906   :  { %1304 = vadd.xlane.f32.xlu0 %v1303_v10  ;;  %v1490_v40 = vsel %vm1488_vm4, %v1487_v39, %v1475_v35  ;;  %v1911_v39 = vld [vmem:[%s2556_s10] ss:$0 sm:$0xff] }
 0x91c   :  { %1386 = vrot.lane.b32.xlu0 %v2328_v13, %s2216_s29  ;;  %v1495_v13 = vld [vmem:[%s2549_s3 + $0x8] sm:$0xff] }
 0x91d   :  { %v2116_v23 = vpack.c.bf16 %v1495_v13, %v1494_v22  ;;  %v1907_v13 = vld [vmem:[%s2554_s6] ss:$0 sm:$0xff] }
 0x91f   :  { %2117 = vmatprep.subr.bf16.mxu0 %v2116_v23 }
 0x920   :  { %1472 = vrot.lane.b32.xlu0 %v1052_v53, %s2218_s14 }
 0x98f   :  { %v1302_v11 = vpop.xlane.xlu0 %1301 }
 0x990   :  { %2192 = vrcp.f32 %v1302_v11 }
 0x993   :  { %v1305_v14 = vpop.xlane.xlu0 %1304 }
 0x994   :  { %2194 = vrcp.f32 %v1305_v14 }
 0x997   :  { %v1387_v16 = vpop.permute.xlu0 %1386 }
 0x998   :  { %2063 = vmatpush3.msra.mxu1 %v1387_v16 }
 0x99a   :  { %v2193_v18 = vpop.eup %2192 }
 0x99b   :  { %v1308_v19 = vmul.f32 %v2193_v18, %v2189_v6  ;;  %v1473_v33 = vpop.permute.xlu0 %1472  ;;  %v1731_v6 = vld [vmem:[%s2552_s9 + $0x20] sm:$0xff] }
 0x99c   :  { %v1489_v36 = vsel %vm1488_vm4, %v1486_v34, %v1473_v33 }
 0x99d   :  { %2060 = vmatmul.mubr.msk.f32.vlgmr.msra.gmra.mrb[12].mxu0 %vm144_vm2, %v1308_v19 }
 0x99e   :  { %v2195_v20 = vpop.eup %2194  ;;  %2119 = vmatpush3.bf16.msra.mxu0 %v2116_v23 }
 0x99f   :  { %v1309_v21 = vmul.f32 %v2195_v20, %v2191_v9  ;;  %2121 = vmatprep.subr.bf16.mxu0 %v2120_v26  ;;  %v2140_v9 = vpack.c.bf16 %v1732_v12, %v1731_v6 }
 0x9a1   :  { %2065 = vmatmul.mubr.msk.f32.vlgmr.msra.gmra.mrb[18].mxu1 %vm144_vm2, %v1309_v21  ;;  %v1906_v21 = vld [vmem:[%s2553_s5] ss:$0 sm:$0xff] }
 0x9a2   :  { %2123 = vmatpush3.bf16.msra.mxu0 %v2120_v26 }
 0x9a3   :  { %2133 = vmatprep.subr.bf16.mxu0 %v2132_v2 }
 0xa70   :  { %v1382_v27 = vpop.f32.mrb[12].mxu0 }
 0xa71   :  { %1480 = vrot.lane.b32.xlu0 %v1382_v27, %s2219_s2  ;;  %v2061_v28 = vpop.f32.mrb[13].mxu0 }
 0xa74   :  { %v1458_v29 = vpop.f32.mrb[18].mxu1 }
 0xa75   :  { %1482 = vrot.lane.b32.xlu1 %v1458_v29, %s2219_s2  ;;  %v2066_v30 = vpop.f32.mrb[19].mxu1  ;;  %v1733_v29 = vld [vmem:[%s2552_s9 + $0x30] sm:$0xff] }
 0xa76   :  { %v1734_v30 = vld [vmem:[%s2552_s9 + $0x38] sm:$0xff] }
 0xa77   :  { %v2144_v31 = vpack.c.bf16 %v1734_v30, %v1733_v29 }
 0xae3   :  { %v1481_v37 = vpop.permute.xlu0 %1480 }
 0xae4   :  { %v1492_v38 = vsel %vm1491_vm3, %v1489_v36, %v1481_v37 }
 0xae5   :  { %2075 = vmatprep.mubr.msk.f32.mxu0 %vm57_vm0, %v1492_v38 }
 0xae7   :  { %v1483_v17 = vpop.permute.xlu1 %1482 }
 0xae8   :  { %v1493_v41 = vsel %vm1491_vm3, %v1490_v40, %v1483_v17 }
 0xae9   :  { %2076 = vmatmul.mubr.msk.f32.vlgmr.msra.gmra.mrb[14].mxu0 %vm57_vm0, %v1493_v41 }
 0xaea   :  { %2135 = vmatpush3.bf16.msra.mxu0 %v2132_v2 }
 0xaeb   :  { %2137 = vmatprep.subr.bf16.mxu0 %v2136_v4 }
 0xaee   :  { %2139 = vmatpush3.bf16.msra.mxu0 %v2136_v4 }
 0xaef   :  { %2141 = vmatprep.subr.bf16.mxu0 %v2140_v9 }
 0xaf2   :  { %2143 = vmatpush3.bf16.msra.mxu0 %v2140_v9 }
 0xaf3   :  { %2145 = vmatprep.subr.bf16.mxu0 %v2144_v31 }
 0xaf6   :  { %2147 = vmatpush3.bf16.msra.mxu0 %v2144_v31 }
 0xbbc   :  { %v2077_v46 = vpop.f32.mrb[14].mxu0 }
 0xbbd   :  { %v1583_v43 = vadd.f32 %v2077_v46, %v1903_v42  ;;  %v1577_v44 = vpop.f32.mrb[15].mxu0 }
 0xbbe   :  { %v1578_v45 = vadd.f32 %v1903_v42, %v1577_v44 }
 0xbbf   :  { %v1587_v47 = vadd.f32 %v1583_v43, %v2312_v7 }
 0xbc0   :  { %v1586_v49 = vadd.f32 %v1578_v45, %v2305_v5  ;;  %v1633_v5 = vld [vmem:[%s2551_s7] sm:$0xff] }
 0xbc1   :  { %v1593_v50 = vsel %vm57_vm0, %v1587_v47, 0.0  ;;  %v2124_v60 = vpack.c.bf16 %v1634_v59, %v1633_v5 }
 0xbc2   :  { %1594 = vadd.xlane.f32.xlu1 %v1593_v50  ;;  %v1590_v48 = vsel %vm57_vm0, %v1586_v49, 0.0 }
 0xbc3   :  { %1591 = vadd.xlane.f32.xlu0 %v1590_v48  ;;  %2125 = vmatprep.subr.bf16.mxu1 %v2124_v60 }
 0xbc4   :  { %2127 = vmatpush3.bf16.msra.mxu1 %v2124_v60 }
 0xbc5   :  { %2129 = vmatprep.subr.bf16.mxu1 %v2128_v8 }
 0xbc8   :  { %2131 = vmatpush3.bf16.msra.mxu1 %v2128_v8 }
 0xc4f   :  { %v1595_v51 = vpop.xlane.xlu1 %1594 }
 0xc50   :  { %v1598_v15 = vmul.f32 0.03125, %v1595_v51  ;;  %v1592_v52 = vpop.xlane.xlu0 %1591 }
 0xc51   :  { %v1597_v53 = vmul.f32 0.03125, %v1592_v52 }
 0xc52   :  { %v1600_v54 = vsub.f32 %v1587_v47, %v1598_v15 }
 0xc53   :  { %v1599_v55 = vsub.f32 %v1586_v49, %v1597_v53 }
 0xc54   :  { %v1602_v58 = vmul.f32 %v1600_v54, %v1600_v54 }
 0xc55   :  { %v1601_v56 = vmul.f32 %v1599_v55, %v1599_v55 }
 0xc56   :  { %v1606_v7 = vsel %vm57_vm0, %v1602_v58, 0.0 }
 0xc57   :  { %v1603_v57 = vsel %vm57_vm0, %v1601_v56, 0.0 }
 0xc58   :  { %1604 = vadd.xlane.f32.xlu0 %v1603_v57 }
 0xc5c   :  { %1607 = vadd.xlane.f32.xlu0 %v1606_v7 }
 0xce5   :  { %v1605_v10 = vpop.xlane.xlu0 %1604 }
 0xce6   :  { %v1609_v11 = vmul.f32 0.03125, %v1605_v10 }
 0xce8   :  { %v1611_v14 = vadd.f32 1e-05, %v1609_v11 }
 0xce9   :  { %v1608_v16 = vpop.xlane.xlu0 %1607 }
 0xcea   :  { %2196 = vrsqrt.f32 %v1611_v14  ;;  %v1610_v18 = vmul.f32 0.03125, %v1608_v16 }
 0xcec   :  { %v1612_v19 = vadd.f32 1e-05, %v1610_v18 }
 0xcee   :  { %2198 = vrsqrt.f32 %v1612_v19 }
 0xcf4   :  { %v2197_v20 = vpop.eup %2196 }
 0xcf5   :  { %v1615_v22 = vmul.f32 %v2197_v20, %v1599_v55 }
 0xcf7   :  { %v1623_v23 = vmul.f32 %v1906_v21, %v1615_v22 }
 0xcf8   :  { %v2199_v24 = vpop.eup %2198 }
 0xcf9   :  { %v1616_v25 = vmul.f32 %v2199_v24, %v1600_v54  ;;  %v1631_v26 = vadd.f32 %v1907_v13, %v1623_v23 }
 0xcfb   :  { %v1624_v27 = vmul.f32 %v1906_v21, %v1616_v25  ;;  %2086 = vmatprep.mubr.msk.f32.mxu1 %vm57_vm0, %v1631_v26 }
 0xcfd   :  { %v1632_v28 = vadd.f32 %v1907_v13, %v1624_v27 }
 0xcff   :  { %2087 = vmatmul.mubr.msk.f32.vlgmr.msra.gmra.mrb[20].mxu1 %vm57_vm0, %v1632_v28 }
 0xdd2   :  { %v2088_v33 = vpop.f32.mrb[20].mxu1 }
 0xdd3   :  { %v1722_v34 = vadd.f32 %v2088_v33, %v1908_v32  ;;  %v1716_v35 = vpop.f32.mrb[21].mxu1 }
 0xdd4   :  { %v1717_v36 = vadd.f32 %v1908_v32, %v1716_v35 }
 0xdd5   :  { %v1726_v38 = vmax.f32 %v1722_v34, 0.0 }
 0xdd6   :  { %v1725_v37 = vmax.f32 %v1717_v36, 0.0 }
 0xdd8   :  { %2105 = vmatprep.mubr.msk.f32.mxu0 %vm1742_vm5, %v1725_v37 }
 0xdd9   :  { %2106 = vmatmul.mubr.msk.f32.vlgmr.msra.gmra.mrb[16].mxu0 %vm1742_vm5, %v1726_v38 }
 0xeac   :  { %v2107_v40 = vpop.f32.mrb[16].mxu0 }
 0xead   :  { %v1821_v17 = vadd.f32 %v2107_v40, %v1911_v39  ;;  %v1815_v41 = vpop.f32.mrb[17].mxu0 }
 0xeae   :  { %v1816_v42 = vadd.f32 %v1911_v39, %v1815_v41 }
 0xeaf   :  { %v1825_v46 = vadd.f32 %v1821_v17, %v1632_v28 }
 0xeb0   :  { %v1824_v43 = vadd.f32 %v1816_v42, %v1631_v26 }
 0xeb1   :  { %v1831_v44 = vsel %vm57_vm0, %v1825_v46, 0.0 }
 0xeb2   :  { %1832 = vadd.xlane.f32.xlu0 %v1831_v44  ;;  %v1828_v45 = vsel %vm57_vm0, %v1824_v43, 0.0 }
 0xeb3   :  { %1829 = vadd.xlane.f32.xlu1 %v1828_v45 }
 0xf3f   :  { %v1833_v47 = vpop.xlane.xlu0 %1832 }
 0xf40   :  { %v1835_v49 = vmul.f32 0.03125, %v1833_v47  ;;  %v1830_v50 = vpop.xlane.xlu1 %1829 }
 0xf41   :  { %v1834_v48 = vmul.f32 0.03125, %v1830_v50 }
 0xf42   :  { %v1837_v51 = vsub.f32 %v1825_v46, %v1835_v49 }
 0xf43   :  { %v1836_v15 = vsub.f32 %v1824_v43, %v1834_v48 }
 0xf44   :  { %v1839_v52 = vmul.f32 %v1837_v51, %v1837_v51 }
 0xf45   :  { %v1838_v53 = vmul.f32 %v1836_v15, %v1836_v15 }
 0xf46   :  { %v1843_v54 = vsel %vm57_vm0, %v1839_v52, 0.0 }
 0xf47   :  { %1844 = vadd.xlane.f32.xlu0 %v1843_v54  ;;  %v1840_v55 = vsel %vm57_vm0, %v1838_v53, 0.0 }
 0xf48   :  { %1841 = vadd.xlane.f32.xlu1 %v1840_v55 }
 0xfd4   :  { %v1845_v56 = vpop.xlane.xlu0 %1844 }
 0xfd5   :  { %v1847_v57 = vmul.f32 0.03125, %v1845_v56  ;;  %v1842_v58 = vpop.xlane.xlu1 %1841 }
 0xfd6   :  { %v1846_v7 = vmul.f32 0.03125, %v1842_v58 }
 0xfd7   :  { %v1849_v5 = vadd.f32 1e-05, %v1847_v57 }
 0xfd8   :  { %v1848_v59 = vadd.f32 1e-05, %v1846_v7 }
 0xfd9   :  { %2200 = vrsqrt.f32 %v1849_v5 }
 0xfda   :  { %2202 = vrsqrt.f32 %v1848_v59 }
 0xfe3   :  { %v2201_v60 = vpop.eup %2200 }
 0xfe4   :  { %v2203_v62 = vpop.eup %2202  ;;  %v1853_v8 = vmul.f32 %v2201_v60, %v1837_v51 }
 0xfe5   :  { %v1852_v0 = vmul.f32 %v2203_v62, %v1836_v15 }
 0xfe6   :  { %v1861_v1 = vmul.f32 %v1914_v61, %v1853_v8 }
 0xfe7   :  { %v1860_v2 = vmul.f32 %v1914_v61, %v1852_v0 }
 0xfe8   :  { %v1869_v3 = vadd.f32 %v1915_v63, %v1861_v1 }
 0xfe9   :  { %v1868_v4 = vadd.f32 %v1915_v63, %v1860_v2 }
 0xfea   :  { %1871 = vst.msk [vmem:[%s2559_s13 + $0x8] sm:$0xff] %vm57_vm0, %v1869_v3 }
 0xfeb   :  { %1870 = vst.msk [vmem:[%s2559_s13] sm:$0xff] %vm57_vm0, %v1868_v4 }

// kernel: transformer_forward.19
= control target key start
LH: loop header
LB: loop body
LE: loop exit
PB: predicated region body
PF: predicated region fallthrough
CT: control target
= control target key end

     0   :  { %s5169_s0 = inlined_call_operand.vmem [shape: f32[2,8,32], index: 0, kind: input, shape index: {}]   ;;  %s5170_s1 = inlined_call_operand.vmem [shape: f32[2,6,32], index: 1, kind: input, shape index: {}]   ;;  %s5171_s2 = inlined_call_operand.vmem [shape: f32[32,96], index: 2, kind: input, shape index: {}]   ;;  %s5172_s3 = inlined_call_operand.vmem [shape: f32[1,96], index: 3, kind: input, shape index: {}]   ;;  %s5173_s4 = inlined_call_operand.vmem [shape: f32[32,32], index: 4, kind: input, shape index: {}]   ;;  %s5174_s5 = inlined_call_operand.vmem [shape: f32[1,32], index: 5, kind: input, shape index: {}]   ;;  %s5175_s6 = inlined_call_operand.vmem [shape: f32[1,32], index: 6, kind: input, shape index: {}]   ;;  %s5176_s7 = inlined_call_operand.vmem [shape: f32[1,32], index: 7, kind: input, shape index: {}]   ;;  %s5177_s8 = inlined_call_operand.vmem [shape: f32[32,32], index: 8, kind: input, shape index: {}]   ;;  %s5178_s9 = inlined_call_operand.vmem [shape: f32[1,32], index: 9, kind: input, shape index: {}]   ;;  %s5179_s10 = inlined_call_operand.vmem [shape: f32[32,64], index: 10, kind: input, shape index: {}]   ;;  %s5180_s11 = inlined_call_operand.vmem [shape: f32[1,64], index: 11, kind: input, shape index: {}]   ;;  %s5181_s12 = inlined_call_operand.vmem [shape: f32[32,32], index: 12, kind: input, shape index: {}]   ;;  %s5182_s13 = inlined_call_operand.vmem [shape: f32[1,32], index: 13, kind: input, shape index: {}]   ;;  %s5183_s14 = inlined_call_operand.vmem [shape: f32[1,32], index: 14, kind: input, shape index: {}]   ;;  %s5184_s15 = inlined_call_operand.vmem [shape: f32[1,32], index: 15, kind: input, shape index: {}]   ;;  %s5185_s16 = inlined_call_operand.vmem [shape: f32[32,64], index: 16, kind: input, shape index: {}]   ;;  %s5186_s17 = inlined_call_operand.hbm [shape: f32[1,64], index: 17, kind: input, shape index: {}]   ;;  %s5187_s18 = inlined_call_operand.vmem [shape: f32[64,32], index: 18, kind: input, shape index: {}]   ;;  %s5188_s19 = inlined_call_operand.hbm [shape: f32[1,32], index: 19, kind: input, shape index: {}]   ;;  %s5189_s20 = inlined_call_operand.hbm [shape: f32[1,32], index: 20, kind: input, shape index: {}]   ;;  %s5190_s21 = inlined_call_operand.hbm [shape: f32[1,32], index: 21, kind: input, shape index: {}]   ;;  %s5191_s22 = inlined_call_operand.vmem [shape: f32[2,8,32], index: 22, kind: output, shape index: {}]  }
   0x1   :  { %5196 = sst [smem:[#allocation12_spill]] %s5169_s0 }
   0x2   :  { %5197 = sst [smem:[#allocation13_spill]] %s5170_s1 }
   0x3   :  { %5198 = sst [smem:[#allocation14_spill]] %s5171_s2 }
   0x4   :  { %5199 = sst [smem:[#allocation15_spill]] %s5172_s3 }
   0x5   :  { %5200 = sst [smem:[#allocation16_spill]] %s5173_s4 }
   0x6   :  { %5201 = sst [smem:[#allocation17_spill]] %s5174_s5 }
   0x7   :  { %5202 = sst [smem:[#allocation18_spill]] %s5175_s6 }
   0x8   :  { %27 = vsyncpa [#allocation3], 0 }
   0x9   :  { %28 = vsyncpa [#allocation5], 0 }
   0xa   :  { %29 = vsyncpa [#allocation8], 0  ;;  %s4444_s3 = smov [#allocation4]   ;;  %s4445_s29 = smov [#allocation2]  }
   0xb   :  { %s82_s28 = sshll.u32 %s4444_s3, 4  ;;  %s70_s30 = sshll.u32 %s4445_s29, 4  ;;  %s83_s28 = int_to_ptr.vmem [resolvable:$true] %s82_s28  ;;  %s71_s30 = int_to_ptr.vmem [resolvable:$true] %s70_s30 }
   0xc   :  { %s4350_s23 = scalar_lea.hbm %s5188_s19, 16 }
   0xd   :  { %p4351_p0 = scmp.ne.s32.totalorder %s5188_s19, %s4350_s23  ;;  %p4354_p1 = scmp.lt.u32.totalorder %s4350_s23, %s5188_s19 }
   0xf   :  { %p4356_p2 = pnand %p4354_p1, %p4351_p0 }
  0x11   :  { %4359 = shalt.err (!%p4356_p2)
}
  0x12   :  { %s4360_s25 = scalar_lea.vmem %s83_s28, 16  ;;  %s4364_s26 = scalar_lea.vmem %s83_s28, 32 }
  0x13   :  { %p4361_p3 = scmp.ne.s32.totalorder %s83_s28, %s4360_s25  ;;  %p4365_p4 = scmp.lt.s32.totalorder %s83_s28, %s83_s28 }
  0x14   :  { %p4366_p5 = scmp.lt.s32.totalorder %s4364_s26, %s4360_s25 }
  0x16   :  { %p4367_p6 = por %p4366_p5, %p4365_p4 }
  0x18   :  { %p4368_p7 = pnand %p4367_p6, %p4361_p3 }
  0x1a   :  { %4371 = shalt.err (!%p4368_p7)
}
  0x1b   :  { %85 = dma.hbm_to_vmem [thread:$0]  %s5188_s19, 16, %s83_s28, [#allocation5]  }
  0x1c   :  { %s4372_s4 = scalar_lea.hbm %s5186_s17, 16 }
  0x1d   :  { %p4373_p8 = scmp.ne.s32.totalorder %s5186_s17, %s4372_s4  ;;  %p4376_p9 = scmp.lt.u32.totalorder %s4372_s4, %s5186_s17 }
  0x1f   :  { %p4378_p10 = pnand %p4376_p9, %p4373_p8 }
  0x21   :  { %4381 = shalt.err (!%p4378_p10)
}
  0x22   :  { %s4382_s24 = scalar_lea.vmem %s71_s30, 16  ;;  %s4386_s6 = scalar_lea.vmem %s71_s30, 32 }
  0x23   :  { %p4383_p11 = scmp.ne.s32.totalorder %s71_s30, %s4382_s24  ;;  %p4387_p12 = scmp.lt.s32.totalorder %s71_s30, %s71_s30 }
  0x24   :  { %p4388_p13 = scmp.lt.s32.totalorder %s4386_s6, %s4382_s24 }
  0x26   :  { %p4389_p0 = por %p4388_p13, %p4387_p12 }
  0x28   :  { %p4390_p1 = pnand %p4389_p0, %p4383_p11 }
  0x2a   :  { %4393 = shalt.err (!%p4390_p1)
}
  0x2b   :  { %73 = dma.hbm_to_vmem [thread:$0]  %s5186_s17, 16, %s71_s30, [#allocation3]  }
  0x2c   :  { %s4446_s25 = smov [#allocation6]   ;;  %s4447_s2 = smov [#allocation7]  }
  0x2d   :  { %s92_s26 = sshll.u32 %s4446_s25, 4  ;;  %s102_s27 = sshll.u32 %s4447_s2, 4  ;;  %s93_s26 = int_to_ptr.vmem [resolvable:$true] %s92_s26  ;;  %s103_s27 = int_to_ptr.vmem [resolvable:$true] %s102_s27 }
  0x2e   :  { %s4394_s4 = scalar_lea.hbm %s5189_s20, 16 }
  0x2f   :  { %p4395_p2 = scmp.ne.s32.totalorder %s5189_s20, %s4394_s4  ;;  %p4398_p3 = scmp.lt.u32.totalorder %s4394_s4, %s5189_s20 }
  0x31   :  { %p4400_p4 = pnand %p4398_p3, %p4395_p2 }
  0x33   :  { %4403 = shalt.err (!%p4400_p4)
}
  0x34   :  { %s4404_s17 = scalar_lea.vmem %s93_s26, 16  ;;  %s4408_s30 = scalar_lea.vmem %s93_s26, 32 }
  0x35   :  { %p4405_p5 = scmp.ne.s32.totalorder %s93_s26, %s4404_s17  ;;  %p4409_p6 = scmp.lt.s32.totalorder %s93_s26, %s93_s26 }
  0x36   :  { %p4410_p7 = scmp.lt.s32.totalorder %s4408_s30, %s4404_s17 }
  0x38   :  { %p4411_p8 = por %p4410_p7, %p4409_p6 }
  0x3a   :  { %p4412_p9 = pnand %p4411_p8, %p4405_p5 }
  0x3c   :  { %4415 = shalt.err (!%p4412_p9)
}
  0x3d   :  { %95 = dma.hbm_to_vmem [thread:$0]  %s5189_s20, 16, %s93_s26, [#allocation5]  }
  0x3e   :  { %s4416_s25 = scalar_lea.hbm %s5190_s21, 16 }
  0x3f   :  { %p4417_p10 = scmp.ne.s32.totalorder %s5190_s21, %s4416_s25  ;;  %p4420_p11 = scmp.lt.u32.totalorder %s4416_s25, %s5190_s21 }
  0x41   :  { %p4422_p12 = pnand %p4420_p11, %p4417_p10 }
  0x43   :  { %4425 = shalt.err (!%p4422_p12)
}
  0x44   :  { %s4426_s0 = scalar_lea.vmem %s103_s27, 16  ;;  %s4430_s23 = scalar_lea.vmem %s103_s27, 32 }
  0x45   :  { %p4427_p13 = scmp.ne.s32.totalorder %s103_s27, %s4426_s0  ;;  %p4431_p0 = scmp.lt.s32.totalorder %s103_s27, %s103_s27 }
  0x46   :  { %p4432_p1 = scmp.lt.s32.totalorder %s4430_s23, %s4426_s0 }
  0x48   :  { %p4433_p2 = por %p4432_p1, %p4431_p0 }
  0x4a   :  { %p4434_p3 = pnand %p4433_p2, %p4427_p13 }
  0x4c   :  { %4437 = shalt.err (!%p4434_p3)
}
  0x4d   :  { %105 = dma.hbm_to_vmem [thread:$0]  %s5190_s21, 16, %s103_s27, [#allocation8]  }
  0x4e   :  { %4438 = dma.done.wait [#allocation3], 16  }
  0x4f   :  { %4439 = vsyncadd [#allocation3], 4294967280 }
  0x50   :  { %4440 = dma.done.wait [#allocation5], 32  }
  0x51   :  { %4441 = vsyncadd [#allocation5], 4294967264 }
  0x52   :  { %4442 = dma.done.wait [#allocation8], 16  }
  0x53   :  { %4443 = vsyncadd [#allocation8], 4294967280  ;;  %vm133_vm0 = vcmask 261120   ;;  %s5203_s17 = sld [smem:[#allocation14_spill]]  ;;  %s5204_s2 = sld [smem:[#allocation12_spill]]  ;;  %v4448_v8 = vmov 0.0  }
  0x54   :  { %3963 = vmatprep.subr.mxu0 %v4448_v8  ;;  %vm4449_vm1 = vmmov 0   ;;  %s5205_s23 = sld [smem:[#allocation15_spill]]  ;;  %s4450_s20 = smov 96   ;;  %vm220_vm2 = vcmask 64512   ;;  %vm1567_vm3 = vcmask 195584   ;;  %vm1564_vm4 = vcmask 130048  }
  0x55   :  { %3965 = vmatprep.mubr.msk.f32.mxu0 %vm4449_vm1, %v4448_v8  ;;  %s4451_s26 = smov 64   ;;  %s4452_s1 = smov 88   ;;  %vm2161_vm5 = vcmask 48128   ;;  %vm2189_vm6 = vcmask 1045504   ;;  %vm3612_vm7 = vcmask 523264  }
  0x56   :  { %s4453_s5 = smov 120   ;;  %s4455_s30 = smov 80  }
  0x57   :  { %s4456_s24 = smov 112   ;;  %s4457_s6 = smov 48  }
  0x58   :  { %s4458_s19 = smov 72   ;;  %s4459_s21 = smov 104  }
  0x59   :  { %v122_v0 = vld [vmem:[%s5203_s17] sm:$0xff]  ;;  %v123_v1 = vld [vmem:[%s5203_s17 + $0x8] sm:$0xff]  ;;  %v124_v2 = vld [vmem:[%s5203_s17 + $0x10] sm:$0xff]  ;;  %s4460_s27 = smov 40   ;;  %s4461_s28 = smov 8  }
  0x5a   :  { %v4187_v3 = vpack.c.bf16 %v123_v1, %v122_v0  ;;  %v125_v4 = vld [vmem:[%s5203_s17 + $0x18] sm:$0xff]  ;;  %v4643_v5 = vld [vmem:[%s5204_s2] sm:$0xff]  ;;  %v4650_v7 = vld [vmem:[%s5204_s2 + $0x8] sm:$0xff]  ;;  %s4454_s17 = smov 56   ;;  %s4462_s25 = smov 16  }
  0x5b   :  { %v4191_v6 = vpack.c.bf16 %v125_v4, %v124_v2  ;;  %3950 = vmatprep.mubr.msk.f32.mxu1 %vm133_vm0, %v4643_v5  ;;  %v3749_v9 = vld [vmem:[%s5205_s23] ss:$0 sm:$0xff]  ;;  %s5206_s29 = sld [smem:[#allocation16_spill]]  ;;  %s5208_s23 = sld [smem:[#allocation13_spill]] }
  0x5c   :  { %4188 = vmatprep.subr.bf16.mxu1 %v4187_v3 }
  0x5d   :  { %4190 = vmatpush3.bf16.msra.mxu1 %v4187_v3 }
  0x5e   :  { %4192 = vmatprep.subr.bf16.mxu1 %v4191_v6 }
  0x61   :  { %4194 = vmatpush3.bf16.msra.mxu1 %v4191_v6 }
  0x62   :  { %3953 = vmatprep.subr.mxu1 %v4448_v8 }
  0x64   :  { %3951 = vmatmul.mubr.msk.f32.vlgmr.msra.gmra.mrb[0].mxu1 %vm133_vm0, %v4650_v7 }
  0x65   :  { %3955 = vmatprep.mubr.msk.f32.mxu1 %vm4449_vm1, %v4448_v8 }
 0x137   :  { %v3952_v10 = vpop.f32.mrb[0].mxu1 }
 0x138   :  { %v206_v11 = vpop.f32.mrb[1].mxu1  ;;  %v4667_v13 = vadd.f32 %v3952_v10, %v3749_v9 }
 0x139   :  { %v4663_v12 = vadd.f32 %v3749_v9, %v206_v11 }
 0x13a   :  { %v4682_v17 = vmul.f32 0.35355338, %v4667_v13 }
 0x13b   :  { %218 = vrot.lane.b32.xlu0 %v4663_v12, %s4450_s20  ;;  %v4674_v15 = vmul.f32 0.35355338, %v4663_v12 }
 0x13f   :  { %297 = vrot.lane.b32.xlu0 %v4667_v13, %s4450_s20 }
 0x1ad   :  { %v219_v14 = vpop.permute.xlu0 %218 }
 0x1ae   :  { %3954 = vmatpush3.xpose.msk.msra.mxu1 %vm220_vm2, %v219_v14 }
 0x1af   :  { %3958 = vmatprep.subr.mxu1 %v4448_v8 }
 0x1b1   :  { %v298_v16 = vpop.permute.xlu0 %297  ;;  %3956 = vmatmul.mubr.msk.f32.vlgmr.msra.gmra.mrb[2].mxu1 %vm220_vm2, %v4674_v15 }
 0x1b2   :  { %3959 = vmatpush3.xpose.msk.msra.mxu1 %vm220_vm2, %v298_v16  ;;  %3960 = vmatprep.mubr.msk.f32.mxu1 %vm4449_vm1, %v4448_v8 }
 0x1b3   :  { %3968 = vmatprep.subr.mxu1 %v4448_v8 }
 0x1b5   :  { %3961 = vmatmul.mubr.msk.f32.vlgmr.msra.gmra.mrb[4].mxu1 %vm220_vm2, %v4682_v17 }
 0x1b6   :  { %3970 = vmatprep.mubr.msk.f32.mxu1 %vm4449_vm1, %v4448_v8 }
 0x284   :  { %v292_v18 = vpop.f32.mrb[2].mxu1 }
 0x285   :  { %v3957_v19 = vpop.f32.mrb[3].mxu1  ;;  %v374_v20 = vsel %vm220_vm2, %v292_v18, -inf }
 0x286   :  { %375 = vmax.xlane.f32.xlu1 %v374_v20 }
 0x288   :  { %v370_v21 = vpop.f32.mrb[4].mxu1 }
 0x289   :  { %v3962_v22 = vpop.f32.mrb[5].mxu1  ;;  %v377_v23 = vsel %vm220_vm2, %v370_v21, -inf }
 0x28a   :  { %378 = vmax.xlane.f32.xlu1 %v377_v23 }
 0x29b   :  { %396 = vrot.lane.b32.xlu1 %v4663_v12, %s4451_s26 }
 0x29f   :  { %472 = vrot.lane.b32.xlu1 %v4667_v13, %s4451_s26 }
 0x2a3   :  { %550 = vrot.lane.b32.xlu1 %v4663_v12, %s4452_s1 }
 0x2a7   :  { %628 = vrot.lane.b32.xlu1 %v4667_v13, %s4452_s1 }
 0x313   :  { %v376_v24 = vpop.xlane.xlu1 %375 }
 0x314   :  { %v380_v25 = vsub.f32 %v292_v18, %v376_v24 }
 0x316   :  { %v382_v26 = vmul.f32 1.442695, %v380_v25 }
 0x317   :  { %v379_v27 = vpop.xlane.xlu1 %378 }
 0x318   :  { %4274 = vpow2.f32 %v382_v26  ;;  %v381_v28 = vsub.f32 %v370_v21, %v379_v27 }
 0x31a   :  { %v384_v29 = vmul.f32 1.442695, %v381_v28 }
 0x31b   :  { %v397_v30 = vpop.permute.xlu1 %396 }
 0x31c   :  { %4276 = vpow2.f32 %v384_v29  ;;  %3964 = vmatpush3.msra.mxu0 %v397_v30 }
 0x31d   :  { %3973 = vmatprep.subr.mxu0 %v4448_v8 }
 0x31f   :  { %v473_v31 = vpop.permute.xlu1 %472 }
 0x320   :  { %3969 = vmatpush3.msra.mxu1 %v473_v31 }
 0x321   :  { %3978 = vmatprep.subr.mxu1 %v4448_v8 }
 0x322   :  { %v4275_v32 = vpop.eup %4274 }
 0x323   :  { %v386_v33 = vsel %vm220_vm2, %v4275_v32, 0.0  ;;  %v551_v36 = vpop.permute.xlu1 %550 }
 0x324   :  { %387 = vadd.xlane.f32.xlu0 %v386_v33 }
 0x326   :  { %v4277_v34 = vpop.eup %4276 }
 0x327   :  { %v389_v35 = vsel %vm220_vm2, %v4277_v34, 0.0  ;;  %v629_v37 = vpop.permute.xlu1 %628 }
 0x328   :  { %390 = vadd.xlane.f32.xlu1 %v389_v35 }
 0x339   :  { %626 = vrot.lane.b32.xlu1 %v4682_v17, %s4453_s5 }
 0x33a   :  { %548 = vrot.lane.b32.xlu0 %v4674_v15, %s4453_s5 }
 0x3b1   :  { %v388_v38 = vpop.xlane.xlu0 %387 }
 0x3b2   :  { %4278 = vrcp.f32 %v388_v38 }
 0x3b5   :  { %v391_v39 = vpop.xlane.xlu1 %390  ;;  %v549_v44 = vpop.permute.xlu0 %548 }
 0x3b6   :  { %4280 = vrcp.f32 %v391_v39 }
 0x3b9   :  { %v627_v45 = vpop.permute.xlu1 %626 }
 0x3bc   :  { %v4279_v40 = vpop.eup %4278 }
 0x3bd   :  { %v394_v41 = vmul.f32 %v4279_v40, %v4275_v32 }
 0x3bf   :  { %3966 = vmatmul.mubr.msk.f32.vlgmr.msra.gmra.mrb[0].mxu0 %vm220_vm2, %v394_v41 }
 0x3c0   :  { %v4281_v42 = vpop.eup %4280  ;;  %3974 = vmatpush3.xpose.msk.msra.mxu0 %vm220_vm2, %v551_v36  ;;  %3975 = vmatprep.mubr.msk.f32.mxu0 %vm4449_vm1, %v4448_v8 }
 0x3c1   :  { %v395_v43 = vmul.f32 %v4281_v42, %v4277_v34  ;;  %3983 = vmatprep.subr.mxu0 %v4448_v8 }
 0x3c3   :  { %3971 = vmatmul.mubr.msk.f32.vlgmr.msra.gmra.mrb[6].mxu1 %vm220_vm2, %v395_v43  ;;  %3976 = vmatmul.mubr.msk.f32.vlgmr.msra.gmra.mrb[2].mxu0 %vm220_vm2, %v549_v44 }
 0x3c4   :  { %3979 = vmatpush3.xpose.msk.msra.mxu1 %vm220_vm2, %v629_v37  ;;  %3980 = vmatprep.mubr.msk.f32.mxu1 %vm4449_vm1, %v4448_v8 }
 0x3c5   :  { %3988 = vmatprep.subr.mxu1 %v4448_v8  ;;  %3985 = vmatprep.mubr.msk.f32.mxu0 %vm4449_vm1, %v4448_v8 }
 0x3c7   :  { %3981 = vmatmul.mubr.msk.f32.vlgmr.msra.gmra.mrb[8].mxu1 %vm220_vm2, %v627_v45 }
 0x3c8   :  { %3990 = vmatprep.mubr.msk.f32.mxu1 %vm4449_vm1, %v4448_v8 }
 0x492   :  { %v4721_v46 = vpop.f32.mrb[0].mxu0 }
 0x493   :  { %v3967_v47 = vpop.f32.mrb[1].mxu0 }
 0x496   :  { %v4723_v48 = vpop.f32.mrb[6].mxu1  ;;  %v622_v49 = vpop.f32.mrb[2].mxu0 }
 0x497   :  { %v3972_v50 = vpop.f32.mrb[7].mxu1  ;;  %v3977_v51 = vpop.f32.mrb[3].mxu0  ;;  %v704_v52 = vsel %vm220_vm2, %v622_v49, -inf }
 0x498   :  { %705 = vmax.xlane.f32.xlu1 %v704_v52 }
 0x49a   :  { %v700_v53 = vpop.f32.mrb[8].mxu1 }
 0x49b   :  { %v3982_v54 = vpop.f32.mrb[9].mxu1  ;;  %v707_v55 = vsel %vm220_vm2, %v700_v53, -inf }
 0x49c   :  { %708 = vmax.xlane.f32.xlu0 %v707_v55 }
 0x4a9   :  { %726 = vrot.lane.b32.xlu1 %v4663_v12, %s4454_s17 }
 0x4ad   :  { %880 = vrot.lane.b32.xlu1 %v4663_v12, %s4455_s30 }
 0x4b1   :  { %958 = vrot.lane.b32.xlu1 %v4667_v13, %s4455_s30 }
 0x4b2   :  { %802 = vrot.lane.b32.xlu0 %v4667_v13, %s4454_s17 }
 0x4b6   :  { %878 = vrot.lane.b32.xlu0 %v4674_v15, %s4456_s24 }
 0x525   :  { %v706_v56 = vpop.xlane.xlu1 %705 }
 0x526   :  { %v710_v57 = vsub.f32 %v622_v49, %v706_v56 }
 0x528   :  { %v712_v58 = vmul.f32 1.442695, %v710_v57 }
 0x529   :  { %v727_v59 = vpop.permute.xlu1 %726  ;;  %v709_v60 = vpop.xlane.xlu0 %708 }
 0x52a   :  { %4282 = vpow2.f32 %v712_v58  ;;  %v711_v61 = vsub.f32 %v700_v53, %v709_v60  ;;  %3984 = vmatpush3.msra.mxu0 %v727_v59 }
 0x52b   :  { %3993 = vmatprep.subr.mxu0 %v4448_v8 }
 0x52c   :  { %v714_v62 = vmul.f32 1.442695, %v711_v61 }
 0x52d   :  { %v803_v63 = vpop.permute.xlu0 %802  ;;  %v881_v4 = vpop.permute.xlu1 %880 }
 0x52e   :  { %4284 = vpow2.f32 %v714_v62  ;;  %3989 = vmatpush3.msra.mxu1 %v803_v63 }
 0x52f   :  { %3998 = vmatprep.subr.mxu1 %v4448_v8 }
 0x531   :  { %v959_v6 = vpop.permute.xlu1 %958  ;;  %v879_v19 = vpop.permute.xlu0 %878 }
 0x534   :  { %v4283_v0 = vpop.eup %4282 }
 0x535   :  { %v716_v1 = vsel %vm220_vm2, %v4283_v0, 0.0 }
 0x536   :  { %717 = vadd.xlane.f32.xlu1 %v716_v1 }
 0x538   :  { %v4285_v2 = vpop.eup %4284 }
 0x539   :  { %v719_v3 = vsel %vm220_vm2, %v4285_v2, 0.0 }
 0x53a   :  { %720 = vadd.xlane.f32.xlu1 %v719_v3 }
 0x54b   :  { %956 = vrot.lane.b32.xlu1 %v4682_v17, %s4456_s24 }
 0x5c3   :  { %v718_v9 = vpop.xlane.xlu1 %717 }
 0x5c4   :  { %4286 = vrcp.f32 %v718_v9 }
 0x5c7   :  { %v721_v10 = vpop.xlane.xlu1 %720 }
 0x5c8   :  { %4288 = vrcp.f32 %v721_v10 }
 0x5cb   :  { %v957_v20 = vpop.permute.xlu1 %956 }
 0x5ce   :  { %v4287_v11 = vpop.eup %4286 }
 0x5cf   :  { %v724_v14 = vmul.f32 %v4287_v11, %v4283_v0 }
 0x5d1   :  { %3986 = vmatmul.mubr.msk.f32.vlgmr.msra.gmra.mrb[4].mxu0 %vm220_vm2, %v724_v14 }
 0x5d2   :  { %v4289_v16 = vpop.eup %4288  ;;  %3994 = vmatpush3.xpose.msk.msra.mxu0 %vm220_vm2, %v881_v4  ;;  %3995 = vmatprep.mubr.msk.f32.mxu0 %vm4449_vm1, %v4448_v8 }
 0x5d3   :  { %v725_v18 = vmul.f32 %v4289_v16, %v4285_v2  ;;  %4003 = vmatprep.subr.mxu0 %v4448_v8 }
 0x5d5   :  { %3991 = vmatmul.mubr.msk.f32.vlgmr.msra.gmra.mrb[10].mxu1 %vm220_vm2, %v725_v18  ;;  %3996 = vmatmul.mubr.msk.f32.vlgmr.msra.gmra.mrb[6].mxu0 %vm220_vm2, %v879_v19 }
 0x5d6   :  { %3999 = vmatpush3.xpose.msk.msra.mxu1 %vm220_vm2, %v959_v6  ;;  %4000 = vmatprep.mubr.msk.f32.mxu1 %vm4449_vm1, %v4448_v8 }
 0x5d7   :  { %4008 = vmatprep.subr.mxu1 %v4448_v8  ;;  %4005 = vmatprep.mubr.msk.f32.mxu0 %vm4449_vm1, %v4448_v8 }
 0x5d9   :  { %4001 = vmatmul.mubr.msk.f32.vlgmr.msra.gmra.mrb[12].mxu1 %vm220_vm2, %v957_v20 }
 0x5da   :  { %4010 = vmatprep.mubr.msk.f32.mxu1 %vm4449_vm1, %v4448_v8 }
 0x6a4   :  { %v4757_v21 = vpop.f32.mrb[4].mxu0 }
 0x6a5   :  { %v3987_v22 = vpop.f32.mrb[5].mxu0 }
 0x6a8   :  { %v4759_v23 = vpop.f32.mrb[10].mxu1  ;;  %v952_v24 = vpop.f32.mrb[6].mxu0 }
 0x6a9   :  { %v3992_v25 = vpop.f32.mrb[11].mxu1  ;;  %v3997_v26 = vpop.f32.mrb[7].mxu0  ;;  %v1034_v27 = vsel %vm220_vm2, %v952_v24, -inf }
 0x6aa   :  { %1035 = vmax.xlane.f32.xlu0 %v1034_v27  ;;  %v1572_v25 = vld [vmem:[%s5206_s29 + $0x10] sm:$0xff]  ;;  %v1573_v26 = vld [vmem:[%s5206_s29 + $0x18] sm:$0xff] }
 0x6ab   :  { %v4199_v27 = vpack.c.bf16 %v1573_v26, %v1572_v25 }
 0x6ac   :  { %v1030_v28 = vpop.f32.mrb[12].mxu1 }
 0x6ad   :  { %v4002_v29 = vpop.f32.mrb[13].mxu1  ;;  %v1037_v30 = vsel %vm220_vm2, %v1030_v28, -inf }
 0x6ae   :  { %1038 = vmax.xlane.f32.xlu1 %v1037_v30 }
 0x6bf   :  { %1056 = vrot.lane.b32.xlu1 %v4663_v12, %s4457_s6 }
 0x6c0   :  { %1132 = vrot.lane.b32.xlu0 %v4667_v13, %s4457_s6 }
 0x6c3   :  { %1210 = vrot.lane.b32.xlu1 %v4663_v12, %s4458_s19 }
 0x6c7   :  { %1288 = vrot.lane.b32.xlu1 %v4667_v13, %s4458_s19 }
 0x6cb   :  { %1286 = vrot.lane.b32.xlu1 %v4682_v17, %s4459_s21 }
 0x737   :  { %v1036_v31 = vpop.xlane.xlu0 %1035 }
 0x738   :  { %v1040_v32 = vsub.f32 %v952_v24, %v1036_v31 }
 0x73a   :  { %v1042_v33 = vmul.f32 1.442695, %v1040_v32 }
 0x73b   :  { %v1133_v34 = vpop.permute.xlu0 %1132  ;;  %v1039_v35 = vpop.xlane.xlu1 %1038 }
 0x73c   :  { %4290 = vpow2.f32 %v1042_v33  ;;  %v1041_v36 = vsub.f32 %v1030_v28, %v1039_v35  ;;  %4009 = vmatpush3.msra.mxu1 %v1133_v34 }
 0x73d   :  { %4018 = vmatprep.subr.mxu1 %v4448_v8 }
 0x73e   :  { %v1044_v37 = vmul.f32 1.442695, %v1041_v36 }
 0x73f   :  { %v1057_v38 = vpop.permute.xlu1 %1056 }
 0x740   :  { %4292 = vpow2.f32 %v1044_v37  ;;  %4004 = vmatpush3.msra.mxu0 %v1057_v38 }
 0x741   :  { %4013 = vmatprep.subr.mxu0 %v4448_v8 }
 0x743   :  { %v1211_v44 = vpop.permute.xlu1 %1210 }
 0x746   :  { %v4291_v39 = vpop.eup %4290 }
 0x747   :  { %v1046_v40 = vsel %vm220_vm2, %v4291_v39, 0.0  ;;  %v1289_v50 = vpop.permute.xlu1 %1288 }
 0x748   :  { %1047 = vadd.xlane.f32.xlu0 %v1046_v40 }
 0x74a   :  { %v4293_v17 = vpop.eup %4292 }
 0x74b   :  { %v1049_v41 = vsel %vm220_vm2, %v4293_v17, 0.0  ;;  %v1287_v52 = vpop.permute.xlu1 %1286 }
 0x74c   :  { %1050 = vadd.xlane.f32.xlu0 %v1049_v41 }
 0x762   :  { %1208 = vrot.lane.b32.xlu0 %v4674_v15, %s4459_s21 }
 0x7d5   :  { %v1048_v42 = vpop.xlane.xlu0 %1047 }
 0x7d6   :  { %4294 = vrcp.f32 %v1048_v42 }
 0x7d9   :  { %v1051_v43 = vpop.xlane.xlu0 %1050 }
 0x7da   :  { %4296 = vrcp.f32 %v1051_v43 }
 0x7dd   :  { %v1209_v15 = vpop.permute.xlu0 %1208 }
 0x7e0   :  { %v4295_v45 = vpop.eup %4294 }
 0x7e1   :  { %v1054_v47 = vmul.f32 %v4295_v45, %v4291_v39 }
 0x7e3   :  { %4006 = vmatmul.mubr.msk.f32.vlgmr.msra.gmra.mrb[8].mxu0 %vm220_vm2, %v1054_v47 }
 0x7e4   :  { %v4297_v49 = vpop.eup %4296  ;;  %4014 = vmatpush3.xpose.msk.msra.mxu0 %vm220_vm2, %v1211_v44  ;;  %4015 = vmatprep.mubr.msk.f32.mxu0 %vm4449_vm1, %v4448_v8 }
 0x7e5   :  { %v1055_v51 = vmul.f32 %v4297_v49, %v4293_v17  ;;  %4023 = vmatprep.subr.mxu0 %v4448_v8 }
 0x7e7   :  { %4011 = vmatmul.mubr.msk.f32.vlgmr.msra.gmra.mrb[14].mxu1 %vm220_vm2, %v1055_v51  ;;  %4016 = vmatmul.mubr.msk.f32.vlgmr.msra.gmra.mrb[10].mxu0 %vm220_vm2, %v1209_v15 }
 0x7e8   :  { %4019 = vmatpush3.xpose.msk.msra.mxu1 %vm220_vm2, %v1289_v50  ;;  %4020 = vmatprep.mubr.msk.f32.mxu1 %vm4449_vm1, %v4448_v8 }
 0x7e9   :  { %4028 = vmatprep.subr.mxu1 %v4448_v8  ;;  %4025 = vmatprep.mubr.msk.f32.mxu0 %vm4449_vm1, %v4448_v8 }
 0x7eb   :  { %4021 = vmatmul.mubr.msk.f32.vlgmr.msra.gmra.mrb[16].mxu1 %vm220_vm2, %v1287_v52 }
 0x7ec   :  { %4030 = vmatprep.mubr.msk.f32.mxu1 %vm4449_vm1, %v4448_v8 }
 0x8b6   :  { %v1128_v53 = vpop.f32.mrb[8].mxu0 }
 0x8b7   :  { %v4007_v54 = vpop.f32.mrb[9].mxu0 }
 0x8ba   :  { %v1204_v55 = vpop.f32.mrb[14].mxu1  ;;  %v1282_v56 = vpop.f32.mrb[10].mxu0 }
 0x8bb   :  { %v4012_v57 = vpop.f32.mrb[15].mxu1  ;;  %v4017_v58 = vpop.f32.mrb[11].mxu0  ;;  %v1364_v59 = vsel %vm220_vm2, %v1282_v56, -inf }
 0x8bc   :  { %1365 = vmax.xlane.f32.xlu0 %v1364_v59  ;;  %v4464_v59 = vmov 1983009808  }
 0x8be   :  { %v1360_v60 = vpop.f32.mrb[16].mxu1 }
 0x8bf   :  { %v4022_v61 = vpop.f32.mrb[17].mxu1  ;;  %v1367_v62 = vsel %vm220_vm2, %v1360_v60, -inf }
 0x8c0   :  { %1368 = vmax.xlane.f32.xlu1 %v1367_v62  ;;  %v1807_v61 = vlaneseq }
 0x8d1   :  { %1386 = vrot.lane.b32.xlu1 %v4663_v12, %s4460_s27 }
 0x8d5   :  { %1540 = vrot.lane.b32.xlu1 %v4757_v21, %s4461_s28 }
 0x8d9   :  { %1542 = vrot.lane.b32.xlu1 %v4759_v23, %s4461_s28  ;;  %v1571_v23 = vld [vmem:[%s5206_s29 + $0x8] sm:$0xff] }
 0x8dd   :  { %1550 = vrot.lane.b32.xlu1 %v1204_v55, %s4462_s25 }
 0x949   :  { %v1366_v63 = vpop.xlane.xlu0 %1365 }
 0x94a   :  { %v1370_v0 = vsub.f32 %v1282_v56, %v1366_v63  ;;  %v1808_v63 = vshrl.u32 %v1807_v61, 7 }
 0x94c   :  { %v1372_v1 = vmul.f32 1.442695, %v1370_v0 }
 0x94d   :  { %v1369_v2 = vpop.xlane.xlu1 %1368 }
 0x94e   :  { %4298 = vpow2.f32 %v1372_v1  ;;  %v1371_v3 = vsub.f32 %v1360_v60, %v1369_v2  ;;  %v1805_v60 = vunpack.c.l.s4 %v4464_v59  ;;  %v120_v1 = vld [vmem:[%s5208_s23] sm:$0x3f] }
 0x94f   :  { %v1835_v2 = vld [vmem:[%s5179_s10] sm:$0xff] }
 0x950   :  { %v1374_v4 = vmul.f32 1.442695, %v1371_v3  ;;  %v1806_v62 = vunpack.c.0.s8 %v1805_v60  ;;  %v1836_v3 = vld [vmem:[%s5179_s10 + $0x8] sm:$0xff] }
 0x951   :  { %v1387_v6 = vpop.permute.xlu1 %1386 }
 0x952   :  { %4300 = vpow2.f32 %v1374_v4  ;;  %4024 = vmatpush3.msra.mxu0 %v1387_v6  ;;  %v4848_v0 = vsub.s32 %v1806_v62, %v1808_v63  ;;  %v1803_v4 = vcombine.high %v120_v1, %v120_v1 }
 0x954   :  { %v1810_v6 = vrot.slane %v120_v1, %v4848_v0 }
 0x955   :  { %v1541_v32 = vpop.permute.xlu1 %1540 }
 0x956   :  { %v1562_v35 = vsel %vm220_vm2, %v4721_v46, %v1541_v32  ;;  %v1711_v32 = vld [vmem:[%s5177_s8 + $0x10] sm:$0xff] }
 0x958   :  { %v4299_v12 = vpop.eup %4298 }
 0x959   :  { %v1376_v9 = vsel %vm220_vm2, %v4299_v12, 0.0  ;;  %v1543_v33 = vpop.permute.xlu1 %1542 }
 0x95a   :  { %1377 = vadd.xlane.f32.xlu0 %v1376_v9  ;;  %v1563_v40 = vsel %vm220_vm2, %v4723_v48, %v1543_v33  ;;  %v121_v9 = vld [vmem:[%s5208_s23 + $0x8] sm:$0x3f]  ;;  %v1712_v33 = vld [vmem:[%s5177_s8 + $0x18] sm:$0xff] }
 0x95c   :  { %v4301_v10 = vpop.eup %4300 }
 0x95d   :  { %v1379_v11 = vsel %vm220_vm2, %v4301_v10, 0.0  ;;  %v1551_v36 = vpop.permute.xlu1 %1550 }
 0x95e   :  { %1380 = vadd.xlane.f32.xlu0 %v1379_v11  ;;  %v1566_v17 = vsel %vm1564_vm4, %v1563_v40, %v1551_v36  ;;  %v1818_v11 = vcombine.high %v1810_v6, %v1810_v6 }
 0x974   :  { %1462 = vrot.lane.b32.xlu0 %v4667_v13, %s4460_s27  ;;  %v1570_v13 = vld [vmem:[%s5206_s29] sm:$0xff]  ;;  %s4463_s27 = smov 24   ;;  %s5207_s29 = sld [smem:[#allocation17_spill]] }
 0x975   :  { %v4195_v24 = vpack.c.bf16 %v1571_v23, %v1570_v13 }
 0x977   :  { %4196 = vmatprep.subr.bf16.mxu0 %v4195_v24 }
 0x978   :  { %1548 = vrot.lane.b32.xlu0 %v1128_v53, %s4462_s25 }
 0x97a   :  { %v3776_v46 = vld [vmem:[%s5207_s29] ss:$0 sm:$0xff] }
 0x9e7   :  { %v1378_v14 = vpop.xlane.xlu0 %1377 }
 0x9e8   :  { %4302 = vrcp.f32 %v1378_v14  ;;  %v1826_v14 = vrot.slane %v121_v9, %v4848_v0 }
 0x9ea   :  { %v1834_v13 = vcombine.high %v1826_v14, %v1826_v14 }
 0x9eb   :  { %v1381_v16 = vpop.xlane.xlu0 %1380 }
 0x9ec   :  { %4304 = vrcp.f32 %v1381_v16  ;;  %v1819_v16 = vcombine.high %v121_v9, %v121_v9 }
 0x9ee   :  { %v1833_v23 = vrot.slane %v1819_v16, %v4848_v0 }
 0x9ef   :  { %v1463_v18 = vpop.permute.xlu0 %1462 }
 0x9f0   :  { %4029 = vmatpush3.msra.mxu1 %v1463_v18  ;;  %v1837_v18 = vld [vmem:[%s5179_s10 + $0x10] sm:$0xff]  ;;  %v1863_v26 = vcombine.low %v1834_v13, %v1833_v23 }
 0x9f2   :  { %v4303_v19 = vpop.eup %4302 }
 0x9f3   :  { %v1384_v20 = vmul.f32 %v4303_v19, %v4299_v12  ;;  %v1549_v34 = vpop.permute.xlu0 %1548  ;;  %v4211_v12 = vpack.c.bf16 %v1836_v3, %v1835_v2  ;;  %v1838_v19 = vld [vmem:[%s5179_s10 + $0x18] sm:$0xff]  ;;  %s5209_s10 = sld [smem:[#allocation18_spill]] }
 0x9f4   :  { %v1565_v37 = vsel %vm1564_vm4, %v1562_v35, %v1549_v34  ;;  %v4207_v34 = vpack.c.bf16 %v1712_v33, %v1711_v32 }
 0x9f5   :  { %4026 = vmatmul.mubr.msk.f32.vlgmr.msra.gmra.mrb[12].mxu0 %vm220_vm2, %v1384_v20  ;;  %v1846_v20 = vcombine.low %v1810_v6, %v1818_v11 }
 0x9f6   :  { %v4305_v21 = vpop.eup %4304  ;;  %4198 = vmatpush3.bf16.msra.mxu0 %v4195_v24 }
 0x9f7   :  { %v1385_v22 = vmul.f32 %v4305_v21, %v4301_v10  ;;  %4200 = vmatprep.subr.bf16.mxu0 %v4199_v27  ;;  %v1817_v10 = vrot.slane %v1803_v4, %v4848_v0  ;;  %v1854_v24 = vrot.slane %v1846_v20, %v4848_v0  ;;  %v3781_v4 = vld [vmem:[%s5178_s9] ss:$0 sm:$0xff] }
 0x9f9   :  { %4031 = vmatmul.mubr.msk.f32.vlgmr.msra.gmra.mrb[18].mxu1 %vm220_vm2, %v1385_v22  ;;  %v1847_v21 = vcombine.low %v1817_v10, %v1826_v14  ;;  %v4215_v22 = vpack.c.bf16 %v1838_v19, %v1837_v18 }
 0x9fa   :  { %4202 = vmatpush3.bf16.msra.mxu0 %v4199_v27 }
 0x9fb   :  { %4212 = vmatprep.subr.bf16.mxu0 %v4211_v12  ;;  %v1861_v25 = vrot.slane %v1847_v21, %v4848_v0 }
 0x9fd   :  { %v1862_v27 = vcombine.low %v1854_v24, %v1861_v25 }
 0xac8   :  { %v1458_v28 = vpop.f32.mrb[12].mxu0 }
 0xac9   :  { %1556 = vrot.lane.b32.xlu0 %v1458_v28, %s4463_s27  ;;  %v4027_v29 = vpop.f32.mrb[13].mxu0  ;;  %v1870_v28 = vrot.slane %v1863_v26, %v4848_v0 }
 0xaca   :  { %v1709_v29 = vld [vmem:[%s5177_s8] sm:$0xff] }
 0xacc   :  { %v1534_v30 = vpop.f32.mrb[18].mxu1 }
 0xacd   :  { %1558 = vrot.lane.b32.xlu1 %v1534_v30, %s4463_s27  ;;  %v4032_v31 = vpop.f32.mrb[19].mxu1  ;;  %v1710_v30 = vld [vmem:[%s5177_s8 + $0x8] sm:$0xff] }
 0xace   :  { %v4203_v31 = vpack.c.bf16 %v1710_v30, %v1709_v29 }
 0xad0   :  { %4204 = vmatprep.subr.bf16.mxu1 %v4203_v31 }
 0xad1   :  { %4206 = vmatpush3.bf16.msra.mxu1 %v4203_v31 }
 0xad2   :  { %4208 = vmatprep.subr.bf16.mxu1 %v4207_v34 }
 0xad5   :  { %4210 = vmatpush3.bf16.msra.mxu1 %v4207_v34 }
 0xad6   :  { %4066 = vmatprep.subr.mxu1 %v4448_v8 }
 0xb3b   :  { %v1557_v38 = vpop.permute.xlu0 %1556 }
 0xb3c   :  { %v1568_v39 = vsel %vm1567_vm3, %v1565_v37, %v1557_v38 }
 0xb3d   :  { %4041 = vmatprep.mubr.msk.f32.mxu0 %vm133_vm0, %v1568_v39 }
 0xb3f   :  { %v1559_v41 = vpop.permute.xlu1 %1558 }
 0xb40   :  { %v1569_v42 = vsel %vm1567_vm3, %v1566_v17, %v1559_v41  ;;  %v3779_v41 = vld [vmem:[%s5209_s10] ss:$0 sm:$0xff] }
 0xb41   :  { %4042 = vmatmul.mubr.msk.f32.vlgmr.msra.gmra.mrb[14].mxu0 %vm133_vm0, %v1569_v42 }
 0xb42   :  { %4214 = vmatpush3.bf16.msra.mxu0 %v4211_v12  ;;  %4063 = vmatprep.mubr.msk.f32.mxu0 %vm133_vm0, %v1862_v27 }
 0xb43   :  { %4216 = vmatprep.subr.bf16.mxu0 %v4215_v22 }
 0xb46   :  { %4218 = vmatpush3.bf16.msra.mxu0 %v4215_v22 }
 0xb47   :  { %4076 = vmatprep.subr.mxu0 %v4448_v8 }
 0xb49   :  { %4064 = vmatmul.mubr.msk.f32.vlgmr.msra.gmra.mrb[16].mxu0 %vm133_vm0, %v1870_v28 }
 0xb4a   :  { %4078 = vmatprep.mubr.msk.f32.mxu0 %vm4449_vm1, %v4448_v8 }
 0xc14   :  { %v4043_v43 = vpop.f32.mrb[14].mxu0 }
 0xc15   :  { %v1659_v44 = vadd.f32 %v4043_v43, %v3776_v46  ;;  %v1653_v45 = vpop.f32.mrb[15].mxu0 }
 0xc16   :  { %v1654_v47 = vadd.f32 %v3776_v46, %v1653_v45  ;;  %v3780_v46 = vld [vmem:[%s5176_s7] ss:$0 sm:$0xff] }
 0xc17   :  { %v1663_v49 = vadd.f32 %v1659_v44, %v4650_v7 }
 0xc18   :  { %v1662_v50 = vadd.f32 %v1654_v47, %v4643_v5 }
 0xc19   :  { %v1669_v48 = vsel %vm133_vm0, %v1663_v49, 0.0 }
 0xc1a   :  { %1670 = vadd.xlane.f32.xlu1 %v1669_v48  ;;  %v1666_v51 = vsel %vm133_vm0, %v1662_v50, 0.0  ;;  %v3784_v48 = vld [vmem:[%s5180_s11] ss:$0 sm:$0xff] }
 0xc1b   :  { %1667 = vadd.xlane.f32.xlu0 %v1666_v51 }
 0xc1c   :  { %v4065_v51 = vpop.f32.mrb[16].mxu0 }
 0xca7   :  { %v1671_v15 = vpop.xlane.xlu1 %1670 }
 0xca8   :  { %v1674_v52 = vmul.f32 0.03125, %v1671_v15  ;;  %v1668_v53 = vpop.xlane.xlu0 %1667  ;;  %v1947_v15 = vadd.f32 %v4065_v51, %v3784_v48 }
 0xca9   :  { %v1673_v54 = vmul.f32 0.03125, %v1668_v53 }
 0xcaa   :  { %v4838_v55 = vsub.f32 %v1663_v49, %v1674_v52  ;;  %v1941_v52 = vpop.f32.mrb[17].mxu0 }
 0xcab   :  { %v4840_v56 = vsub.f32 %v1662_v50, %v1673_v54  ;;  %v1942_v53 = vadd.f32 %v3784_v48, %v1941_v52  ;;  %v1975_v54 = vrot.slane %v1947_v15, %v4848_v0 }
 0xcac   :  { %v1678_v5 = vmul.f32 %v4838_v55, %v4838_v55 }
 0xcad   :  { %v1677_v57 = vmul.f32 %v4840_v56, %v4840_v56 }
 0xcae   :  { %v1682_v58 = vsel %vm133_vm0, %v1678_v5, 0.0 }
 0xcaf   :  { %v1679_v7 = vsel %vm133_vm0, %v1677_v57, 0.0  ;;  %v1976_v57 = vcombine.high %v1975_v54, %v1975_v54 }
 0xcb0   :  { %1680 = vadd.xlane.f32.xlu0 %v1679_v7 }
 0xcb1   :  { %v2084_v61 = vrot.slane %v1976_v57, %v4848_v0 }
 0xcb4   :  { %1683 = vadd.xlane.f32.xlu0 %v1682_v58 }
 0xd3d   :  { %v1681_v35 = vpop.xlane.xlu0 %1680 }
 0xd3e   :  { %v1685_v36 = vmul.f32 0.03125, %v1681_v35 }
 0xd40   :  { %v1687_v37 = vadd.f32 1e-05, %v1685_v36 }
 0xd41   :  { %v1684_v38 = vpop.xlane.xlu0 %1683 }
 0xd42   :  { %4306 = vrsqrt.f32 %v1687_v37  ;;  %v1686_v39 = vmul.f32 0.03125, %v1684_v38 }
 0xd44   :  { %v1688_v40 = vadd.f32 1e-05, %v1686_v39 }
 0xd46   :  { %4308 = vrsqrt.f32 %v1688_v40 }
 0xd4c   :  { %v4307_v17 = vpop.eup %4306 }
 0xd4d   :  { %v1691_v42 = vmul.f32 %v4307_v17, %v4840_v56  ;;  %v1959_v56 = vrot.slane %v1942_v53, %v4848_v0 }
 0xd4f   :  { %v1699_v43 = vmul.f32 %v3779_v41, %v1691_v42  ;;  %v1967_v5 = vcombine.high %v1959_v56, %v1959_v56 }
 0xd50   :  { %v4309_v44 = vpop.eup %4308 }
 0xd51   :  { %v1692_v45 = vmul.f32 %v4309_v44, %v4838_v55  ;;  %v4901_v47 = vadd.f32 %v3780_v46, %v1699_v43  ;;  %v1952_v55 = vcombine.high %v1942_v53, %v1942_v53  ;;  %v1979_v59 = vcombine.low %v1959_v56, %v1967_v5 }
 0xd53   :  { %v1700_v49 = vmul.f32 %v3779_v41, %v1692_v45  ;;  %4052 = vmatprep.mubr.msk.f32.mxu1 %vm133_vm0, %v4901_v47  ;;  %v1966_v7 = vrot.slane %v1952_v55, %v4848_v0  ;;  %v1986_v62 = vrot.slane %v1979_v59, %v4848_v0 }
 0xd55   :  { %v4905_v50 = vadd.f32 %v3780_v46, %v1700_v49  ;;  %v1968_v58 = vcombine.high %v1966_v7, %v1966_v7  ;;  %v1993_v60 = vrot.slane %v1966_v7, %v4848_v0 }
 0xd57   :  { %4053 = vmatmul.mubr.msk.f32.vlgmr.msra.gmra.mrb[20].mxu1 %vm133_vm0, %v4905_v50  ;;  %v2070_v63 = vcombine.low %v1968_v58, %v1975_v54  ;;  %v4920_v1 = vcombine.low %v1986_v62, %v1993_v60 }
 0xd58   :  { %4068 = vmatprep.mubr.msk.f32.mxu1 %vm4449_vm1, %v4448_v8 }
 0xd59   :  { %v2077_v2 = vrot.slane %v2070_v63, %v4848_v0  ;;  %4067 = vmatpush3.xpose.msk.msra.mxu1 %vm220_vm2, %v4920_v1 }
 0xd5a   :  { %4071 = vmatprep.subr.mxu1 %v4448_v8 }
 0xd5b   :  { %v4923_v3 = vcombine.low %v2077_v2, %v2084_v61 }
 0xe2a   :  { %v4054_v6 = vpop.f32.mrb[20].mxu1 }
 0xe2b   :  { %v1792_v12 = vpop.f32.mrb[21].mxu1  ;;  %v1798_v10 = vadd.f32 %v4054_v6, %v3781_v4 }
 0xe2c   :  { %v1793_v9 = vadd.f32 %v3781_v4, %v1792_v12 }
 0xe2d   :  { %v4939_v0 = vmul.f32 0.35355338, %v1798_v10 }
 0xe2e   :  { %v4931_v11 = vmul.f32 0.35355338, %v1793_v9 }
 0xe30   :  { %4069 = vmatmul.mubr.msk.f32.vlgmr.msra.gmra.mrb[22].mxu1 %vm220_vm2, %v4931_v11 }
 0xe31   :  { %4072 = vmatpush3.xpose.msk.msra.mxu1 %vm220_vm2, %v4923_v3  ;;  %4073 = vmatprep.mubr.msk.f32.mxu1 %vm4449_vm1, %v4448_v8 }
 0xe32   :  { %4081 = vmatprep.subr.mxu1 %v4448_v8 }
 0xe34   :  { %4074 = vmatmul.mubr.msk.f32.vlgmr.msra.gmra.mrb[24].mxu1 %vm220_vm2, %v4939_v0 }
 0xe35   :  { %4083 = vmatprep.mubr.msk.f32.mxu1 %vm4449_vm1, %v4448_v8 }
 0xf03   :  { %v2066_v14 = vpop.f32.mrb[22].mxu1 }
 0xf04   :  { %v4070_v16 = vpop.f32.mrb[23].mxu1  ;;  %v2162_v18 = vsel %vm2161_vm5, %v2066_v14, -inf }
 0xf05   :  { %2163 = vmax.xlane.f32.xlu1 %v2162_v18 }
 0xf07   :  { %v2157_v19 = vpop.f32.mrb[24].mxu1 }
 0xf08   :  { %v4075_v20 = vpop.f32.mrb[25].mxu1  ;;  %v2165_v21 = vsel %vm2161_vm5, %v2157_v19, -inf }
 0xf09   :  { %2166 = vmax.xlane.f32.xlu0 %v2165_v21 }
 0xf16   :  { %2184 = vrot.lane.b32.xlu1 %v4920_v1, %s4450_s20 }
 0xf1a   :  { %2341 = vrot.lane.b32.xlu1 %v4920_v1, %s4453_s5 }
 0xf1e   :  { %2419 = vrot.lane.b32.xlu1 %v4923_v3, %s4453_s5 }
 0xf1f   :  { %2262 = vrot.lane.b32.xlu0 %v4923_v3, %s4450_s20 }
 0xf92   :  { %v2164_v22 = vpop.xlane.xlu1 %2163 }
 0xf93   :  { %v2168_v13 = vsub.f32 %v2066_v14, %v2164_v22 }
 0xf95   :  { %v2170_v23 = vmul.f32 1.442695, %v2168_v13 }
 0xf96   :  { %v2185_v24 = vpop.permute.xlu1 %2184  ;;  %v2167_v25 = vpop.xlane.xlu0 %2166 }
 0xf97   :  { %4310 = vpow2.f32 %v2170_v23  ;;  %v2169_v26 = vsub.f32 %v2157_v19, %v2167_v25  ;;  %4077 = vmatpush3.msk.msra.mxu0 %vm2189_vm6, %v2185_v24 }
 0xf98   :  { %4086 = vmatprep.subr.mxu0 %v4448_v8 }
 0xf99   :  { %v2172_v27 = vmul.f32 1.442695, %v2169_v26 }
 0xf9a   :  { %v2263_v28 = vpop.permute.xlu0 %2262  ;;  %v2342_v33 = vpop.permute.xlu1 %2341 }
 0xf9b   :  { %4312 = vpow2.f32 %v2172_v27  ;;  %4082 = vmatpush3.msk.msra.mxu1 %vm2189_vm6, %v2263_v28 }
 0xf9c   :  { %4091 = vmatprep.subr.mxu1 %v4448_v8 }
 0xf9e   :  { %v2420_v34 = vpop.permute.xlu1 %2419 }
 0xfa1   :  { %v4311_v29 = vpop.eup %4310 }
 0xfa2   :  { %v2174_v30 = vsel %vm2161_vm5, %v4311_v29, 0.0 }
 0xfa3   :  { %2175 = vadd.xlane.f32.xlu1 %v2174_v30 }
 0xfa5   :  { %v4313_v31 = vpop.eup %4312 }
 0xfa6   :  { %v2177_v32 = vsel %vm2161_vm5, %v4313_v31, 0.0 }
 0xfa7   :  { %2178 = vadd.xlane.f32.xlu0 %v2177_v32 }
 0xfb4   :  { %2417 = vrot.lane.b32.xlu1 %v4939_v0, %s4453_s5 }
 0xfbd   :  { %2339 = vrot.lane.b32.xlu0 %v4931_v11, %s4453_s5 }
0x1030   :  { %v2176_v35 = vpop.xlane.xlu1 %2175 }
0x1031   :  { %4314 = vrcp.f32 %v2176_v35 }
0x1034   :  { %v2179_v36 = vpop.xlane.xlu0 %2178  ;;  %v2418_v41 = vpop.permute.xlu1 %2417 }
0x1035   :  { %4316 = vrcp.f32 %v2179_v36 }
0x1038   :  { %v2340_v17 = vpop.permute.xlu0 %2339 }
0x103b   :  { %v4315_v37 = vpop.eup %4314 }
0x103c   :  { %v2182_v38 = vmul.f32 %v4315_v37, %v4311_v29 }
0x103e   :  { %4079 = vmatmul.mubr.msk.f32.vlgmr.msra.gmra.mrb[18].mxu0 %vm2161_vm5, %v2182_v38 }
0x103f   :  { %v4317_v39 = vpop.eup %4316  ;;  %4087 = vmatpush3.xpose.msk.msra.mxu0 %vm220_vm2, %v2342_v33  ;;  %4088 = vmatprep.mubr.msk.f32.mxu0 %vm4449_vm1, %v4448_v8 }
0x1040   :  { %v2183_v40 = vmul.f32 %v4317_v39, %v4313_v31  ;;  %4096 = vmatprep.subr.mxu0 %v4448_v8 }
0x1042   :  { %4084 = vmatmul.mubr.msk.f32.vlgmr.msra.gmra.mrb[26].mxu1 %vm2161_vm5, %v2183_v40  ;;  %4089 = vmatmul.mubr.msk.f32.vlgmr.msra.gmra.mrb[20].mxu0 %vm220_vm2, %v2340_v17 }
0x1043   :  { %4092 = vmatpush3.xpose.msk.msra.mxu1 %vm220_vm2, %v2420_v34  ;;  %4093 = vmatprep.mubr.msk.f32.mxu1 %vm4449_vm1, %v4448_v8 }
0x1044   :  { %4101 = vmatprep.subr.mxu1 %v4448_v8  ;;  %4098 = vmatprep.mubr.msk.f32.mxu0 %vm4449_vm1, %v4448_v8 }
0x1046   :  { %4094 = vmatmul.mubr.msk.f32.vlgmr.msra.gmra.mrb[28].mxu1 %vm220_vm2, %v2418_v41 }
0x1047   :  { %4103 = vmatprep.mubr.msk.f32.mxu1 %vm4449_vm1, %v4448_v8 }
0x1111   :  { %v4982_v42 = vpop.f32.mrb[18].mxu0 }
0x1112   :  { %v4080_v46 = vpop.f32.mrb[19].mxu0 }
0x1115   :  { %v4984_v43 = vpop.f32.mrb[26].mxu1  ;;  %v2413_v44 = vpop.f32.mrb[20].mxu0 }
0x1116   :  { %v4085_v45 = vpop.f32.mrb[27].mxu1  ;;  %v4090_v49 = vpop.f32.mrb[21].mxu0  ;;  %v2495_v48 = vsel %vm2161_vm5, %v2413_v44, -inf }
0x1117   :  { %2496 = vmax.xlane.f32.xlu0 %v2495_v48 }
0x1119   :  { %v2491_v51 = vpop.f32.mrb[28].mxu1 }
0x111a   :  { %v4095_v15 = vpop.f32.mrb[29].mxu1  ;;  %v2498_v52 = vsel %vm2161_vm5, %v2491_v51, -inf }
0x111b   :  { %2499 = vmax.xlane.f32.xlu1 %v2498_v52 }
0x112c   :  { %2517 = vrot.lane.b32.xlu1 %v4920_v1, %s4452_s1 }
0x112d   :  { %2594 = vrot.lane.b32.xlu0 %v4923_v3, %s4452_s1 }
0x1130   :  { %2673 = vrot.lane.b32.xlu1 %v4920_v1, %s4456_s24 }
0x1134   :  { %2751 = vrot.lane.b32.xlu1 %v4923_v3, %s4456_s24 }
0x1138   :  { %2749 = vrot.lane.b32.xlu1 %v4939_v0, %s4456_s24 }
0x11a4   :  { %v2497_v53 = vpop.xlane.xlu0 %2496 }
0x11a5   :  { %v2501_v54 = vsub.f32 %v2413_v44, %v2497_v53 }
0x11a7   :  { %v2503_v55 = vmul.f32 1.442695, %v2501_v54 }
0x11a8   :  { %v2595_v56 = vpop.permute.xlu0 %2594  ;;  %v2500_v57 = vpop.xlane.xlu1 %2499 }
0x11a9   :  { %4318 = vpow2.f32 %v2503_v55  ;;  %v2502_v7 = vsub.f32 %v2491_v51, %v2500_v57  ;;  %4102 = vmatpush3.msk.msra.mxu1 %vm2189_vm6, %v2595_v56 }
0x11aa   :  { %4111 = vmatprep.subr.mxu1 %v4448_v8 }
0x11ab   :  { %v2505_v5 = vmul.f32 1.442695, %v2502_v7 }
0x11ac   :  { %v2518_v58 = vpop.permute.xlu1 %2517 }
0x11ad   :  { %4320 = vpow2.f32 %v2505_v5  ;;  %4097 = vmatpush3.msk.msra.mxu0 %vm2189_vm6, %v2518_v58 }
0x11ae   :  { %4106 = vmatprep.subr.mxu0 %v4448_v8 }
0x11b0   :  { %v2674_v4 = vpop.permute.xlu1 %2673 }
0x11b3   :  { %v4319_v59 = vpop.eup %4318 }
0x11b4   :  { %v2507_v60 = vsel %vm2161_vm5, %v4319_v59, 0.0  ;;  %v2752_v10 = vpop.permute.xlu1 %2751 }
0x11b5   :  { %2508 = vadd.xlane.f32.xlu0 %v2507_v60 }
0x11b7   :  { %v4321_v61 = vpop.eup %4320 }
0x11b8   :  { %v2510_v62 = vsel %vm2161_vm5, %v4321_v61, 0.0  ;;  %v2750_v18 = vpop.permute.xlu1 %2749 }
0x11b9   :  { %2511 = vadd.xlane.f32.xlu0 %v2510_v62 }
0x11cf   :  { %2671 = vrot.lane.b32.xlu0 %v4931_v11, %s4456_s24 }
0x1242   :  { %v2509_v63 = vpop.xlane.xlu0 %2508 }
0x1243   :  { %4322 = vrcp.f32 %v2509_v63 }
0x1246   :  { %v2512_v2 = vpop.xlane.xlu0 %2511 }
0x1247   :  { %4324 = vrcp.f32 %v2512_v2 }
0x124a   :  { %v2672_v16 = vpop.permute.xlu0 %2671 }
0x124d   :  { %v4323_v6 = vpop.eup %4322 }
0x124e   :  { %v2515_v12 = vmul.f32 %v4323_v6, %v4319_v59 }
0x1250   :  { %4099 = vmatmul.mubr.msk.f32.vlgmr.msra.gmra.mrb[22].mxu0 %vm2161_vm5, %v2515_v12 }
0x1251   :  { %v4325_v9 = vpop.eup %4324  ;;  %4107 = vmatpush3.xpose.msk.msra.mxu0 %vm220_vm2, %v2674_v4  ;;  %4108 = vmatprep.mubr.msk.f32.mxu0 %vm4449_vm1, %v4448_v8 }
0x1252   :  { %v2516_v14 = vmul.f32 %v4325_v9, %v4321_v61  ;;  %4116 = vmatprep.subr.mxu0 %v4448_v8 }
0x1254   :  { %4104 = vmatmul.mubr.msk.f32.vlgmr.msra.gmra.mrb[30].mxu1 %vm2161_vm5, %v2516_v14  ;;  %4109 = vmatmul.mubr.msk.f32.vlgmr.msra.gmra.mrb[24].mxu0 %vm220_vm2, %v2672_v16 }
0x1255   :  { %4112 = vmatpush3.xpose.msk.msra.mxu1 %vm220_vm2, %v2752_v10  ;;  %4113 = vmatprep.mubr.msk.f32.mxu1 %vm4449_vm1, %v4448_v8 }
0x1256   :  { %4121 = vmatprep.subr.mxu1 %v4448_v8  ;;  %4118 = vmatprep.mubr.msk.f32.mxu0 %vm4449_vm1, %v4448_v8 }
0x1258   :  { %4114 = vmatmul.mubr.msk.f32.vlgmr.msra.gmra.mrb[32].mxu1 %vm220_vm2, %v2750_v18 }
0x1259   :  { %4123 = vmatprep.mubr.msk.f32.mxu1 %vm4449_vm1, %v4448_v8 }
0x1323   :  { %v5022_v19 = vpop.f32.mrb[22].mxu0 }
0x1324   :  { %v4100_v20 = vpop.f32.mrb[23].mxu0 }
0x1325   :  { %v3366_v20 = vld [vmem:[%s5181_s12 + $0x8] sm:$0xff] }
0x1327   :  { %v5024_v21 = vpop.f32.mrb[30].mxu1  ;;  %v2745_v22 = vpop.f32.mrb[24].mxu0 }
0x1328   :  { %v4105_v13 = vpop.f32.mrb[31].mxu1  ;;  %v4110_v23 = vpop.f32.mrb[25].mxu0  ;;  %v2827_v24 = vsel %vm2161_vm5, %v2745_v22, -inf }
0x1329   :  { %2828 = vmax.xlane.f32.xlu0 %v2827_v24  ;;  %v3368_v13 = vld [vmem:[%s5181_s12 + $0x18] sm:$0xff] }
0x132b   :  { %v2823_v25 = vpop.f32.mrb[32].mxu1 }
0x132c   :  { %v4115_v26 = vpop.f32.mrb[33].mxu1  ;;  %v2830_v27 = vsel %vm2161_vm5, %v2823_v25, -inf }
0x132d   :  { %2831 = vmax.xlane.f32.xlu1 %v2830_v27 }
0x133e   :  { %2849 = vrot.lane.b32.xlu1 %v4920_v1, %s4455_s30 }
0x133f   :  { %2926 = vrot.lane.b32.xlu0 %v4923_v3, %s4455_s30 }
0x1342   :  { %3005 = vrot.lane.b32.xlu1 %v4920_v1, %s4459_s21 }
0x1346   :  { %3083 = vrot.lane.b32.xlu1 %v4923_v3, %s4459_s21 }
0x134a   :  { %3081 = vrot.lane.b32.xlu1 %v4939_v0, %s4459_s21 }
0x13b6   :  { %v2829_v28 = vpop.xlane.xlu0 %2828 }
0x13b7   :  { %v2833_v29 = vsub.f32 %v2745_v22, %v2829_v28  ;;  %v3367_v22 = vld [vmem:[%s5181_s12 + $0x10] sm:$0xff] }
0x13b8   :  { %v4223_v23 = vpack.c.bf16 %v3368_v13, %v3367_v22 }
0x13b9   :  { %v2835_v30 = vmul.f32 1.442695, %v2833_v29 }
0x13ba   :  { %v2927_v31 = vpop.permute.xlu0 %2926  ;;  %v2832_v32 = vpop.xlane.xlu1 %2831 }
0x13bb   :  { %4326 = vpow2.f32 %v2835_v30  ;;  %v2834_v33 = vsub.f32 %v2823_v25, %v2832_v32  ;;  %4122 = vmatpush3.msk.msra.mxu1 %vm2189_vm6, %v2927_v31 }
0x13bc   :  { %4131 = vmatprep.subr.mxu1 %v4448_v8 }
0x13bd   :  { %v2837_v34 = vmul.f32 1.442695, %v2834_v33 }
0x13be   :  { %v2850_v35 = vpop.permute.xlu1 %2849 }
0x13bf   :  { %4328 = vpow2.f32 %v2837_v34  ;;  %4117 = vmatpush3.msk.msra.mxu0 %vm2189_vm6, %v2850_v35 }
0x13c0   :  { %4126 = vmatprep.subr.mxu0 %v4448_v8 }
0x13c2   :  { %v3006_v17 = vpop.permute.xlu1 %3005 }
0x13c5   :  { %v4327_v36 = vpop.eup %4326 }
0x13c6   :  { %v2839_v0 = vsel %vm2161_vm5, %v4327_v36, 0.0  ;;  %v3084_v45 = vpop.permute.xlu1 %3083 }
0x13c7   :  { %2840 = vadd.xlane.f32.xlu0 %v2839_v0 }
0x13c9   :  { %v4329_v37 = vpop.eup %4328 }
0x13ca   :  { %v2842_v38 = vsel %vm2161_vm5, %v4329_v37, 0.0  ;;  %v3082_v48 = vpop.permute.xlu1 %3081 }
0x13cb   :  { %2843 = vadd.xlane.f32.xlu0 %v2842_v38 }
0x13e1   :  { %3003 = vrot.lane.b32.xlu0 %v4931_v11, %s4459_s21 }
0x1454   :  { %v2841_v39 = vpop.xlane.xlu0 %2840 }
0x1455   :  { %4330 = vrcp.f32 %v2841_v39 }
0x1458   :  { %v2844_v40 = vpop.xlane.xlu0 %2843 }
0x1459   :  { %4332 = vrcp.f32 %v2844_v40 }
0x145c   :  { %v3004_v11 = vpop.permute.xlu0 %3003 }
0x145f   :  { %v4331_v41 = vpop.eup %4330 }
0x1460   :  { %v2847_v46 = vmul.f32 %v4331_v41, %v4327_v36 }
0x1462   :  { %4119 = vmatmul.mubr.msk.f32.vlgmr.msra.gmra.mrb[26].mxu0 %vm2161_vm5, %v2847_v46 }
0x1463   :  { %v4333_v44 = vpop.eup %4332  ;;  %4127 = vmatpush3.xpose.msk.msra.mxu0 %vm220_vm2, %v3006_v17  ;;  %4128 = vmatprep.mubr.msk.f32.mxu0 %vm4449_vm1, %v4448_v8 }
0x1464   :  { %v2848_v49 = vmul.f32 %v4333_v44, %v4329_v37  ;;  %4136 = vmatprep.subr.mxu0 %v4448_v8 }
0x1466   :  { %4124 = vmatmul.mubr.msk.f32.vlgmr.msra.gmra.mrb[34].mxu1 %vm2161_vm5, %v2848_v49  ;;  %4129 = vmatmul.mubr.msk.f32.vlgmr.msra.gmra.mrb[28].mxu0 %vm220_vm2, %v3004_v11 }
0x1467   :  { %4132 = vmatpush3.xpose.msk.msra.mxu1 %vm220_vm2, %v3084_v45  ;;  %4133 = vmatprep.mubr.msk.f32.mxu1 %vm4449_vm1, %v4448_v8 }
0x1468   :  { %4141 = vmatprep.subr.mxu1 %v4448_v8  ;;  %4138 = vmatprep.mubr.msk.f32.mxu0 %vm4449_vm1, %v4448_v8 }
0x146a   :  { %4134 = vmatmul.mubr.msk.f32.vlgmr.msra.gmra.mrb[36].mxu1 %vm220_vm2, %v3082_v48 }
0x146b   :  { %4143 = vmatprep.mubr.msk.f32.mxu1 %vm4449_vm1, %v4448_v8 }
0x1535   :  { %v2922_v51 = vpop.f32.mrb[26].mxu0 }
0x1536   :  { %v4120_v15 = vpop.f32.mrb[27].mxu0 }
0x1539   :  { %v2999_v52 = vpop.f32.mrb[34].mxu1  ;;  %v3077_v53 = vpop.f32.mrb[28].mxu0 }
0x153a   :  { %v4125_v54 = vpop.f32.mrb[35].mxu1  ;;  %v4130_v55 = vpop.f32.mrb[29].mxu0  ;;  %v3159_v56 = vsel %vm2161_vm5, %v3077_v53, -inf }
0x153b   :  { %3160 = vmax.xlane.f32.xlu0 %v3159_v56  ;;  %v3504_v56 = vld [vmem:[%s5185_s16 + $0x8] sm:$0xff] }
0x153d   :  { %v3155_v57 = vpop.f32.mrb[36].mxu1 }
0x153e   :  { %v4135_v7 = vpop.f32.mrb[37].mxu1  ;;  %v3162_v5 = vsel %vm2161_vm5, %v3155_v57, -inf }
0x153f   :  { %3163 = vmax.xlane.f32.xlu1 %v3162_v5  ;;  %v3505_v7 = vld [vmem:[%s5185_s16 + $0x10] sm:$0xff]  ;;  %v3506_v5 = vld [vmem:[%s5185_s16 + $0x18] sm:$0xff] }
0x1550   :  { %3181 = vrot.lane.b32.xlu1 %v4920_v1, %s4458_s19 }
0x1554   :  { %3337 = vrot.lane.b32.xlu1 %v5022_v19, %s4461_s28 }
0x1558   :  { %3339 = vrot.lane.b32.xlu1 %v5024_v21, %s4461_s28 }
0x155c   :  { %3347 = vrot.lane.b32.xlu1 %v2999_v52, %s4462_s25 }
0x15c8   :  { %v3161_v8 = vpop.xlane.xlu0 %3160 }
0x15c9   :  { %v3165_v58 = vsub.f32 %v3077_v53, %v3161_v8  ;;  %v4231_v8 = vpack.c.bf16 %v3506_v5, %v3505_v7  ;;  %v3830_v7 = vld [vmem:[#allocation6] ss:$0 sm:$0xff] }
0x15cb   :  { %v3167_v59 = vmul.f32 1.442695, %v3165_v58  ;;  %v3597_v58 = vld [vmem:[%s5187_s18] sm:$0xff] }
0x15cc   :  { %v3164_v60 = vpop.xlane.xlu1 %3163 }
0x15cd   :  { %4334 = vpow2.f32 %v3167_v59  ;;  %v3166_v61 = vsub.f32 %v3155_v57, %v3164_v60  ;;  %v3598_v59 = vld [vmem:[%s5187_s18 + $0x8] sm:$0xff]  ;;  %v3599_v60 = vld [vmem:[%s5187_s18 + $0x10] sm:$0xff] }
0x15cf   :  { %v3169_v62 = vmul.f32 1.442695, %v3166_v61  ;;  %v4235_v61 = vpack.c.bf16 %v3598_v59, %v3597_v58  ;;  %v3831_v58 = vld [vmem:[#allocation7] ss:$0 sm:$0xff] }
0x15d0   :  { %v3182_v63 = vpop.permute.xlu1 %3181 }
0x15d1   :  { %4336 = vpow2.f32 %v3169_v62  ;;  %4137 = vmatpush3.msk.msra.mxu0 %vm2189_vm6, %v3182_v63  ;;  %v3600_v62 = vld [vmem:[%s5187_s18 + $0x18] sm:$0xff] }
0x15d2   :  { %v4239_v63 = vpack.c.bf16 %v3600_v62, %v3599_v60 }
0x15d4   :  { %v3338_v28 = vpop.permute.xlu1 %3337 }
0x15d5   :  { %v3359_v31 = vsel %vm220_vm2, %v4982_v42, %v3338_v28  ;;  %v3819_v42 = vld [vmem:[%s5182_s13] ss:$0 sm:$0xff] }
0x15d7   :  { %v4335_v1 = vpop.eup %4334 }
0x15d8   :  { %v3171_v2 = vsel %vm2161_vm5, %v4335_v1, 0.0  ;;  %v3340_v29 = vpop.permute.xlu1 %3339 }
0x15d9   :  { %3172 = vadd.xlane.f32.xlu0 %v3171_v2  ;;  %v3360_v36 = vsel %vm220_vm2, %v4984_v43, %v3340_v29  ;;  %v3602_v2 = vld [vmem:[%s5187_s18 + $0x28] sm:$0xff]  ;;  %v3824_v29 = vld [vmem:[#allocation2] ss:$0 sm:$0xff] }
0x15db   :  { %v4337_v4 = vpop.eup %4336 }
0x15dc   :  { %v3174_v6 = vsel %vm2161_vm5, %v4337_v4, 0.0  ;;  %v3348_v32 = vpop.permute.xlu1 %3347 }
0x15dd   :  { %3175 = vadd.xlane.f32.xlu0 %v3174_v6  ;;  %v3362_v0 = vsel %vm1564_vm4, %v3360_v36, %v3348_v32  ;;  %v3827_v36 = vld [vmem:[#allocation4] ss:$0 sm:$0xff] }
0x15f3   :  { %3258 = vrot.lane.b32.xlu0 %v4923_v3, %s4458_s19  ;;  %v3365_v3 = vld [vmem:[%s5181_s12] sm:$0xff] }
0x15f4   :  { %v4219_v21 = vpack.c.bf16 %v3366_v20, %v3365_v3  ;;  %v3823_v20 = vld [vmem:[%s5184_s15] ss:$0 sm:$0xff] }
0x15f6   :  { %4220 = vmatprep.subr.bf16.mxu0 %v4219_v21 }
0x15f7   :  { %3345 = vrot.lane.b32.xlu0 %v2922_v51, %s4462_s25 }
0x1666   :  { %v3173_v12 = vpop.xlane.xlu0 %3172 }
0x1667   :  { %4338 = vrcp.f32 %v3173_v12 }
0x166a   :  { %v3176_v9 = vpop.xlane.xlu0 %3175 }
0x166b   :  { %4340 = vrcp.f32 %v3176_v9 }
0x166e   :  { %v3259_v10 = vpop.permute.xlu0 %3258 }
0x166f   :  { %4142 = vmatpush3.msk.msra.mxu1 %vm2189_vm6, %v3259_v10 }
0x1671   :  { %v4339_v14 = vpop.eup %4338 }
0x1672   :  { %v3179_v16 = vmul.f32 %v4339_v14, %v4335_v1  ;;  %v3346_v30 = vpop.permute.xlu0 %3345  ;;  %v3601_v1 = vld [vmem:[%s5187_s18 + $0x20] sm:$0xff] }
0x1673   :  { %v3361_v33 = vsel %vm1564_vm4, %v3359_v31, %v3346_v30 }
0x1674   :  { %4139 = vmatmul.mubr.msk.f32.vlgmr.msra.gmra.mrb[30].mxu0 %vm2161_vm5, %v3179_v16 }
0x1675   :  { %v4341_v18 = vpop.eup %4340  ;;  %4222 = vmatpush3.bf16.msra.mxu0 %v4219_v21 }
0x1676   :  { %v3180_v19 = vmul.f32 %v4341_v18, %v4337_v4  ;;  %4224 = vmatprep.subr.bf16.mxu0 %v4223_v23  ;;  %v4243_v4 = vpack.c.bf16 %v3602_v2, %v3601_v1 }
0x1678   :  { %4144 = vmatmul.mubr.msk.f32.vlgmr.msra.gmra.mrb[38].mxu1 %vm2161_vm5, %v3180_v19  ;;  %v3822_v19 = vld [vmem:[%s5183_s14] ss:$0 sm:$0xff] }
0x1679   :  { %4226 = vmatpush3.bf16.msra.mxu0 %v4223_v23 }
0x167a   :  { %4236 = vmatprep.subr.bf16.mxu0 %v4235_v61 }
0x1747   :  { %v3254_v24 = vpop.f32.mrb[30].mxu0 }
0x1748   :  { %3353 = vrot.lane.b32.xlu0 %v3254_v24, %s4463_s27  ;;  %v4140_v25 = vpop.f32.mrb[31].mxu0 }
0x174b   :  { %v3331_v26 = vpop.f32.mrb[38].mxu1 }
0x174c   :  { %3355 = vrot.lane.b32.xlu1 %v3331_v26, %s4463_s27  ;;  %v4145_v27 = vpop.f32.mrb[39].mxu1  ;;  %v3603_v26 = vld [vmem:[%s5187_s18 + $0x30] sm:$0xff] }
0x174d   :  { %v3604_v27 = vld [vmem:[%s5187_s18 + $0x38] sm:$0xff] }
0x174e   :  { %v4247_v28 = vpack.c.bf16 %v3604_v27, %v3603_v26 }
0x17ba   :  { %v3354_v34 = vpop.permute.xlu0 %3353 }
0x17bb   :  { %v3363_v35 = vsel %vm1567_vm3, %v3361_v33, %v3354_v34 }
0x17bc   :  { %4154 = vmatprep.mubr.msk.f32.mxu0 %vm133_vm0, %v3363_v35 }
0x17be   :  { %v3356_v37 = vpop.permute.xlu1 %3355 }
0x17bf   :  { %v3364_v38 = vsel %vm1567_vm3, %v3362_v0, %v3356_v37 }
0x17c0   :  { %4155 = vmatmul.mubr.msk.f32.vlgmr.msra.gmra.mrb[32].mxu0 %vm133_vm0, %v3364_v38 }
0x17c1   :  { %4238 = vmatpush3.bf16.msra.mxu0 %v4235_v61 }
0x17c2   :  { %4240 = vmatprep.subr.bf16.mxu0 %v4239_v63 }
0x17c5   :  { %4242 = vmatpush3.bf16.msra.mxu0 %v4239_v63 }
0x17c6   :  { %4244 = vmatprep.subr.bf16.mxu0 %v4243_v4 }
0x17c9   :  { %4246 = vmatpush3.bf16.msra.mxu0 %v4243_v4 }
0x17ca   :  { %4248 = vmatprep.subr.bf16.mxu0 %v4247_v28 }
0x17cd   :  { %4250 = vmatpush3.bf16.msra.mxu0 %v4247_v28 }
0x1893   :  { %v4156_v39 = vpop.f32.mrb[32].mxu0 }
0x1894   :  { %v3454_v40 = vadd.f32 %v4156_v39, %v3819_v42  ;;  %v3448_v17 = vpop.f32.mrb[33].mxu0 }
0x1895   :  { %v3449_v41 = vadd.f32 %v3819_v42, %v3448_v17 }
0x1896   :  { %v3458_v46 = vadd.f32 %v3454_v40, %v4905_v50 }
0x1897   :  { %v3457_v44 = vadd.f32 %v3449_v41, %v4901_v47  ;;  %v3503_v47 = vld [vmem:[%s5185_s16] sm:$0xff] }
0x1898   :  { %v3464_v43 = vsel %vm133_vm0, %v3458_v46, 0.0  ;;  %v4227_v57 = vpack.c.bf16 %v3504_v56, %v3503_v47 }
0x1899   :  { %3465 = vadd.xlane.f32.xlu1 %v3464_v43  ;;  %v3461_v45 = vsel %vm133_vm0, %v3457_v44, 0.0 }
0x189a   :  { %3462 = vadd.xlane.f32.xlu0 %v3461_v45  ;;  %4228 = vmatprep.subr.bf16.mxu1 %v4227_v57 }
0x189b   :  { %4230 = vmatpush3.bf16.msra.mxu1 %v4227_v57 }
0x189c   :  { %4232 = vmatprep.subr.bf16.mxu1 %v4231_v8 }
0x189f   :  { %4234 = vmatpush3.bf16.msra.mxu1 %v4231_v8 }
0x1926   :  { %v3466_v49 = vpop.xlane.xlu1 %3465 }
0x1927   :  { %v3468_v11 = vmul.f32 0.03125, %v3466_v49  ;;  %v3463_v48 = vpop.xlane.xlu0 %3462 }
0x1928   :  { %v3467_v51 = vmul.f32 0.03125, %v3463_v48 }
0x1929   :  { %v3470_v15 = vsub.f32 %v3458_v46, %v3468_v11 }
0x192a   :  { %v3469_v52 = vsub.f32 %v3457_v44, %v3467_v51 }
0x192b   :  { %v3472_v55 = vmul.f32 %v3470_v15, %v3470_v15 }
0x192c   :  { %v3471_v53 = vmul.f32 %v3469_v52, %v3469_v52 }
0x192d   :  { %v3476_v50 = vsel %vm133_vm0, %v3472_v55, 0.0 }
0x192e   :  { %v3473_v54 = vsel %vm133_vm0, %v3471_v53, 0.0 }
0x192f   :  { %3474 = vadd.xlane.f32.xlu0 %v3473_v54 }
0x1933   :  { %3477 = vadd.xlane.f32.xlu0 %v3476_v50 }
0x19bc   :  { %v3475_v6 = vpop.xlane.xlu0 %3474 }
0x19bd   :  { %v3479_v12 = vmul.f32 0.03125, %v3475_v6 }
0x19bf   :  { %v3481_v9 = vadd.f32 1e-05, %v3479_v12 }
0x19c0   :  { %v3478_v10 = vpop.xlane.xlu0 %3477 }
0x19c1   :  { %4342 = vrsqrt.f32 %v3481_v9  ;;  %v3480_v14 = vmul.f32 0.03125, %v3478_v10 }
0x19c3   :  { %v3482_v16 = vadd.f32 1e-05, %v3480_v14 }
0x19c5   :  { %4344 = vrsqrt.f32 %v3482_v16 }
0x19cb   :  { %v4343_v18 = vpop.eup %4342 }
0x19cc   :  { %v3485_v3 = vmul.f32 %v4343_v18, %v3469_v52 }
0x19ce   :  { %v3493_v21 = vmul.f32 %v3822_v19, %v3485_v3 }
0x19cf   :  { %v4345_v22 = vpop.eup %4344 }
0x19d0   :  { %v3486_v13 = vmul.f32 %v4345_v22, %v3470_v15  ;;  %v3501_v23 = vadd.f32 %v3823_v20, %v3493_v21 }
0x19d2   :  { %v3494_v24 = vmul.f32 %v3822_v19, %v3486_v13  ;;  %4165 = vmatprep.mubr.msk.f32.mxu1 %vm133_vm0, %v3501_v23 }
0x19d4   :  { %v3502_v25 = vadd.f32 %v3823_v20, %v3494_v24 }
0x19d6   :  { %4166 = vmatmul.mubr.msk.f32.vlgmr.msra.gmra.mrb[40].mxu1 %vm133_vm0, %v3502_v25 }
0x1aa9   :  { %v4167_v30 = vpop.f32.mrb[40].mxu1 }
0x1aaa   :  { %v3592_v31 = vadd.f32 %v4167_v30, %v3824_v29  ;;  %v3586_v32 = vpop.f32.mrb[41].mxu1 }
0x1aab   :  { %v3587_v33 = vadd.f32 %v3824_v29, %v3586_v32 }
0x1aac   :  { %v3596_v35 = vmax.f32 %v3592_v31, 0.0 }
0x1aad   :  { %v3595_v34 = vmax.f32 %v3587_v33, 0.0 }
0x1aaf   :  { %4184 = vmatprep.mubr.msk.f32.mxu0 %vm3612_vm7, %v3595_v34 }
0x1ab0   :  { %4185 = vmatmul.mubr.msk.f32.vlgmr.msra.gmra.mrb[34].mxu0 %vm3612_vm7, %v3596_v35 }
0x1b83   :  { %v4186_v0 = vpop.f32.mrb[34].mxu0 }
0x1b84   :  { %v3691_v37 = vadd.f32 %v4186_v0, %v3827_v36  ;;  %v3685_v38 = vpop.f32.mrb[35].mxu0 }
0x1b85   :  { %v3686_v42 = vadd.f32 %v3827_v36, %v3685_v38 }
0x1b86   :  { %v3695_v39 = vadd.f32 %v3691_v37, %v3502_v25 }
0x1b87   :  { %v3694_v40 = vadd.f32 %v3686_v42, %v3501_v23 }
0x1b88   :  { %v3701_v17 = vsel %vm133_vm0, %v3695_v39, 0.0 }
0x1b89   :  { %3702 = vadd.xlane.f32.xlu0 %v3701_v17  ;;  %v3698_v41 = vsel %vm133_vm0, %v3694_v40, 0.0 }
0x1b8a   :  { %3699 = vadd.xlane.f32.xlu1 %v3698_v41 }
0x1c16   :  { %v3703_v46 = vpop.xlane.xlu0 %3702 }
0x1c17   :  { %v3705_v44 = vmul.f32 0.03125, %v3703_v46  ;;  %v3700_v43 = vpop.xlane.xlu1 %3699 }
0x1c18   :  { %v3704_v45 = vmul.f32 0.03125, %v3700_v43 }
0x1c19   :  { %v3707_v49 = vsub.f32 %v3695_v39, %v3705_v44 }
0x1c1a   :  { %v3706_v11 = vsub.f32 %v3694_v40, %v3704_v45 }
0x1c1b   :  { %v3709_v48 = vmul.f32 %v3707_v49, %v3707_v49 }
0x1c1c   :  { %v3708_v51 = vmul.f32 %v3706_v11, %v3706_v11 }
0x1c1d   :  { %v3713_v15 = vsel %vm133_vm0, %v3709_v48, 0.0 }
0x1c1e   :  { %3714 = vadd.xlane.f32.xlu0 %v3713_v15  ;;  %v3710_v52 = vsel %vm133_vm0, %v3708_v51, 0.0 }
0x1c1f   :  { %3711 = vadd.xlane.f32.xlu1 %v3710_v52 }
0x1cab   :  { %v3715_v53 = vpop.xlane.xlu0 %3714 }
0x1cac   :  { %v3717_v54 = vmul.f32 0.03125, %v3715_v53  ;;  %v3712_v55 = vpop.xlane.xlu1 %3711 }
0x1cad   :  { %v3716_v50 = vmul.f32 0.03125, %v3712_v55 }
0x1cae   :  { %v3719_v47 = vadd.f32 1e-05, %v3717_v54 }
0x1caf   :  { %v3718_v56 = vadd.f32 1e-05, %v3716_v50 }
0x1cb0   :  { %4346 = vrsqrt.f32 %v3719_v47 }
0x1cb1   :  { %4348 = vrsqrt.f32 %v3718_v56 }
0x1cba   :  { %v4347_v57 = vpop.eup %4346 }
0x1cbb   :  { %v4349_v5 = vpop.eup %4348  ;;  %v3723_v8 = vmul.f32 %v4347_v57, %v3707_v49 }
0x1cbc   :  { %v3722_v59 = vmul.f32 %v4349_v5, %v3706_v11 }
0x1cbd   :  { %v3731_v60 = vmul.f32 %v3830_v7, %v3723_v8 }
0x1cbe   :  { %v3730_v61 = vmul.f32 %v3830_v7, %v3722_v59 }
0x1cbf   :  { %v3739_v62 = vadd.f32 %v3831_v58, %v3731_v60 }
0x1cc0   :  { %v3738_v63 = vadd.f32 %v3831_v58, %v3730_v61 }
0x1cc1   :  { %3741 = vst.msk [vmem:[%s5191_s22 + $0x8] sm:$0xff] %vm133_vm0, %v3739_v62 }
0x1cc2   :  { %3740 = vst.msk [vmem:[%s5191_s22] sm:$0xff] %vm133_vm0, %v3738_v63 }
0x1cc3   :  { %3746 = vsyncpa [#allocation3], 1 }
0x1cc4   :  { %3747 = vsyncpa [#allocation5], 1 }
0x1cc5   :  { %3748 = vsyncpa [#allocation8], 1 }

// kernel: transformer_forward.18
= control target key start
LH: loop header
LB: loop body
LE: loop exit
PB: predicated region body
PF: predicated region fallthrough
CT: control target
= control target key end

     0   :  { %vm86_vm0 = vcmask 261120   ;;  %v4296_v8 = vmov 0.0   ;;  %vm4297_vm1 = vmmov 0   ;;  %vm173_vm2 = vcmask 64512   ;;  %s4299_s30 = smov 64   ;;  %s4302_s23 = smov 56   ;;  %s4981_s2 = inlined_call_operand.vmem [shape: f32[32,96], index: 2, kind: input, shape index: {}]   ;;  %s4982_s0 = inlined_call_operand.vmem [shape: f32[2,8,32], index: 0, kind: input, shape index: {}]   ;;  %s4983_s3 = inlined_call_operand.vmem [shape: f32[1,96], index: 3, kind: input, shape index: {}]   ;;  %s4984_s4 = inlined_call_operand.vmem [shape: f32[32,32], index: 4, kind: input, shape index: {}]   ;;  %s4985_s5 = inlined_call_operand.vmem [shape: f32[1,32], index: 5, kind: input, shape index: {}]   ;;  %s4986_s1 = inlined_call_operand.vmem [shape: f32[2,6,32], index: 1, kind: input, shape index: {}]   ;;  %s4987_s10 = inlined_call_operand.vmem [shape: f32[32,64], index: 10, kind: input, shape index: {}]   ;;  %s4988_s8 = inlined_call_operand.vmem [shape: f32[32,32], index: 8, kind: input, shape index: {}]   ;;  %s4989_s6 = inlined_call_operand.vmem [shape: f32[1,32], index: 6, kind: input, shape index: {}]   ;;  %s4990_s7 = inlined_call_operand.vmem [shape: f32[1,32], index: 7, kind: input, shape index: {}]   ;;  %s4991_s11 = inlined_call_operand.vmem [shape: f32[1,64], index: 11, kind: input, shape index: {}]   ;;  %s4992_s9 = inlined_call_operand.vmem [shape: f32[1,32], index: 9, kind: input, shape index: {}]   ;;  %s4993_s12 = inlined_call_operand.vmem [shape: f32[32,32], index: 12, kind: input, shape index: {}]   ;;  %s4994_s13 = inlined_call_operand.vmem [shape: f32[1,32], index: 13, kind: input, shape index: {}]   ;;  %s4995_s16 = inlined_call_operand.vmem [shape: f32[32,64], index: 16, kind: input, shape index: {}]   ;;  %s4996_s18 = inlined_call_operand.vmem [shape: f32[64,32], index: 18, kind: input, shape index: {}]   ;;  %s4997_s14 = inlined_call_operand.vmem [shape: f32[1,32], index: 14, kind: input, shape index: {}]   ;;  %s4998_s15 = inlined_call_operand.vmem [shape: f32[1,32], index: 15, kind: input, shape index: {}]   ;;  %s4999_s17 = inlined_call_operand.vmem [shape: f32[1,64], index: 17, kind: input, shape index: {}]   ;;  %s5000_s19 = inlined_call_operand.vmem [shape: f32[1,32], index: 19, kind: input, shape index: {}]   ;;  %s5001_s20 = inlined_call_operand.vmem [shape: f32[1,32], index: 20, kind: input, shape index: {}]   ;;  %s5002_s21 = inlined_call_operand.vmem [shape: f32[1,32], index: 21, kind: input, shape index: {}]   ;;  %s5003_s22 = inlined_call_operand.vmem [shape: f32[2,8,32], index: 22, kind: output, shape index: {}]  }
   0x1   :  { %5019 = sst [smem:[#allocation2_spill]] %s4981_s2  ;;  %3913 = vmatprep.subr.mxu0 %v4296_v8  ;;  %3915 = vmatprep.mubr.msk.f32.mxu0 %vm4297_vm1, %v4296_v8  ;;  %s4301_s2 = smov 120   ;;  %vm1520_vm3 = vcmask 195584   ;;  %vm1517_vm4 = vcmask 130048   ;;  %vm2114_vm5 = vcmask 48128   ;;  %vm2142_vm6 = vcmask 1045504  }
   0x2   :  { %5020 = sst [smem:[#allocation3_spill]] %s4982_s0  ;;  %s5026_s29 = sld [smem:[#allocation2_spill]]  ;;  %vm3565_vm7 = vcmask 523264  }
   0x3   :  { %5021 = sst [smem:[#allocation4_spill]] %s4983_s3  ;;  %s5027_s25 = sld [smem:[#allocation3_spill]] }
   0x4   :  { %5022 = sst [smem:[#allocation5_spill]] %s4984_s4  ;;  %s5028_s28 = sld [smem:[#allocation4_spill]] }
   0x5   :  { %5023 = sst [smem:[#allocation6_spill]] %s4985_s5  ;;  %s4300_s5 = smov 88  }
   0x6   :  { %5024 = sst [smem:[#allocation7_spill]] %s4986_s1  ;;  %s4303_s0 = smov 80  }
   0x7   :  { %5025 = sst [smem:[#allocation8_spill]] %s4987_s10  ;;  %s4304_s1 = smov 112  }
   0x8   :  { %v75_v0 = vld [vmem:[%s5026_s29] sm:$0xff]  ;;  %v76_v1 = vld [vmem:[%s5026_s29 + $0x8] sm:$0xff]  ;;  %v77_v2 = vld [vmem:[%s5026_s29 + $0x10] sm:$0xff]  ;;  %s4305_s24 = smov 48   ;;  %s5013_s10 = smov 72  }
   0x9   :  { %v4137_v3 = vpack.c.bf16 %v76_v1, %v75_v0  ;;  %v78_v4 = vld [vmem:[%s5026_s29 + $0x18] sm:$0xff]  ;;  %v4443_v5 = vld [vmem:[%s5027_s25] sm:$0xff]  ;;  %v4450_v7 = vld [vmem:[%s5027_s25 + $0x8] sm:$0xff]  ;;  %s4298_s29 = smov 96   ;;  %s5017_s25 = smov 104  }
   0xa   :  { %v4141_v6 = vpack.c.bf16 %v78_v4, %v77_v2  ;;  %3900 = vmatprep.mubr.msk.f32.mxu1 %vm86_vm0, %v4443_v5  ;;  %v3699_v9 = vld [vmem:[%s5028_s28] ss:$0 sm:$0xff]  ;;  %s4308_s26 = smov 40   ;;  %s5011_s3 = smov 8  }
   0xb   :  { %4138 = vmatprep.subr.bf16.mxu1 %v4137_v3  ;;  %s5009_s27 = smov 16   ;;  %s5015_s4 = smov 24  }
   0xc   :  { %4140 = vmatpush3.bf16.msra.mxu1 %v4137_v3 }
   0xd   :  { %4142 = vmatprep.subr.bf16.mxu1 %v4141_v6 }
  0x10   :  { %4144 = vmatpush3.bf16.msra.mxu1 %v4141_v6 }
  0x11   :  { %3903 = vmatprep.subr.mxu1 %v4296_v8 }
  0x13   :  { %3901 = vmatmul.mubr.msk.f32.vlgmr.msra.gmra.mrb[0].mxu1 %vm86_vm0, %v4450_v7 }
  0x14   :  { %3905 = vmatprep.mubr.msk.f32.mxu1 %vm4297_vm1, %v4296_v8 }
  0xe6   :  { %v3902_v10 = vpop.f32.mrb[0].mxu1 }
  0xe7   :  { %v159_v11 = vpop.f32.mrb[1].mxu1  ;;  %v4467_v13 = vadd.f32 %v3902_v10, %v3699_v9 }
  0xe8   :  { %v4463_v12 = vadd.f32 %v3699_v9, %v159_v11 }
  0xe9   :  { %v4482_v17 = vmul.f32 0.35355338, %v4467_v13 }
  0xea   :  { %171 = vrot.lane.b32.xlu0 %v4463_v12, %s4298_s29  ;;  %v4474_v15 = vmul.f32 0.35355338, %v4463_v12 }
  0xee   :  { %250 = vrot.lane.b32.xlu0 %v4467_v13, %s4298_s29 }
 0x15c   :  { %v172_v14 = vpop.permute.xlu0 %171 }
 0x15d   :  { %3904 = vmatpush3.xpose.msk.msra.mxu1 %vm173_vm2, %v172_v14 }
 0x15e   :  { %3908 = vmatprep.subr.mxu1 %v4296_v8 }
 0x160   :  { %v251_v16 = vpop.permute.xlu0 %250  ;;  %3906 = vmatmul.mubr.msk.f32.vlgmr.msra.gmra.mrb[2].mxu1 %vm173_vm2, %v4474_v15 }
 0x161   :  { %3909 = vmatpush3.xpose.msk.msra.mxu1 %vm173_vm2, %v251_v16  ;;  %3910 = vmatprep.mubr.msk.f32.mxu1 %vm4297_vm1, %v4296_v8 }
 0x162   :  { %3918 = vmatprep.subr.mxu1 %v4296_v8 }
 0x164   :  { %3911 = vmatmul.mubr.msk.f32.vlgmr.msra.gmra.mrb[4].mxu1 %vm173_vm2, %v4482_v17 }
 0x165   :  { %3920 = vmatprep.mubr.msk.f32.mxu1 %vm4297_vm1, %v4296_v8 }
 0x233   :  { %v245_v18 = vpop.f32.mrb[2].mxu1 }
 0x234   :  { %v3907_v19 = vpop.f32.mrb[3].mxu1  ;;  %v327_v20 = vsel %vm173_vm2, %v245_v18, -inf }
 0x235   :  { %328 = vmax.xlane.f32.xlu1 %v327_v20 }
 0x237   :  { %v323_v21 = vpop.f32.mrb[4].mxu1 }
 0x238   :  { %v3912_v22 = vpop.f32.mrb[5].mxu1  ;;  %v330_v23 = vsel %vm173_vm2, %v323_v21, -inf }
 0x239   :  { %331 = vmax.xlane.f32.xlu1 %v330_v23 }
 0x24a   :  { %349 = vrot.lane.b32.xlu1 %v4463_v12, %s4299_s30 }
 0x24e   :  { %425 = vrot.lane.b32.xlu1 %v4467_v13, %s4299_s30  ;;  %s5029_s30 = sld [smem:[#allocation5_spill]] }
 0x252   :  { %503 = vrot.lane.b32.xlu1 %v4463_v12, %s4300_s5 }
 0x256   :  { %581 = vrot.lane.b32.xlu1 %v4467_v13, %s4300_s5 }
 0x2c2   :  { %v329_v24 = vpop.xlane.xlu1 %328 }
 0x2c3   :  { %v333_v25 = vsub.f32 %v245_v18, %v329_v24 }
 0x2c5   :  { %v335_v26 = vmul.f32 1.442695, %v333_v25 }
 0x2c6   :  { %v332_v27 = vpop.xlane.xlu1 %331 }
 0x2c7   :  { %4220 = vpow2.f32 %v335_v26  ;;  %v334_v28 = vsub.f32 %v323_v21, %v332_v27 }
 0x2c9   :  { %v337_v29 = vmul.f32 1.442695, %v334_v28 }
 0x2ca   :  { %v350_v30 = vpop.permute.xlu1 %349 }
 0x2cb   :  { %4222 = vpow2.f32 %v337_v29  ;;  %3914 = vmatpush3.msra.mxu0 %v350_v30 }
 0x2cc   :  { %3923 = vmatprep.subr.mxu0 %v4296_v8 }
 0x2ce   :  { %v426_v31 = vpop.permute.xlu1 %425 }
 0x2cf   :  { %3919 = vmatpush3.msra.mxu1 %v426_v31 }
 0x2d0   :  { %3928 = vmatprep.subr.mxu1 %v4296_v8 }
 0x2d1   :  { %v4221_v32 = vpop.eup %4220 }
 0x2d2   :  { %v339_v33 = vsel %vm173_vm2, %v4221_v32, 0.0  ;;  %v504_v36 = vpop.permute.xlu1 %503 }
 0x2d3   :  { %340 = vadd.xlane.f32.xlu0 %v339_v33 }
 0x2d5   :  { %v4223_v34 = vpop.eup %4222 }
 0x2d6   :  { %v342_v35 = vsel %vm173_vm2, %v4223_v34, 0.0  ;;  %v582_v37 = vpop.permute.xlu1 %581 }
 0x2d7   :  { %343 = vadd.xlane.f32.xlu1 %v342_v35 }
 0x2e8   :  { %579 = vrot.lane.b32.xlu1 %v4482_v17, %s4301_s2 }
 0x2e9   :  { %501 = vrot.lane.b32.xlu0 %v4474_v15, %s4301_s2 }
 0x360   :  { %v341_v38 = vpop.xlane.xlu0 %340 }
 0x361   :  { %4224 = vrcp.f32 %v341_v38 }
 0x364   :  { %v344_v39 = vpop.xlane.xlu1 %343  ;;  %v502_v44 = vpop.permute.xlu0 %501 }
 0x365   :  { %4226 = vrcp.f32 %v344_v39 }
 0x368   :  { %v580_v45 = vpop.permute.xlu1 %579 }
 0x36b   :  { %v4225_v40 = vpop.eup %4224 }
 0x36c   :  { %v347_v41 = vmul.f32 %v4225_v40, %v4221_v32 }
 0x36e   :  { %3916 = vmatmul.mubr.msk.f32.vlgmr.msra.gmra.mrb[0].mxu0 %vm173_vm2, %v347_v41 }
 0x36f   :  { %v4227_v42 = vpop.eup %4226  ;;  %3924 = vmatpush3.xpose.msk.msra.mxu0 %vm173_vm2, %v504_v36  ;;  %3925 = vmatprep.mubr.msk.f32.mxu0 %vm4297_vm1, %v4296_v8 }
 0x370   :  { %v348_v43 = vmul.f32 %v4227_v42, %v4223_v34  ;;  %3933 = vmatprep.subr.mxu0 %v4296_v8 }
 0x372   :  { %3921 = vmatmul.mubr.msk.f32.vlgmr.msra.gmra.mrb[6].mxu1 %vm173_vm2, %v348_v43  ;;  %3926 = vmatmul.mubr.msk.f32.vlgmr.msra.gmra.mrb[2].mxu0 %vm173_vm2, %v502_v44 }
 0x373   :  { %3929 = vmatpush3.xpose.msk.msra.mxu1 %vm173_vm2, %v582_v37  ;;  %3930 = vmatprep.mubr.msk.f32.mxu1 %vm4297_vm1, %v4296_v8 }
 0x374   :  { %3938 = vmatprep.subr.mxu1 %v4296_v8  ;;  %3935 = vmatprep.mubr.msk.f32.mxu0 %vm4297_vm1, %v4296_v8 }
 0x376   :  { %3931 = vmatmul.mubr.msk.f32.vlgmr.msra.gmra.mrb[8].mxu1 %vm173_vm2, %v580_v45 }
 0x377   :  { %3940 = vmatprep.mubr.msk.f32.mxu1 %vm4297_vm1, %v4296_v8 }
 0x441   :  { %v4521_v46 = vpop.f32.mrb[0].mxu0 }
 0x442   :  { %v3917_v47 = vpop.f32.mrb[1].mxu0 }
 0x445   :  { %v4523_v48 = vpop.f32.mrb[6].mxu1  ;;  %v575_v49 = vpop.f32.mrb[2].mxu0 }
 0x446   :  { %v3922_v50 = vpop.f32.mrb[7].mxu1  ;;  %v3927_v51 = vpop.f32.mrb[3].mxu0  ;;  %v657_v52 = vsel %vm173_vm2, %v575_v49, -inf }
 0x447   :  { %658 = vmax.xlane.f32.xlu1 %v657_v52 }
 0x449   :  { %v653_v53 = vpop.f32.mrb[8].mxu1 }
 0x44a   :  { %v3932_v54 = vpop.f32.mrb[9].mxu1  ;;  %v660_v55 = vsel %vm173_vm2, %v653_v53, -inf }
 0x44b   :  { %661 = vmax.xlane.f32.xlu0 %v660_v55 }
 0x458   :  { %679 = vrot.lane.b32.xlu1 %v4463_v12, %s4302_s23 }
 0x45c   :  { %833 = vrot.lane.b32.xlu1 %v4463_v12, %s4303_s0 }
 0x460   :  { %911 = vrot.lane.b32.xlu1 %v4467_v13, %s4303_s0 }
 0x461   :  { %755 = vrot.lane.b32.xlu0 %v4467_v13, %s4302_s23  ;;  %s5031_s23 = sld [smem:[#allocation7_spill]] }
 0x465   :  { %831 = vrot.lane.b32.xlu0 %v4474_v15, %s4304_s1 }
 0x4d4   :  { %v659_v56 = vpop.xlane.xlu1 %658 }
 0x4d5   :  { %v663_v57 = vsub.f32 %v575_v49, %v659_v56 }
 0x4d7   :  { %v665_v58 = vmul.f32 1.442695, %v663_v57 }
 0x4d8   :  { %v680_v59 = vpop.permute.xlu1 %679  ;;  %v662_v60 = vpop.xlane.xlu0 %661 }
 0x4d9   :  { %4228 = vpow2.f32 %v665_v58  ;;  %v664_v61 = vsub.f32 %v653_v53, %v662_v60  ;;  %3934 = vmatpush3.msra.mxu0 %v680_v59 }
 0x4da   :  { %3943 = vmatprep.subr.mxu0 %v4296_v8 }
 0x4db   :  { %v667_v62 = vmul.f32 1.442695, %v664_v61 }
 0x4dc   :  { %v756_v63 = vpop.permute.xlu0 %755  ;;  %v834_v4 = vpop.permute.xlu1 %833 }
 0x4dd   :  { %4230 = vpow2.f32 %v667_v62  ;;  %3939 = vmatpush3.msra.mxu1 %v756_v63 }
 0x4de   :  { %3948 = vmatprep.subr.mxu1 %v4296_v8 }
 0x4e0   :  { %v912_v6 = vpop.permute.xlu1 %911  ;;  %v832_v19 = vpop.permute.xlu0 %831 }
 0x4e3   :  { %v4229_v0 = vpop.eup %4228 }
 0x4e4   :  { %v669_v1 = vsel %vm173_vm2, %v4229_v0, 0.0 }
 0x4e5   :  { %670 = vadd.xlane.f32.xlu1 %v669_v1 }
 0x4e7   :  { %v4231_v2 = vpop.eup %4230 }
 0x4e8   :  { %v672_v3 = vsel %vm173_vm2, %v4231_v2, 0.0 }
 0x4e9   :  { %673 = vadd.xlane.f32.xlu1 %v672_v3 }
 0x4fa   :  { %909 = vrot.lane.b32.xlu1 %v4482_v17, %s4304_s1 }
 0x572   :  { %v671_v9 = vpop.xlane.xlu1 %670 }
 0x573   :  { %4232 = vrcp.f32 %v671_v9 }
 0x576   :  { %v674_v10 = vpop.xlane.xlu1 %673 }
 0x577   :  { %4234 = vrcp.f32 %v674_v10 }
 0x57a   :  { %v910_v20 = vpop.permute.xlu1 %909 }
 0x57d   :  { %v4233_v11 = vpop.eup %4232 }
 0x57e   :  { %v677_v14 = vmul.f32 %v4233_v11, %v4229_v0 }
 0x580   :  { %3936 = vmatmul.mubr.msk.f32.vlgmr.msra.gmra.mrb[4].mxu0 %vm173_vm2, %v677_v14 }
 0x581   :  { %v4235_v16 = vpop.eup %4234  ;;  %3944 = vmatpush3.xpose.msk.msra.mxu0 %vm173_vm2, %v834_v4  ;;  %3945 = vmatprep.mubr.msk.f32.mxu0 %vm4297_vm1, %v4296_v8 }
 0x582   :  { %v678_v18 = vmul.f32 %v4235_v16, %v4231_v2  ;;  %3953 = vmatprep.subr.mxu0 %v4296_v8 }
 0x584   :  { %3941 = vmatmul.mubr.msk.f32.vlgmr.msra.gmra.mrb[10].mxu1 %vm173_vm2, %v678_v18  ;;  %3946 = vmatmul.mubr.msk.f32.vlgmr.msra.gmra.mrb[6].mxu0 %vm173_vm2, %v832_v19 }
 0x585   :  { %3949 = vmatpush3.xpose.msk.msra.mxu1 %vm173_vm2, %v912_v6  ;;  %3950 = vmatprep.mubr.msk.f32.mxu1 %vm4297_vm1, %v4296_v8 }
 0x586   :  { %3958 = vmatprep.subr.mxu1 %v4296_v8  ;;  %3955 = vmatprep.mubr.msk.f32.mxu0 %vm4297_vm1, %v4296_v8 }
 0x588   :  { %3951 = vmatmul.mubr.msk.f32.vlgmr.msra.gmra.mrb[12].mxu1 %vm173_vm2, %v910_v20 }
 0x589   :  { %3960 = vmatprep.mubr.msk.f32.mxu1 %vm4297_vm1, %v4296_v8 }
 0x653   :  { %v4557_v21 = vpop.f32.mrb[4].mxu0 }
 0x654   :  { %v3937_v22 = vpop.f32.mrb[5].mxu0 }
 0x657   :  { %v4559_v23 = vpop.f32.mrb[10].mxu1  ;;  %v905_v24 = vpop.f32.mrb[6].mxu0 }
 0x658   :  { %v3942_v25 = vpop.f32.mrb[11].mxu1  ;;  %v3947_v26 = vpop.f32.mrb[7].mxu0  ;;  %v987_v27 = vsel %vm173_vm2, %v905_v24, -inf }
 0x659   :  { %988 = vmax.xlane.f32.xlu0 %v987_v27  ;;  %v1525_v25 = vld [vmem:[%s5029_s30 + $0x10] sm:$0xff]  ;;  %v1526_v26 = vld [vmem:[%s5029_s30 + $0x18] sm:$0xff] }
 0x65a   :  { %v4149_v27 = vpack.c.bf16 %v1526_v26, %v1525_v25 }
 0x65b   :  { %v983_v28 = vpop.f32.mrb[12].mxu1 }
 0x65c   :  { %v3952_v29 = vpop.f32.mrb[13].mxu1  ;;  %v990_v30 = vsel %vm173_vm2, %v983_v28, -inf }
 0x65d   :  { %991 = vmax.xlane.f32.xlu1 %v990_v30 }
 0x66e   :  { %1009 = vrot.lane.b32.xlu1 %v4463_v12, %s4305_s24 }
 0x66f   :  { %1085 = vrot.lane.b32.xlu0 %v4467_v13, %s4305_s24  ;;  %s5037_s24 = smov 24  }
 0x672   :  { %1163 = vrot.lane.b32.xlu1 %v4463_v12, %s5013_s10 }
 0x676   :  { %1241 = vrot.lane.b32.xlu1 %v4467_v13, %s5013_s10  ;;  %s5032_s10 = sld [smem:[#allocation8_spill]] }
 0x67a   :  { %1239 = vrot.lane.b32.xlu1 %v4482_v17, %s5017_s25 }
 0x6e6   :  { %v989_v31 = vpop.xlane.xlu0 %988 }
 0x6e7   :  { %v993_v32 = vsub.f32 %v905_v24, %v989_v31 }
 0x6e9   :  { %v995_v33 = vmul.f32 1.442695, %v993_v32 }
 0x6ea   :  { %v1086_v34 = vpop.permute.xlu0 %1085  ;;  %v992_v35 = vpop.xlane.xlu1 %991 }
 0x6eb   :  { %4236 = vpow2.f32 %v995_v33  ;;  %v994_v36 = vsub.f32 %v983_v28, %v992_v35  ;;  %3959 = vmatpush3.msra.mxu1 %v1086_v34 }
 0x6ec   :  { %3968 = vmatprep.subr.mxu1 %v4296_v8 }
 0x6ed   :  { %v997_v37 = vmul.f32 1.442695, %v994_v36 }
 0x6ee   :  { %v1010_v38 = vpop.permute.xlu1 %1009 }
 0x6ef   :  { %4238 = vpow2.f32 %v997_v37  ;;  %3954 = vmatpush3.msra.mxu0 %v1010_v38 }
 0x6f0   :  { %3963 = vmatprep.subr.mxu0 %v4296_v8 }
 0x6f2   :  { %v1164_v44 = vpop.permute.xlu1 %1163 }
 0x6f5   :  { %v4237_v39 = vpop.eup %4236 }
 0x6f6   :  { %v999_v40 = vsel %vm173_vm2, %v4237_v39, 0.0  ;;  %v1242_v50 = vpop.permute.xlu1 %1241 }
 0x6f7   :  { %1000 = vadd.xlane.f32.xlu0 %v999_v40 }
 0x6f9   :  { %v4239_v17 = vpop.eup %4238 }
 0x6fa   :  { %v1002_v41 = vsel %vm173_vm2, %v4239_v17, 0.0  ;;  %v1240_v52 = vpop.permute.xlu1 %1239 }
 0x6fb   :  { %1003 = vadd.xlane.f32.xlu0 %v1002_v41 }
 0x711   :  { %1161 = vrot.lane.b32.xlu0 %v4474_v15, %s5017_s25 }
 0x784   :  { %v1001_v42 = vpop.xlane.xlu0 %1000 }
 0x785   :  { %4240 = vrcp.f32 %v1001_v42 }
 0x788   :  { %v1004_v43 = vpop.xlane.xlu0 %1003 }
 0x789   :  { %4242 = vrcp.f32 %v1004_v43 }
 0x78c   :  { %v1162_v15 = vpop.permute.xlu0 %1161 }
 0x78f   :  { %v4241_v45 = vpop.eup %4240 }
 0x790   :  { %v1007_v47 = vmul.f32 %v4241_v45, %v4237_v39 }
 0x792   :  { %3956 = vmatmul.mubr.msk.f32.vlgmr.msra.gmra.mrb[8].mxu0 %vm173_vm2, %v1007_v47 }
 0x793   :  { %v4243_v49 = vpop.eup %4242  ;;  %3964 = vmatpush3.xpose.msk.msra.mxu0 %vm173_vm2, %v1164_v44  ;;  %3965 = vmatprep.mubr.msk.f32.mxu0 %vm4297_vm1, %v4296_v8 }
 0x794   :  { %v1008_v51 = vmul.f32 %v4243_v49, %v4239_v17  ;;  %3973 = vmatprep.subr.mxu0 %v4296_v8 }
 0x796   :  { %3961 = vmatmul.mubr.msk.f32.vlgmr.msra.gmra.mrb[14].mxu1 %vm173_vm2, %v1008_v51  ;;  %3966 = vmatmul.mubr.msk.f32.vlgmr.msra.gmra.mrb[10].mxu0 %vm173_vm2, %v1162_v15 }
 0x797   :  { %3969 = vmatpush3.xpose.msk.msra.mxu1 %vm173_vm2, %v1242_v50  ;;  %3970 = vmatprep.mubr.msk.f32.mxu1 %vm4297_vm1, %v4296_v8 }
 0x798   :  { %3978 = vmatprep.subr.mxu1 %v4296_v8  ;;  %3975 = vmatprep.mubr.msk.f32.mxu0 %vm4297_vm1, %v4296_v8 }
 0x79a   :  { %3971 = vmatmul.mubr.msk.f32.vlgmr.msra.gmra.mrb[16].mxu1 %vm173_vm2, %v1240_v52 }
 0x79b   :  { %3980 = vmatprep.mubr.msk.f32.mxu1 %vm4297_vm1, %v4296_v8 }
 0x865   :  { %v1081_v53 = vpop.f32.mrb[8].mxu0 }
 0x866   :  { %v3957_v54 = vpop.f32.mrb[9].mxu0 }
 0x869   :  { %v1157_v55 = vpop.f32.mrb[14].mxu1  ;;  %v1235_v56 = vpop.f32.mrb[10].mxu0 }
 0x86a   :  { %v3962_v57 = vpop.f32.mrb[15].mxu1  ;;  %v3967_v58 = vpop.f32.mrb[11].mxu0  ;;  %v1317_v59 = vsel %vm173_vm2, %v1235_v56, -inf }
 0x86b   :  { %1318 = vmax.xlane.f32.xlu0 %v1317_v59  ;;  %v4312_v59 = vmov 1983009808  }
 0x86d   :  { %v1313_v60 = vpop.f32.mrb[16].mxu1 }
 0x86e   :  { %v3972_v61 = vpop.f32.mrb[17].mxu1  ;;  %v1320_v62 = vsel %vm173_vm2, %v1313_v60, -inf }
 0x86f   :  { %1321 = vmax.xlane.f32.xlu1 %v1320_v62  ;;  %v1760_v61 = vlaneseq }
 0x880   :  { %1339 = vrot.lane.b32.xlu1 %v4463_v12, %s4308_s26 }
 0x884   :  { %1493 = vrot.lane.b32.xlu1 %v4557_v21, %s5011_s3 }
 0x888   :  { %1495 = vrot.lane.b32.xlu1 %v4559_v23, %s5011_s3  ;;  %v1524_v23 = vld [vmem:[%s5029_s30 + $0x8] sm:$0xff] }
 0x88c   :  { %1503 = vrot.lane.b32.xlu1 %v1157_v55, %s5009_s27 }
 0x8f8   :  { %v1319_v63 = vpop.xlane.xlu0 %1318 }
 0x8f9   :  { %v1323_v0 = vsub.f32 %v1235_v56, %v1319_v63  ;;  %v1761_v63 = vshrl.u32 %v1760_v61, 7 }
 0x8fb   :  { %v1325_v1 = vmul.f32 1.442695, %v1323_v0 }
 0x8fc   :  { %v1322_v2 = vpop.xlane.xlu1 %1321 }
 0x8fd   :  { %4244 = vpow2.f32 %v1325_v1  ;;  %v1324_v3 = vsub.f32 %v1313_v60, %v1322_v2  ;;  %v1758_v60 = vunpack.c.l.s4 %v4312_v59  ;;  %v73_v1 = vld [vmem:[%s5031_s23] sm:$0x3f] }
 0x8fe   :  { %v1788_v2 = vld [vmem:[%s5032_s10] sm:$0xff] }
 0x8ff   :  { %v1327_v4 = vmul.f32 1.442695, %v1324_v3  ;;  %v1759_v62 = vunpack.c.0.s8 %v1758_v60  ;;  %v1789_v3 = vld [vmem:[%s5032_s10 + $0x8] sm:$0xff] }
 0x900   :  { %v1340_v6 = vpop.permute.xlu1 %1339 }
 0x901   :  { %4246 = vpow2.f32 %v1327_v4  ;;  %3974 = vmatpush3.msra.mxu0 %v1340_v6  ;;  %v4648_v0 = vsub.s32 %v1759_v62, %v1761_v63  ;;  %v1756_v4 = vcombine.high %v73_v1, %v73_v1 }
 0x903   :  { %v1763_v6 = vrot.slane %v73_v1, %v4648_v0 }
 0x904   :  { %v1494_v32 = vpop.permute.xlu1 %1493 }
 0x905   :  { %v1515_v35 = vsel %vm173_vm2, %v4521_v46, %v1494_v32  ;;  %v1664_v32 = vld [vmem:[%s4988_s8 + $0x10] sm:$0xff] }
 0x907   :  { %v4245_v12 = vpop.eup %4244 }
 0x908   :  { %v1329_v9 = vsel %vm173_vm2, %v4245_v12, 0.0  ;;  %v1496_v33 = vpop.permute.xlu1 %1495 }
 0x909   :  { %1330 = vadd.xlane.f32.xlu0 %v1329_v9  ;;  %v1516_v40 = vsel %vm173_vm2, %v4523_v48, %v1496_v33  ;;  %v74_v9 = vld [vmem:[%s5031_s23 + $0x8] sm:$0x3f]  ;;  %v1665_v33 = vld [vmem:[%s4988_s8 + $0x18] sm:$0xff] }
 0x90b   :  { %v4247_v10 = vpop.eup %4246 }
 0x90c   :  { %v1332_v11 = vsel %vm173_vm2, %v4247_v10, 0.0  ;;  %v1504_v36 = vpop.permute.xlu1 %1503 }
 0x90d   :  { %1333 = vadd.xlane.f32.xlu0 %v1332_v11  ;;  %v1519_v17 = vsel %vm1517_vm4, %v1516_v40, %v1504_v36  ;;  %v1771_v11 = vcombine.high %v1763_v6, %v1763_v6 }
 0x923   :  { %1415 = vrot.lane.b32.xlu0 %v4467_v13, %s4308_s26  ;;  %v1523_v13 = vld [vmem:[%s5029_s30] sm:$0xff] }
 0x924   :  { %v4145_v24 = vpack.c.bf16 %v1524_v23, %v1523_v13 }
 0x926   :  { %4146 = vmatprep.subr.bf16.mxu0 %v4145_v24 }
 0x927   :  { %1501 = vrot.lane.b32.xlu0 %v1081_v53, %s5009_s27  ;;  %s5030_s27 = sld [smem:[#allocation6_spill]] }
 0x92d   :  { %v3726_v46 = vld [vmem:[%s5030_s27] ss:$0 sm:$0xff] }
 0x996   :  { %v1331_v14 = vpop.xlane.xlu0 %1330 }
 0x997   :  { %4248 = vrcp.f32 %v1331_v14  ;;  %v1779_v14 = vrot.slane %v74_v9, %v4648_v0 }
 0x999   :  { %v1787_v13 = vcombine.high %v1779_v14, %v1779_v14 }
 0x99a   :  { %v1334_v16 = vpop.xlane.xlu0 %1333 }
 0x99b   :  { %4250 = vrcp.f32 %v1334_v16  ;;  %v1772_v16 = vcombine.high %v74_v9, %v74_v9 }
 0x99d   :  { %v1786_v23 = vrot.slane %v1772_v16, %v4648_v0 }
 0x99e   :  { %v1416_v18 = vpop.permute.xlu0 %1415 }
 0x99f   :  { %3979 = vmatpush3.msra.mxu1 %v1416_v18  ;;  %v1790_v18 = vld [vmem:[%s5032_s10 + $0x10] sm:$0xff]  ;;  %v1816_v26 = vcombine.low %v1787_v13, %v1786_v23 }
 0x9a1   :  { %v4249_v19 = vpop.eup %4248 }
 0x9a2   :  { %v1337_v20 = vmul.f32 %v4249_v19, %v4245_v12  ;;  %v1502_v34 = vpop.permute.xlu0 %1501  ;;  %v4161_v12 = vpack.c.bf16 %v1789_v3, %v1788_v2  ;;  %v1791_v19 = vld [vmem:[%s5032_s10 + $0x18] sm:$0xff] }
 0x9a3   :  { %v1518_v37 = vsel %vm1517_vm4, %v1515_v35, %v1502_v34  ;;  %v4157_v34 = vpack.c.bf16 %v1665_v33, %v1664_v32 }
 0x9a4   :  { %3976 = vmatmul.mubr.msk.f32.vlgmr.msra.gmra.mrb[12].mxu0 %vm173_vm2, %v1337_v20  ;;  %v1799_v20 = vcombine.low %v1763_v6, %v1771_v11 }
 0x9a5   :  { %v4251_v21 = vpop.eup %4250  ;;  %4148 = vmatpush3.bf16.msra.mxu0 %v4145_v24 }
 0x9a6   :  { %v1338_v22 = vmul.f32 %v4251_v21, %v4247_v10  ;;  %4150 = vmatprep.subr.bf16.mxu0 %v4149_v27  ;;  %v1770_v10 = vrot.slane %v1756_v4, %v4648_v0  ;;  %v1807_v24 = vrot.slane %v1799_v20, %v4648_v0  ;;  %v3731_v4 = vld [vmem:[%s4992_s9] ss:$0 sm:$0xff]  ;;  %s5033_s9 = smov 104  }
 0x9a8   :  { %3981 = vmatmul.mubr.msk.f32.vlgmr.msra.gmra.mrb[18].mxu1 %vm173_vm2, %v1338_v22  ;;  %v1800_v21 = vcombine.low %v1770_v10, %v1779_v14  ;;  %v4165_v22 = vpack.c.bf16 %v1791_v19, %v1790_v18 }
 0x9a9   :  { %4152 = vmatpush3.bf16.msra.mxu0 %v4149_v27 }
 0x9aa   :  { %4162 = vmatprep.subr.bf16.mxu0 %v4161_v12  ;;  %v1814_v25 = vrot.slane %v1800_v21, %v4648_v0 }
 0x9ac   :  { %v1815_v27 = vcombine.low %v1807_v24, %v1814_v25 }
 0xa77   :  { %v1411_v28 = vpop.f32.mrb[12].mxu0 }
 0xa78   :  { %1509 = vrot.lane.b32.xlu0 %v1411_v28, %s5015_s4  ;;  %v3977_v29 = vpop.f32.mrb[13].mxu0  ;;  %v1823_v28 = vrot.slane %v1816_v26, %v4648_v0 }
 0xa79   :  { %v1662_v29 = vld [vmem:[%s4988_s8] sm:$0xff] }
 0xa7b   :  { %v1487_v30 = vpop.f32.mrb[18].mxu1 }
 0xa7c   :  { %1511 = vrot.lane.b32.xlu1 %v1487_v30, %s5015_s4  ;;  %v3982_v31 = vpop.f32.mrb[19].mxu1  ;;  %v1663_v30 = vld [vmem:[%s4988_s8 + $0x8] sm:$0xff] }
 0xa7d   :  { %v4153_v31 = vpack.c.bf16 %v1663_v30, %v1662_v29 }
 0xa7f   :  { %4154 = vmatprep.subr.bf16.mxu1 %v4153_v31 }
 0xa80   :  { %4156 = vmatpush3.bf16.msra.mxu1 %v4153_v31 }
 0xa81   :  { %4158 = vmatprep.subr.bf16.mxu1 %v4157_v34 }
 0xa84   :  { %4160 = vmatpush3.bf16.msra.mxu1 %v4157_v34 }
 0xa85   :  { %4016 = vmatprep.subr.mxu1 %v4296_v8 }
 0xaea   :  { %v1510_v38 = vpop.permute.xlu0 %1509 }
 0xaeb   :  { %v1521_v39 = vsel %vm1520_vm3, %v1518_v37, %v1510_v38 }
 0xaec   :  { %3991 = vmatprep.mubr.msk.f32.mxu0 %vm86_vm0, %v1521_v39 }
 0xaee   :  { %v1512_v41 = vpop.permute.xlu1 %1511 }
 0xaef   :  { %v1522_v42 = vsel %vm1520_vm3, %v1519_v17, %v1512_v41  ;;  %v3729_v41 = vld [vmem:[%s4989_s6] ss:$0 sm:$0xff] }
 0xaf0   :  { %3992 = vmatmul.mubr.msk.f32.vlgmr.msra.gmra.mrb[14].mxu0 %vm86_vm0, %v1522_v42 }
 0xaf1   :  { %4164 = vmatpush3.bf16.msra.mxu0 %v4161_v12  ;;  %4013 = vmatprep.mubr.msk.f32.mxu0 %vm86_vm0, %v1815_v27 }
 0xaf2   :  { %4166 = vmatprep.subr.bf16.mxu0 %v4165_v22 }
 0xaf5   :  { %4168 = vmatpush3.bf16.msra.mxu0 %v4165_v22 }
 0xaf6   :  { %4026 = vmatprep.subr.mxu0 %v4296_v8 }
 0xaf8   :  { %4014 = vmatmul.mubr.msk.f32.vlgmr.msra.gmra.mrb[16].mxu0 %vm86_vm0, %v1823_v28 }
 0xaf9   :  { %4028 = vmatprep.mubr.msk.f32.mxu0 %vm4297_vm1, %v4296_v8 }
 0xbc3   :  { %v3993_v43 = vpop.f32.mrb[14].mxu0 }
 0xbc4   :  { %v1612_v44 = vadd.f32 %v3993_v43, %v3726_v46  ;;  %v1606_v45 = vpop.f32.mrb[15].mxu0 }
 0xbc5   :  { %v1607_v47 = vadd.f32 %v3726_v46, %v1606_v45  ;;  %v3730_v46 = vld [vmem:[%s4990_s7] ss:$0 sm:$0xff] }
 0xbc6   :  { %v1616_v49 = vadd.f32 %v1612_v44, %v4450_v7 }
 0xbc7   :  { %v1615_v50 = vadd.f32 %v1607_v47, %v4443_v5 }
 0xbc8   :  { %v1622_v48 = vsel %vm86_vm0, %v1616_v49, 0.0 }
 0xbc9   :  { %1623 = vadd.xlane.f32.xlu1 %v1622_v48  ;;  %v1619_v51 = vsel %vm86_vm0, %v1615_v50, 0.0  ;;  %v3734_v48 = vld [vmem:[%s4991_s11] ss:$0 sm:$0xff] }
 0xbca   :  { %1620 = vadd.xlane.f32.xlu0 %v1619_v51 }
 0xbcb   :  { %v4015_v51 = vpop.f32.mrb[16].mxu0 }
 0xc56   :  { %v1624_v15 = vpop.xlane.xlu1 %1623 }
 0xc57   :  { %v1627_v52 = vmul.f32 0.03125, %v1624_v15  ;;  %v1621_v53 = vpop.xlane.xlu0 %1620  ;;  %v1900_v15 = vadd.f32 %v4015_v51, %v3734_v48 }
 0xc58   :  { %v1626_v54 = vmul.f32 0.03125, %v1621_v53 }
 0xc59   :  { %v4638_v55 = vsub.f32 %v1616_v49, %v1627_v52  ;;  %v1894_v52 = vpop.f32.mrb[17].mxu0 }
 0xc5a   :  { %v4640_v56 = vsub.f32 %v1615_v50, %v1626_v54  ;;  %v1895_v53 = vadd.f32 %v3734_v48, %v1894_v52  ;;  %v1928_v54 = vrot.slane %v1900_v15, %v4648_v0 }
 0xc5b   :  { %v1631_v5 = vmul.f32 %v4638_v55, %v4638_v55 }
 0xc5c   :  { %v1630_v57 = vmul.f32 %v4640_v56, %v4640_v56 }
 0xc5d   :  { %v1635_v58 = vsel %vm86_vm0, %v1631_v5, 0.0 }
 0xc5e   :  { %v1632_v7 = vsel %vm86_vm0, %v1630_v57, 0.0  ;;  %v1929_v57 = vcombine.high %v1928_v54, %v1928_v54 }
 0xc5f   :  { %1633 = vadd.xlane.f32.xlu0 %v1632_v7 }
 0xc60   :  { %v2037_v61 = vrot.slane %v1929_v57, %v4648_v0 }
 0xc63   :  { %1636 = vadd.xlane.f32.xlu0 %v1635_v58 }
 0xcec   :  { %v1634_v35 = vpop.xlane.xlu0 %1633 }
 0xced   :  { %v1638_v36 = vmul.f32 0.03125, %v1634_v35 }
 0xcef   :  { %v1640_v37 = vadd.f32 1e-05, %v1638_v36 }
 0xcf0   :  { %v1637_v38 = vpop.xlane.xlu0 %1636 }
 0xcf1   :  { %4252 = vrsqrt.f32 %v1640_v37  ;;  %v1639_v39 = vmul.f32 0.03125, %v1637_v38 }
 0xcf3   :  { %v1641_v40 = vadd.f32 1e-05, %v1639_v39 }
 0xcf5   :  { %4254 = vrsqrt.f32 %v1641_v40 }
 0xcfb   :  { %v4253_v17 = vpop.eup %4252 }
 0xcfc   :  { %v1644_v42 = vmul.f32 %v4253_v17, %v4640_v56  ;;  %v1912_v56 = vrot.slane %v1895_v53, %v4648_v0 }
 0xcfe   :  { %v1652_v43 = vmul.f32 %v3729_v41, %v1644_v42  ;;  %v1920_v5 = vcombine.high %v1912_v56, %v1912_v56 }
 0xcff   :  { %v4255_v44 = vpop.eup %4254 }
 0xd00   :  { %v1645_v45 = vmul.f32 %v4255_v44, %v4638_v55  ;;  %v4701_v47 = vadd.f32 %v3730_v46, %v1652_v43  ;;  %v1905_v55 = vcombine.high %v1895_v53, %v1895_v53  ;;  %v1932_v59 = vcombine.low %v1912_v56, %v1920_v5 }
 0xd02   :  { %v1653_v49 = vmul.f32 %v3729_v41, %v1645_v45  ;;  %4002 = vmatprep.mubr.msk.f32.mxu1 %vm86_vm0, %v4701_v47  ;;  %v1919_v7 = vrot.slane %v1905_v55, %v4648_v0  ;;  %v1939_v62 = vrot.slane %v1932_v59, %v4648_v0 }
 0xd04   :  { %v4705_v50 = vadd.f32 %v3730_v46, %v1653_v49  ;;  %v1921_v58 = vcombine.high %v1919_v7, %v1919_v7  ;;  %v1946_v60 = vrot.slane %v1919_v7, %v4648_v0 }
 0xd06   :  { %4003 = vmatmul.mubr.msk.f32.vlgmr.msra.gmra.mrb[20].mxu1 %vm86_vm0, %v4705_v50  ;;  %v2023_v63 = vcombine.low %v1921_v58, %v1928_v54  ;;  %v4720_v1 = vcombine.low %v1939_v62, %v1946_v60 }
 0xd07   :  { %4018 = vmatprep.mubr.msk.f32.mxu1 %vm4297_vm1, %v4296_v8 }
 0xd08   :  { %v2030_v2 = vrot.slane %v2023_v63, %v4648_v0  ;;  %4017 = vmatpush3.xpose.msk.msra.mxu1 %vm173_vm2, %v4720_v1 }
 0xd09   :  { %4021 = vmatprep.subr.mxu1 %v4296_v8 }
 0xd0a   :  { %v4723_v3 = vcombine.low %v2030_v2, %v2037_v61 }
 0xdd9   :  { %v4004_v6 = vpop.f32.mrb[20].mxu1 }
 0xdda   :  { %v1745_v12 = vpop.f32.mrb[21].mxu1  ;;  %v1751_v10 = vadd.f32 %v4004_v6, %v3731_v4 }
 0xddb   :  { %v1746_v9 = vadd.f32 %v3731_v4, %v1745_v12 }
 0xddc   :  { %v4739_v0 = vmul.f32 0.35355338, %v1751_v10 }
 0xddd   :  { %v4731_v11 = vmul.f32 0.35355338, %v1746_v9 }
 0xddf   :  { %4019 = vmatmul.mubr.msk.f32.vlgmr.msra.gmra.mrb[22].mxu1 %vm173_vm2, %v4731_v11 }
 0xde0   :  { %4022 = vmatpush3.xpose.msk.msra.mxu1 %vm173_vm2, %v4723_v3  ;;  %4023 = vmatprep.mubr.msk.f32.mxu1 %vm4297_vm1, %v4296_v8 }
 0xde1   :  { %4031 = vmatprep.subr.mxu1 %v4296_v8 }
 0xde3   :  { %4024 = vmatmul.mubr.msk.f32.vlgmr.msra.gmra.mrb[24].mxu1 %vm173_vm2, %v4739_v0 }
 0xde4   :  { %4033 = vmatprep.mubr.msk.f32.mxu1 %vm4297_vm1, %v4296_v8 }
 0xeb2   :  { %v2019_v14 = vpop.f32.mrb[22].mxu1 }
 0xeb3   :  { %v4020_v16 = vpop.f32.mrb[23].mxu1  ;;  %v2115_v18 = vsel %vm2114_vm5, %v2019_v14, -inf }
 0xeb4   :  { %2116 = vmax.xlane.f32.xlu1 %v2115_v18 }
 0xeb6   :  { %v2110_v19 = vpop.f32.mrb[24].mxu1 }
 0xeb7   :  { %v4025_v20 = vpop.f32.mrb[25].mxu1  ;;  %v2118_v21 = vsel %vm2114_vm5, %v2110_v19, -inf }
 0xeb8   :  { %2119 = vmax.xlane.f32.xlu0 %v2118_v21 }
 0xec5   :  { %2137 = vrot.lane.b32.xlu1 %v4720_v1, %s4298_s29 }
 0xec9   :  { %2294 = vrot.lane.b32.xlu1 %v4720_v1, %s4301_s2 }
 0xecd   :  { %2372 = vrot.lane.b32.xlu1 %v4723_v3, %s4301_s2 }
 0xece   :  { %2215 = vrot.lane.b32.xlu0 %v4723_v3, %s4298_s29  ;;  %s5034_s29 = smov 72  }
 0xf41   :  { %v2117_v22 = vpop.xlane.xlu1 %2116 }
 0xf42   :  { %v2121_v13 = vsub.f32 %v2019_v14, %v2117_v22 }
 0xf44   :  { %v2123_v23 = vmul.f32 1.442695, %v2121_v13 }
 0xf45   :  { %v2138_v24 = vpop.permute.xlu1 %2137  ;;  %v2120_v25 = vpop.xlane.xlu0 %2119 }
 0xf46   :  { %4256 = vpow2.f32 %v2123_v23  ;;  %v2122_v26 = vsub.f32 %v2110_v19, %v2120_v25  ;;  %4027 = vmatpush3.msk.msra.mxu0 %vm2142_vm6, %v2138_v24 }
 0xf47   :  { %4036 = vmatprep.subr.mxu0 %v4296_v8 }
 0xf48   :  { %v2125_v27 = vmul.f32 1.442695, %v2122_v26 }
 0xf49   :  { %v2216_v28 = vpop.permute.xlu0 %2215  ;;  %v2295_v33 = vpop.permute.xlu1 %2294 }
 0xf4a   :  { %4258 = vpow2.f32 %v2125_v27  ;;  %4032 = vmatpush3.msk.msra.mxu1 %vm2142_vm6, %v2216_v28 }
 0xf4b   :  { %4041 = vmatprep.subr.mxu1 %v4296_v8 }
 0xf4d   :  { %v2373_v34 = vpop.permute.xlu1 %2372 }
 0xf50   :  { %v4257_v29 = vpop.eup %4256 }
 0xf51   :  { %v2127_v30 = vsel %vm2114_vm5, %v4257_v29, 0.0 }
 0xf52   :  { %2128 = vadd.xlane.f32.xlu1 %v2127_v30 }
 0xf54   :  { %v4259_v31 = vpop.eup %4258 }
 0xf55   :  { %v2130_v32 = vsel %vm2114_vm5, %v4259_v31, 0.0 }
 0xf56   :  { %2131 = vadd.xlane.f32.xlu0 %v2130_v32 }
 0xf63   :  { %2370 = vrot.lane.b32.xlu1 %v4739_v0, %s4301_s2 }
 0xf6c   :  { %2292 = vrot.lane.b32.xlu0 %v4731_v11, %s4301_s2  ;;  %s5036_s2 = smov 16  }
 0xfdf   :  { %v2129_v35 = vpop.xlane.xlu1 %2128 }
 0xfe0   :  { %4260 = vrcp.f32 %v2129_v35 }
 0xfe3   :  { %v2132_v36 = vpop.xlane.xlu0 %2131  ;;  %v2371_v41 = vpop.permute.xlu1 %2370 }
 0xfe4   :  { %4262 = vrcp.f32 %v2132_v36 }
 0xfe7   :  { %v2293_v17 = vpop.permute.xlu0 %2292 }
 0xfea   :  { %v4261_v37 = vpop.eup %4260 }
 0xfeb   :  { %v2135_v38 = vmul.f32 %v4261_v37, %v4257_v29 }
 0xfed   :  { %4029 = vmatmul.mubr.msk.f32.vlgmr.msra.gmra.mrb[18].mxu0 %vm2114_vm5, %v2135_v38 }
 0xfee   :  { %v4263_v39 = vpop.eup %4262  ;;  %4037 = vmatpush3.xpose.msk.msra.mxu0 %vm173_vm2, %v2295_v33  ;;  %4038 = vmatprep.mubr.msk.f32.mxu0 %vm4297_vm1, %v4296_v8 }
 0xfef   :  { %v2136_v40 = vmul.f32 %v4263_v39, %v4259_v31  ;;  %4046 = vmatprep.subr.mxu0 %v4296_v8 }
 0xff1   :  { %4034 = vmatmul.mubr.msk.f32.vlgmr.msra.gmra.mrb[26].mxu1 %vm2114_vm5, %v2136_v40  ;;  %4039 = vmatmul.mubr.msk.f32.vlgmr.msra.gmra.mrb[20].mxu0 %vm173_vm2, %v2293_v17 }
 0xff2   :  { %4042 = vmatpush3.xpose.msk.msra.mxu1 %vm173_vm2, %v2373_v34  ;;  %4043 = vmatprep.mubr.msk.f32.mxu1 %vm4297_vm1, %v4296_v8 }
 0xff3   :  { %4051 = vmatprep.subr.mxu1 %v4296_v8  ;;  %4048 = vmatprep.mubr.msk.f32.mxu0 %vm4297_vm1, %v4296_v8 }
 0xff5   :  { %4044 = vmatmul.mubr.msk.f32.vlgmr.msra.gmra.mrb[28].mxu1 %vm173_vm2, %v2371_v41 }
 0xff6   :  { %4053 = vmatprep.mubr.msk.f32.mxu1 %vm4297_vm1, %v4296_v8 }
0x10c0   :  { %v4782_v42 = vpop.f32.mrb[18].mxu0 }
0x10c1   :  { %v4030_v46 = vpop.f32.mrb[19].mxu0 }
0x10c4   :  { %v4784_v43 = vpop.f32.mrb[26].mxu1  ;;  %v2366_v44 = vpop.f32.mrb[20].mxu0 }
0x10c5   :  { %v4035_v45 = vpop.f32.mrb[27].mxu1  ;;  %v4040_v49 = vpop.f32.mrb[21].mxu0  ;;  %v2448_v48 = vsel %vm2114_vm5, %v2366_v44, -inf }
0x10c6   :  { %2449 = vmax.xlane.f32.xlu0 %v2448_v48 }
0x10c8   :  { %v2444_v51 = vpop.f32.mrb[28].mxu1 }
0x10c9   :  { %v4045_v15 = vpop.f32.mrb[29].mxu1  ;;  %v2451_v52 = vsel %vm2114_vm5, %v2444_v51, -inf }
0x10ca   :  { %2452 = vmax.xlane.f32.xlu1 %v2451_v52 }
0x10db   :  { %2470 = vrot.lane.b32.xlu1 %v4720_v1, %s4300_s5 }
0x10dc   :  { %2547 = vrot.lane.b32.xlu0 %v4723_v3, %s4300_s5  ;;  %s5035_s5 = smov 8  }
0x10df   :  { %2626 = vrot.lane.b32.xlu1 %v4720_v1, %s4304_s1 }
0x10e3   :  { %2704 = vrot.lane.b32.xlu1 %v4723_v3, %s4304_s1 }
0x10e7   :  { %2702 = vrot.lane.b32.xlu1 %v4739_v0, %s4304_s1 }
0x1153   :  { %v2450_v53 = vpop.xlane.xlu0 %2449 }
0x1154   :  { %v2454_v54 = vsub.f32 %v2366_v44, %v2450_v53 }
0x1156   :  { %v2456_v55 = vmul.f32 1.442695, %v2454_v54 }
0x1157   :  { %v2548_v56 = vpop.permute.xlu0 %2547  ;;  %v2453_v57 = vpop.xlane.xlu1 %2452 }
0x1158   :  { %4264 = vpow2.f32 %v2456_v55  ;;  %v2455_v7 = vsub.f32 %v2444_v51, %v2453_v57  ;;  %4052 = vmatpush3.msk.msra.mxu1 %vm2142_vm6, %v2548_v56 }
0x1159   :  { %4061 = vmatprep.subr.mxu1 %v4296_v8 }
0x115a   :  { %v2458_v5 = vmul.f32 1.442695, %v2455_v7 }
0x115b   :  { %v2471_v58 = vpop.permute.xlu1 %2470 }
0x115c   :  { %4266 = vpow2.f32 %v2458_v5  ;;  %4047 = vmatpush3.msk.msra.mxu0 %vm2142_vm6, %v2471_v58 }
0x115d   :  { %4056 = vmatprep.subr.mxu0 %v4296_v8 }
0x115f   :  { %v2627_v4 = vpop.permute.xlu1 %2626 }
0x1162   :  { %v4265_v59 = vpop.eup %4264 }
0x1163   :  { %v2460_v60 = vsel %vm2114_vm5, %v4265_v59, 0.0  ;;  %v2705_v10 = vpop.permute.xlu1 %2704 }
0x1164   :  { %2461 = vadd.xlane.f32.xlu0 %v2460_v60 }
0x1166   :  { %v4267_v61 = vpop.eup %4266 }
0x1167   :  { %v2463_v62 = vsel %vm2114_vm5, %v4267_v61, 0.0  ;;  %v2703_v18 = vpop.permute.xlu1 %2702 }
0x1168   :  { %2464 = vadd.xlane.f32.xlu0 %v2463_v62 }
0x117e   :  { %2624 = vrot.lane.b32.xlu0 %v4731_v11, %s4304_s1 }
0x11f1   :  { %v2462_v63 = vpop.xlane.xlu0 %2461 }
0x11f2   :  { %4268 = vrcp.f32 %v2462_v63 }
0x11f5   :  { %v2465_v2 = vpop.xlane.xlu0 %2464 }
0x11f6   :  { %4270 = vrcp.f32 %v2465_v2 }
0x11f9   :  { %v2625_v16 = vpop.permute.xlu0 %2624 }
0x11fc   :  { %v4269_v6 = vpop.eup %4268 }
0x11fd   :  { %v2468_v12 = vmul.f32 %v4269_v6, %v4265_v59 }
0x11ff   :  { %4049 = vmatmul.mubr.msk.f32.vlgmr.msra.gmra.mrb[22].mxu0 %vm2114_vm5, %v2468_v12 }
0x1200   :  { %v4271_v9 = vpop.eup %4270  ;;  %4057 = vmatpush3.xpose.msk.msra.mxu0 %vm173_vm2, %v2627_v4  ;;  %4058 = vmatprep.mubr.msk.f32.mxu0 %vm4297_vm1, %v4296_v8 }
0x1201   :  { %v2469_v14 = vmul.f32 %v4271_v9, %v4267_v61  ;;  %4066 = vmatprep.subr.mxu0 %v4296_v8 }
0x1203   :  { %4054 = vmatmul.mubr.msk.f32.vlgmr.msra.gmra.mrb[30].mxu1 %vm2114_vm5, %v2469_v14  ;;  %4059 = vmatmul.mubr.msk.f32.vlgmr.msra.gmra.mrb[24].mxu0 %vm173_vm2, %v2625_v16 }
0x1204   :  { %4062 = vmatpush3.xpose.msk.msra.mxu1 %vm173_vm2, %v2705_v10  ;;  %4063 = vmatprep.mubr.msk.f32.mxu1 %vm4297_vm1, %v4296_v8 }
0x1205   :  { %4071 = vmatprep.subr.mxu1 %v4296_v8  ;;  %4068 = vmatprep.mubr.msk.f32.mxu0 %vm4297_vm1, %v4296_v8 }
0x1207   :  { %4064 = vmatmul.mubr.msk.f32.vlgmr.msra.gmra.mrb[32].mxu1 %vm173_vm2, %v2703_v18 }
0x1208   :  { %4073 = vmatprep.mubr.msk.f32.mxu1 %vm4297_vm1, %v4296_v8 }
0x12d2   :  { %v4822_v19 = vpop.f32.mrb[22].mxu0 }
0x12d3   :  { %v4050_v20 = vpop.f32.mrb[23].mxu0 }
0x12d4   :  { %v3319_v20 = vld [vmem:[%s4993_s12 + $0x8] sm:$0xff] }
0x12d6   :  { %v4824_v21 = vpop.f32.mrb[30].mxu1  ;;  %v2698_v22 = vpop.f32.mrb[24].mxu0 }
0x12d7   :  { %v4055_v13 = vpop.f32.mrb[31].mxu1  ;;  %v4060_v23 = vpop.f32.mrb[25].mxu0  ;;  %v2780_v24 = vsel %vm2114_vm5, %v2698_v22, -inf }
0x12d8   :  { %2781 = vmax.xlane.f32.xlu0 %v2780_v24  ;;  %v3321_v13 = vld [vmem:[%s4993_s12 + $0x18] sm:$0xff] }
0x12da   :  { %v2776_v25 = vpop.f32.mrb[32].mxu1 }
0x12db   :  { %v4065_v26 = vpop.f32.mrb[33].mxu1  ;;  %v2783_v27 = vsel %vm2114_vm5, %v2776_v25, -inf }
0x12dc   :  { %2784 = vmax.xlane.f32.xlu1 %v2783_v27 }
0x12ed   :  { %2802 = vrot.lane.b32.xlu1 %v4720_v1, %s4303_s0 }
0x12ee   :  { %2879 = vrot.lane.b32.xlu0 %v4723_v3, %s4303_s0 }
0x12f1   :  { %2958 = vrot.lane.b32.xlu1 %v4720_v1, %s5033_s9 }
0x12f5   :  { %3036 = vrot.lane.b32.xlu1 %v4723_v3, %s5033_s9 }
0x12f9   :  { %3034 = vrot.lane.b32.xlu1 %v4739_v0, %s5033_s9 }
0x1365   :  { %v2782_v28 = vpop.xlane.xlu0 %2781 }
0x1366   :  { %v2786_v29 = vsub.f32 %v2698_v22, %v2782_v28  ;;  %v3320_v22 = vld [vmem:[%s4993_s12 + $0x10] sm:$0xff] }
0x1367   :  { %v4173_v23 = vpack.c.bf16 %v3321_v13, %v3320_v22 }
0x1368   :  { %v2788_v30 = vmul.f32 1.442695, %v2786_v29 }
0x1369   :  { %v2880_v31 = vpop.permute.xlu0 %2879  ;;  %v2785_v32 = vpop.xlane.xlu1 %2784 }
0x136a   :  { %4272 = vpow2.f32 %v2788_v30  ;;  %v2787_v33 = vsub.f32 %v2776_v25, %v2785_v32  ;;  %4072 = vmatpush3.msk.msra.mxu1 %vm2142_vm6, %v2880_v31 }
0x136b   :  { %4081 = vmatprep.subr.mxu1 %v4296_v8 }
0x136c   :  { %v2790_v34 = vmul.f32 1.442695, %v2787_v33 }
0x136d   :  { %v2803_v35 = vpop.permute.xlu1 %2802 }
0x136e   :  { %4274 = vpow2.f32 %v2790_v34  ;;  %4067 = vmatpush3.msk.msra.mxu0 %vm2142_vm6, %v2803_v35 }
0x136f   :  { %4076 = vmatprep.subr.mxu0 %v4296_v8 }
0x1371   :  { %v2959_v17 = vpop.permute.xlu1 %2958 }
0x1374   :  { %v4273_v36 = vpop.eup %4272 }
0x1375   :  { %v2792_v0 = vsel %vm2114_vm5, %v4273_v36, 0.0  ;;  %v3037_v45 = vpop.permute.xlu1 %3036 }
0x1376   :  { %2793 = vadd.xlane.f32.xlu0 %v2792_v0 }
0x1378   :  { %v4275_v37 = vpop.eup %4274 }
0x1379   :  { %v2795_v38 = vsel %vm2114_vm5, %v4275_v37, 0.0  ;;  %v3035_v48 = vpop.permute.xlu1 %3034 }
0x137a   :  { %2796 = vadd.xlane.f32.xlu0 %v2795_v38 }
0x1390   :  { %2956 = vrot.lane.b32.xlu0 %v4731_v11, %s5033_s9 }
0x1403   :  { %v2794_v39 = vpop.xlane.xlu0 %2793 }
0x1404   :  { %4276 = vrcp.f32 %v2794_v39 }
0x1407   :  { %v2797_v40 = vpop.xlane.xlu0 %2796 }
0x1408   :  { %4278 = vrcp.f32 %v2797_v40 }
0x140b   :  { %v2957_v11 = vpop.permute.xlu0 %2956 }
0x140e   :  { %v4277_v41 = vpop.eup %4276 }
0x140f   :  { %v2800_v46 = vmul.f32 %v4277_v41, %v4273_v36 }
0x1411   :  { %4069 = vmatmul.mubr.msk.f32.vlgmr.msra.gmra.mrb[26].mxu0 %vm2114_vm5, %v2800_v46 }
0x1412   :  { %v4279_v44 = vpop.eup %4278  ;;  %4077 = vmatpush3.xpose.msk.msra.mxu0 %vm173_vm2, %v2959_v17  ;;  %4078 = vmatprep.mubr.msk.f32.mxu0 %vm4297_vm1, %v4296_v8 }
0x1413   :  { %v2801_v49 = vmul.f32 %v4279_v44, %v4275_v37  ;;  %4086 = vmatprep.subr.mxu0 %v4296_v8 }
0x1415   :  { %4074 = vmatmul.mubr.msk.f32.vlgmr.msra.gmra.mrb[34].mxu1 %vm2114_vm5, %v2801_v49  ;;  %4079 = vmatmul.mubr.msk.f32.vlgmr.msra.gmra.mrb[28].mxu0 %vm173_vm2, %v2957_v11 }
0x1416   :  { %4082 = vmatpush3.xpose.msk.msra.mxu1 %vm173_vm2, %v3037_v45  ;;  %4083 = vmatprep.mubr.msk.f32.mxu1 %vm4297_vm1, %v4296_v8 }
0x1417   :  { %4091 = vmatprep.subr.mxu1 %v4296_v8  ;;  %4088 = vmatprep.mubr.msk.f32.mxu0 %vm4297_vm1, %v4296_v8 }
0x1419   :  { %4084 = vmatmul.mubr.msk.f32.vlgmr.msra.gmra.mrb[36].mxu1 %vm173_vm2, %v3035_v48 }
0x141a   :  { %4093 = vmatprep.mubr.msk.f32.mxu1 %vm4297_vm1, %v4296_v8 }
0x14e4   :  { %v2875_v51 = vpop.f32.mrb[26].mxu0 }
0x14e5   :  { %v4070_v15 = vpop.f32.mrb[27].mxu0 }
0x14e8   :  { %v2952_v52 = vpop.f32.mrb[34].mxu1  ;;  %v3030_v53 = vpop.f32.mrb[28].mxu0 }
0x14e9   :  { %v4075_v54 = vpop.f32.mrb[35].mxu1  ;;  %v4080_v55 = vpop.f32.mrb[29].mxu0  ;;  %v3112_v56 = vsel %vm2114_vm5, %v3030_v53, -inf }
0x14ea   :  { %3113 = vmax.xlane.f32.xlu0 %v3112_v56  ;;  %v3457_v56 = vld [vmem:[%s4995_s16 + $0x8] sm:$0xff] }
0x14ec   :  { %v3108_v57 = vpop.f32.mrb[36].mxu1 }
0x14ed   :  { %v4085_v7 = vpop.f32.mrb[37].mxu1  ;;  %v3115_v5 = vsel %vm2114_vm5, %v3108_v57, -inf }
0x14ee   :  { %3116 = vmax.xlane.f32.xlu1 %v3115_v5  ;;  %v3458_v7 = vld [vmem:[%s4995_s16 + $0x10] sm:$0xff]  ;;  %v3459_v5 = vld [vmem:[%s4995_s16 + $0x18] sm:$0xff] }
0x14ff   :  { %3134 = vrot.lane.b32.xlu1 %v4720_v1, %s5034_s29 }
0x1503   :  { %3290 = vrot.lane.b32.xlu1 %v4822_v19, %s5035_s5 }
0x1507   :  { %3292 = vrot.lane.b32.xlu1 %v4824_v21, %s5035_s5 }
0x150b   :  { %3300 = vrot.lane.b32.xlu1 %v2952_v52, %s5036_s2 }
0x1577   :  { %v3114_v8 = vpop.xlane.xlu0 %3113 }
0x1578   :  { %v3118_v58 = vsub.f32 %v3030_v53, %v3114_v8  ;;  %v4181_v8 = vpack.c.bf16 %v3459_v5, %v3458_v7  ;;  %v3780_v7 = vld [vmem:[%s5001_s20] ss:$0 sm:$0xff] }
0x157a   :  { %v3120_v59 = vmul.f32 1.442695, %v3118_v58  ;;  %v3550_v58 = vld [vmem:[%s4996_s18] sm:$0xff] }
0x157b   :  { %v3117_v60 = vpop.xlane.xlu1 %3116 }
0x157c   :  { %4280 = vpow2.f32 %v3120_v59  ;;  %v3119_v61 = vsub.f32 %v3108_v57, %v3117_v60  ;;  %v3551_v59 = vld [vmem:[%s4996_s18 + $0x8] sm:$0xff]  ;;  %v3552_v60 = vld [vmem:[%s4996_s18 + $0x10] sm:$0xff] }
0x157e   :  { %v3122_v62 = vmul.f32 1.442695, %v3119_v61  ;;  %v4185_v61 = vpack.c.bf16 %v3551_v59, %v3550_v58  ;;  %v3781_v58 = vld [vmem:[%s5002_s21] ss:$0 sm:$0xff] }
0x157f   :  { %v3135_v63 = vpop.permute.xlu1 %3134 }
0x1580   :  { %4282 = vpow2.f32 %v3122_v62  ;;  %4087 = vmatpush3.msk.msra.mxu0 %vm2142_vm6, %v3135_v63  ;;  %v3553_v62 = vld [vmem:[%s4996_s18 + $0x18] sm:$0xff] }
0x1581   :  { %v4189_v63 = vpack.c.bf16 %v3553_v62, %v3552_v60 }
0x1583   :  { %v3291_v28 = vpop.permute.xlu1 %3290 }
0x1584   :  { %v3312_v31 = vsel %vm173_vm2, %v4782_v42, %v3291_v28  ;;  %v3769_v42 = vld [vmem:[%s4994_s13] ss:$0 sm:$0xff] }
0x1586   :  { %v4281_v1 = vpop.eup %4280 }
0x1587   :  { %v3124_v2 = vsel %vm2114_vm5, %v4281_v1, 0.0  ;;  %v3293_v29 = vpop.permute.xlu1 %3292 }
0x1588   :  { %3125 = vadd.xlane.f32.xlu0 %v3124_v2  ;;  %v3313_v36 = vsel %vm173_vm2, %v4784_v43, %v3293_v29  ;;  %v3555_v2 = vld [vmem:[%s4996_s18 + $0x28] sm:$0xff]  ;;  %v3774_v29 = vld [vmem:[%s4999_s17] ss:$0 sm:$0xff] }
0x158a   :  { %v4283_v4 = vpop.eup %4282 }
0x158b   :  { %v3127_v6 = vsel %vm2114_vm5, %v4283_v4, 0.0  ;;  %v3301_v32 = vpop.permute.xlu1 %3300 }
0x158c   :  { %3128 = vadd.xlane.f32.xlu0 %v3127_v6  ;;  %v3315_v0 = vsel %vm1517_vm4, %v3313_v36, %v3301_v32  ;;  %v3777_v36 = vld [vmem:[%s5000_s19] ss:$0 sm:$0xff] }
0x15a2   :  { %3211 = vrot.lane.b32.xlu0 %v4723_v3, %s5034_s29  ;;  %v3318_v3 = vld [vmem:[%s4993_s12] sm:$0xff] }
0x15a3   :  { %v4169_v21 = vpack.c.bf16 %v3319_v20, %v3318_v3  ;;  %v3773_v20 = vld [vmem:[%s4998_s15] ss:$0 sm:$0xff] }
0x15a5   :  { %4170 = vmatprep.subr.bf16.mxu0 %v4169_v21 }
0x15a6   :  { %3298 = vrot.lane.b32.xlu0 %v2875_v51, %s5036_s2 }
0x1615   :  { %v3126_v12 = vpop.xlane.xlu0 %3125 }
0x1616   :  { %4284 = vrcp.f32 %v3126_v12 }
0x1619   :  { %v3129_v9 = vpop.xlane.xlu0 %3128 }
0x161a   :  { %4286 = vrcp.f32 %v3129_v9 }
0x161d   :  { %v3212_v10 = vpop.permute.xlu0 %3211 }
0x161e   :  { %4092 = vmatpush3.msk.msra.mxu1 %vm2142_vm6, %v3212_v10 }
0x1620   :  { %v4285_v14 = vpop.eup %4284 }
0x1621   :  { %v3132_v16 = vmul.f32 %v4285_v14, %v4281_v1  ;;  %v3299_v30 = vpop.permute.xlu0 %3298  ;;  %v3554_v1 = vld [vmem:[%s4996_s18 + $0x20] sm:$0xff] }
0x1622   :  { %v3314_v33 = vsel %vm1517_vm4, %v3312_v31, %v3299_v30 }
0x1623   :  { %4089 = vmatmul.mubr.msk.f32.vlgmr.msra.gmra.mrb[30].mxu0 %vm2114_vm5, %v3132_v16 }
0x1624   :  { %v4287_v18 = vpop.eup %4286  ;;  %4172 = vmatpush3.bf16.msra.mxu0 %v4169_v21 }
0x1625   :  { %v3133_v19 = vmul.f32 %v4287_v18, %v4283_v4  ;;  %4174 = vmatprep.subr.bf16.mxu0 %v4173_v23  ;;  %v4193_v4 = vpack.c.bf16 %v3555_v2, %v3554_v1 }
0x1627   :  { %4094 = vmatmul.mubr.msk.f32.vlgmr.msra.gmra.mrb[38].mxu1 %vm2114_vm5, %v3133_v19  ;;  %v3772_v19 = vld [vmem:[%s4997_s14] ss:$0 sm:$0xff] }
0x1628   :  { %4176 = vmatpush3.bf16.msra.mxu0 %v4173_v23 }
0x1629   :  { %4186 = vmatprep.subr.bf16.mxu0 %v4185_v61 }
0x16f6   :  { %v3207_v24 = vpop.f32.mrb[30].mxu0 }
0x16f7   :  { %3306 = vrot.lane.b32.xlu0 %v3207_v24, %s5037_s24  ;;  %v4090_v25 = vpop.f32.mrb[31].mxu0 }
0x16fa   :  { %v3284_v26 = vpop.f32.mrb[38].mxu1 }
0x16fb   :  { %3308 = vrot.lane.b32.xlu1 %v3284_v26, %s5037_s24  ;;  %v4095_v27 = vpop.f32.mrb[39].mxu1  ;;  %v3556_v26 = vld [vmem:[%s4996_s18 + $0x30] sm:$0xff] }
0x16fc   :  { %v3557_v27 = vld [vmem:[%s4996_s18 + $0x38] sm:$0xff] }
0x16fd   :  { %v4197_v28 = vpack.c.bf16 %v3557_v27, %v3556_v26 }
0x1769   :  { %v3307_v34 = vpop.permute.xlu0 %3306 }
0x176a   :  { %v3316_v35 = vsel %vm1520_vm3, %v3314_v33, %v3307_v34 }
0x176b   :  { %4104 = vmatprep.mubr.msk.f32.mxu0 %vm86_vm0, %v3316_v35 }
0x176d   :  { %v3309_v37 = vpop.permute.xlu1 %3308 }
0x176e   :  { %v3317_v38 = vsel %vm1520_vm3, %v3315_v0, %v3309_v37 }
0x176f   :  { %4105 = vmatmul.mubr.msk.f32.vlgmr.msra.gmra.mrb[32].mxu0 %vm86_vm0, %v3317_v38 }
0x1770   :  { %4188 = vmatpush3.bf16.msra.mxu0 %v4185_v61 }
0x1771   :  { %4190 = vmatprep.subr.bf16.mxu0 %v4189_v63 }
0x1774   :  { %4192 = vmatpush3.bf16.msra.mxu0 %v4189_v63 }
0x1775   :  { %4194 = vmatprep.subr.bf16.mxu0 %v4193_v4 }
0x1778   :  { %4196 = vmatpush3.bf16.msra.mxu0 %v4193_v4 }
0x1779   :  { %4198 = vmatprep.subr.bf16.mxu0 %v4197_v28 }
0x177c   :  { %4200 = vmatpush3.bf16.msra.mxu0 %v4197_v28 }
0x1842   :  { %v4106_v39 = vpop.f32.mrb[32].mxu0 }
0x1843   :  { %v3407_v40 = vadd.f32 %v4106_v39, %v3769_v42  ;;  %v3401_v17 = vpop.f32.mrb[33].mxu0 }
0x1844   :  { %v3402_v41 = vadd.f32 %v3769_v42, %v3401_v17 }
0x1845   :  { %v3411_v46 = vadd.f32 %v3407_v40, %v4705_v50 }
0x1846   :  { %v3410_v44 = vadd.f32 %v3402_v41, %v4701_v47  ;;  %v3456_v47 = vld [vmem:[%s4995_s16] sm:$0xff] }
0x1847   :  { %v3417_v43 = vsel %vm86_vm0, %v3411_v46, 0.0  ;;  %v4177_v57 = vpack.c.bf16 %v3457_v56, %v3456_v47 }
0x1848   :  { %3418 = vadd.xlane.f32.xlu1 %v3417_v43  ;;  %v3414_v45 = vsel %vm86_vm0, %v3410_v44, 0.0 }
0x1849   :  { %3415 = vadd.xlane.f32.xlu0 %v3414_v45  ;;  %4178 = vmatprep.subr.bf16.mxu1 %v4177_v57 }
0x184a   :  { %4180 = vmatpush3.bf16.msra.mxu1 %v4177_v57 }
0x184b   :  { %4182 = vmatprep.subr.bf16.mxu1 %v4181_v8 }
0x184e   :  { %4184 = vmatpush3.bf16.msra.mxu1 %v4181_v8 }
0x18d5   :  { %v3419_v49 = vpop.xlane.xlu1 %3418 }
0x18d6   :  { %v3421_v11 = vmul.f32 0.03125, %v3419_v49  ;;  %v3416_v48 = vpop.xlane.xlu0 %3415 }
0x18d7   :  { %v3420_v51 = vmul.f32 0.03125, %v3416_v48 }
0x18d8   :  { %v3423_v15 = vsub.f32 %v3411_v46, %v3421_v11 }
0x18d9   :  { %v3422_v52 = vsub.f32 %v3410_v44, %v3420_v51 }
0x18da   :  { %v3425_v55 = vmul.f32 %v3423_v15, %v3423_v15 }
0x18db   :  { %v3424_v53 = vmul.f32 %v3422_v52, %v3422_v52 }
0x18dc   :  { %v3429_v50 = vsel %vm86_vm0, %v3425_v55, 0.0 }
0x18dd   :  { %v3426_v54 = vsel %vm86_vm0, %v3424_v53, 0.0 }
0x18de   :  { %3427 = vadd.xlane.f32.xlu0 %v3426_v54 }
0x18e2   :  { %3430 = vadd.xlane.f32.xlu0 %v3429_v50 }
0x196b   :  { %v3428_v6 = vpop.xlane.xlu0 %3427 }
0x196c   :  { %v3432_v12 = vmul.f32 0.03125, %v3428_v6 }
0x196e   :  { %v3434_v9 = vadd.f32 1e-05, %v3432_v12 }
0x196f   :  { %v3431_v10 = vpop.xlane.xlu0 %3430 }
0x1970   :  { %4288 = vrsqrt.f32 %v3434_v9  ;;  %v3433_v14 = vmul.f32 0.03125, %v3431_v10 }
0x1972   :  { %v3435_v16 = vadd.f32 1e-05, %v3433_v14 }
0x1974   :  { %4290 = vrsqrt.f32 %v3435_v16 }
0x197a   :  { %v4289_v18 = vpop.eup %4288 }
0x197b   :  { %v3438_v3 = vmul.f32 %v4289_v18, %v3422_v52 }
0x197d   :  { %v3446_v21 = vmul.f32 %v3772_v19, %v3438_v3 }
0x197e   :  { %v4291_v22 = vpop.eup %4290 }
0x197f   :  { %v3439_v13 = vmul.f32 %v4291_v22, %v3423_v15  ;;  %v3454_v23 = vadd.f32 %v3773_v20, %v3446_v21 }
0x1981   :  { %v3447_v24 = vmul.f32 %v3772_v19, %v3439_v13  ;;  %4115 = vmatprep.mubr.msk.f32.mxu1 %vm86_vm0, %v3454_v23 }
0x1983   :  { %v3455_v25 = vadd.f32 %v3773_v20, %v3447_v24 }
0x1985   :  { %4116 = vmatmul.mubr.msk.f32.vlgmr.msra.gmra.mrb[40].mxu1 %vm86_vm0, %v3455_v25 }
0x1a58   :  { %v4117_v30 = vpop.f32.mrb[40].mxu1 }
0x1a59   :  { %v3545_v31 = vadd.f32 %v4117_v30, %v3774_v29  ;;  %v3539_v32 = vpop.f32.mrb[41].mxu1 }
0x1a5a   :  { %v3540_v33 = vadd.f32 %v3774_v29, %v3539_v32 }
0x1a5b   :  { %v3549_v35 = vmax.f32 %v3545_v31, 0.0 }
0x1a5c   :  { %v3548_v34 = vmax.f32 %v3540_v33, 0.0 }
0x1a5e   :  { %4134 = vmatprep.mubr.msk.f32.mxu0 %vm3565_vm7, %v3548_v34 }
0x1a5f   :  { %4135 = vmatmul.mubr.msk.f32.vlgmr.msra.gmra.mrb[34].mxu0 %vm3565_vm7, %v3549_v35 }
0x1b32   :  { %v4136_v0 = vpop.f32.mrb[34].mxu0 }
0x1b33   :  { %v3644_v37 = vadd.f32 %v4136_v0, %v3777_v36  ;;  %v3638_v38 = vpop.f32.mrb[35].mxu0 }
0x1b34   :  { %v3639_v42 = vadd.f32 %v3777_v36, %v3638_v38 }
0x1b35   :  { %v3648_v39 = vadd.f32 %v3644_v37, %v3455_v25 }
0x1b36   :  { %v3647_v40 = vadd.f32 %v3639_v42, %v3454_v23 }
0x1b37   :  { %v3654_v17 = vsel %vm86_vm0, %v3648_v39, 0.0 }
0x1b38   :  { %3655 = vadd.xlane.f32.xlu0 %v3654_v17  ;;  %v3651_v41 = vsel %vm86_vm0, %v3647_v40, 0.0 }
0x1b39   :  { %3652 = vadd.xlane.f32.xlu1 %v3651_v41 }
0x1bc5   :  { %v3656_v46 = vpop.xlane.xlu0 %3655 }
0x1bc6   :  { %v3658_v44 = vmul.f32 0.03125, %v3656_v46  ;;  %v3653_v43 = vpop.xlane.xlu1 %3652 }
0x1bc7   :  { %v3657_v45 = vmul.f32 0.03125, %v3653_v43 }
0x1bc8   :  { %v3660_v49 = vsub.f32 %v3648_v39, %v3658_v44 }
0x1bc9   :  { %v3659_v11 = vsub.f32 %v3647_v40, %v3657_v45 }
0x1bca   :  { %v3662_v48 = vmul.f32 %v3660_v49, %v3660_v49 }
0x1bcb   :  { %v3661_v51 = vmul.f32 %v3659_v11, %v3659_v11 }
0x1bcc   :  { %v3666_v15 = vsel %vm86_vm0, %v3662_v48, 0.0 }
0x1bcd   :  { %3667 = vadd.xlane.f32.xlu0 %v3666_v15  ;;  %v3663_v52 = vsel %vm86_vm0, %v3661_v51, 0.0 }
0x1bce   :  { %3664 = vadd.xlane.f32.xlu1 %v3663_v52 }
0x1c5a   :  { %v3668_v53 = vpop.xlane.xlu0 %3667 }
0x1c5b   :  { %v3670_v54 = vmul.f32 0.03125, %v3668_v53  ;;  %v3665_v55 = vpop.xlane.xlu1 %3664 }
0x1c5c   :  { %v3669_v50 = vmul.f32 0.03125, %v3665_v55 }
0x1c5d   :  { %v3672_v47 = vadd.f32 1e-05, %v3670_v54 }
0x1c5e   :  { %v3671_v56 = vadd.f32 1e-05, %v3669_v50 }
0x1c5f   :  { %4292 = vrsqrt.f32 %v3672_v47 }
0x1c60   :  { %4294 = vrsqrt.f32 %v3671_v56 }
0x1c69   :  { %v4293_v57 = vpop.eup %4292 }
0x1c6a   :  { %v4295_v5 = vpop.eup %4294  ;;  %v3676_v8 = vmul.f32 %v4293_v57, %v3660_v49 }
0x1c6b   :  { %v3675_v59 = vmul.f32 %v4295_v5, %v3659_v11 }
0x1c6c   :  { %v3684_v60 = vmul.f32 %v3780_v7, %v3676_v8 }
0x1c6d   :  { %v3683_v61 = vmul.f32 %v3780_v7, %v3675_v59 }
0x1c6e   :  { %v3692_v62 = vadd.f32 %v3781_v58, %v3684_v60 }
0x1c6f   :  { %v3691_v63 = vadd.f32 %v3781_v58, %v3683_v61 }
0x1c70   :  { %3694 = vst.msk [vmem:[%s5003_s22 + $0x8] sm:$0xff] %vm86_vm0, %v3692_v62 }
0x1c71   :  { %3693 = vst.msk [vmem:[%s5003_s22] sm:$0xff] %vm86_vm0, %v3691_v63 }

</bundles_post_ra>
